<compile_context>
chip_gen: v6e
topology: v6e:2x2x1
jax: 0.10.0
libtpu: 0.0.40
codegen_flags: <defaults>
</compile_context>

<pallas_src>
import functools

import jax
import jax.numpy as jnp
import numpy as np
from jax.experimental import pallas as pl
from jax.experimental.pallas import tpu as pltpu


# ---------------------------------------------------------------------------
# Pallas kernel
# ---------------------------------------------------------------------------
def _conv3x3_bn_relu(pad_ref, x_f32, w_ref, shift_b, *, h, w, c):
    """One Conv3x3 + (folded) BN + ReLU application.

    pad_ref : (h+2, (w+2)*c) bf16 VMEM scratch, halo already zero.
    x_f32   : (h, w*c) f32 activation (lane-dense).
    w_ref   : (9, w*c, w*c) bf16 block-diagonal per-tap weights (BN scale folded).
    shift_b : (h, w*c) f32 folded BN shift (conv bias folded in), pre-broadcast.
    """
    x_bf = x_f32.astype(jnp.bfloat16)
    # Write the conv input into the interior of the persistent padded scratch.
    pad_ref[pl.ds(1, h), pl.ds(c, w * c)] = x_bf

    # Center tap (ky=1, kx=1) == the interior we just wrote: use the register
    # copy directly and initialize the f32 accumulator with it.
    acc = jnp.dot(x_bf, w_ref[4], preferred_element_type=jnp.float32)
    for k in (0, 1, 2, 3, 5, 6, 7, 8):
        ky, kx = divmod(k, 3)
        win = pad_ref[pl.ds(ky, h), pl.ds(kx * c, w * c)]          # (h, w*c) bf16
        acc = acc + jnp.dot(win, w_ref[k], preferred_element_type=jnp.float32)
    return jnp.maximum(acc + shift_b, 0.0)                         # BN shift + ReLU


def _rrcnn_kernel(x_ref, w1_ref, b1_ref, wA_ref, tA_ref, wB_ref, tB_ref,
                  out_ref, pad_ref, *, h, w, c):
    # Zero the padded scratch once per grid step (cheap; the halo ring stays
    # zero and the interior is overwritten by every conv).
    pad_ref[...] = jnp.zeros_like(pad_ref)

    # ---- Conv_1x1: (h, w*cin) x block-diag (w*cin, w*cout) ----
    x = x_ref[...].astype(jnp.bfloat16)                            # (h, w*cin)
    x0 = jnp.dot(x, w1_ref[...], preferred_element_type=jnp.float32)
    x0 = x0 + b1_ref[...]                                          # (h, w*c) f32

    # Hoisted per-branch shift broadcasts (JAX does not CSE broadcasts).
    shiftA = jnp.broadcast_to(tA_ref[...], (h, w * c))
    shiftB = jnp.broadcast_to(tB_ref[...], (h, w * c))

    conv = functools.partial(_conv3x3_bn_relu, pad_ref, h=h, w=w, c=c)

    def recurrent(x_in, w_ref, shift_b):                           # t = 2
        x1 = conv(x_in, w_ref, shift_b)
        x1 = conv(x_in + x1, w_ref, shift_b)
        x1 = conv(x_in + x1, w_ref, shift_b)
        return x1

    xr = recurrent(x0, wA_ref, shiftA)
    xr = recurrent(xr, wB_ref, shiftB)

    out_ref[...] = (x0 + xr).astype(out_ref.dtype)                 # lane-dense store


# ---------------------------------------------------------------------------
# Wrapper
# ---------------------------------------------------------------------------
@jax.jit
def rrcnn_forward(x_nchw, kp):
    n, cin, h, w = x_nchw.shape
    cout = kp["wA"].shape[-1] // w

    # NCHW -> NHWC -> lane-dense (n, h, w*cin) (free contiguous reshape).
    x = jnp.transpose(x_nchw, (0, 2, 3, 1)).reshape(n, h, w * cin)

    kernel = functools.partial(_rrcnn_kernel, h=h, w=w, c=cout)
    full2 = lambda i: (0, 0)
    full3 = lambda i: (0, 0, 0)

    out = pl.pallas_call(
        kernel,
        out_shape=jax.ShapeDtypeStruct((n, h, w * cout), jnp.float32),
        grid_spec=pltpu.PrefetchScalarGridSpec(
            num_scalar_prefetch=0,
            grid=(n,),
            in_specs=[
                pl.BlockSpec((None, h, w * cin), lambda i: (i, 0, 0)),  # x (batch squeezed)
                pl.BlockSpec((w * cin, w * cout), full2),               # w1 blk-diag
                pl.BlockSpec((1, w * cout), full2),                     # b1 (tiled)
                pl.BlockSpec((9, w * cout, w * cout), full3),           # wA blk-diag
                pl.BlockSpec((1, w * cout), full2),                     # shiftA (tiled)
                pl.BlockSpec((9, w * cout, w * cout), full3),           # wB blk-diag
                pl.BlockSpec((1, w * cout), full2),                     # shiftB (tiled)
            ],
            out_specs=pl.BlockSpec((None, h, w * cout), lambda i: (i, 0, 0)),
            scratch_shapes=[pltpu.VMEM((h + 2, (w + 2) * cout), jnp.bfloat16)],
        ),
        compiler_params=pltpu.CompilerParams(
            dimension_semantics=("parallel",)),
    )(x, kp["w1"], kp["b1"], kp["wA"], kp["tA"], kp["wB"], kp["tB"])

    return jnp.transpose(out.reshape(n, h, w, cout), (0, 3, 1, 2))  # -> NCHW


# ---------------------------------------------------------------------------
# Parameter construction / offline folding
# ---------------------------------------------------------------------------
def _bn_fold(bias, gamma, beta, mean, var, eps=1e-5):
    scale = gamma / jnp.sqrt(var + eps)
    shift = (bias - mean) * scale + beta        # conv bias folded into BN shift
    return scale, shift


def _blockdiag_1x1(wmat, w):
    """(Cin, Cout) -> (w*Cin, w*Cout) block-diagonal."""
    cin, cout = wmat.shape
    eye = jnp.eye(w, dtype=wmat.dtype)
    return (eye[:, None, :, None] * wmat[None, :, None, :]).reshape(w * cin, w * cout)


def _blockdiag_taps(w9, w):
    """(9, C, Cout) -> (9, w*C, w*Cout) per-tap block-diagonal."""
    _, c, cout = w9.shape
    eye = jnp.eye(w, dtype=w9.dtype)
    blk = eye[None, :, None, :, None] * w9[:, None, :, None, :]
    return blk.reshape(9, w * c, w * cout)


def prepare_params(p, w):
    """Fold BN into weights/shifts and build lane-dense kernel parameters."""
    cout = p["w1"].shape[1]
    kp = {
        "w1": _blockdiag_1x1(p["w1"], w).astype(jnp.bfloat16),
        "b1": jnp.tile(p["b1"].reshape(1, cout), (1, w)).astype(jnp.float32),
    }
    for name in ("A", "B"):
        br = p[name]
        scale, shift = _bn_fold(br["bias"], br["gamma"], br["beta"],
                                br["mean"], br["var"])
        w9 = br["w9"] * scale[None, None, :]          # fold BN scale into weights
        kp["w" + name] = _blockdiag_taps(w9, w).astype(jnp.bfloat16)
        kp["t" + name] = jnp.tile(shift.reshape(1, cout), (1, w)).astype(jnp.float32)
    return kp


def init_params(key, ch_in, ch_out):
    ks = jax.random.split(key, 14)

    def branch(k0, k1, k2, k3, k4, k5):
        return dict(
            w9=jax.random.normal(k0, (9, ch_out, ch_out), jnp.float32) * 0.12,
            bias=jax.random.normal(k1, (ch_out,), jnp.float32) * 0.1,
            gamma=1.0 + 0.1 * jax.random.normal(k2, (ch_out,), jnp.float32),
            beta=0.1 * jax.random.normal(k3, (ch_out,), jnp.float32),
            mean=0.1 * jax.random.normal(k4, (ch_out,), jnp.float32),
            var=0.5 + jnp.abs(jax.random.normal(k5, (ch_out,), jnp.float32)),
        )

    w1 = jax.random.normal(ks[0], (ch_in, ch_out), jnp.float32) * 0.3
    b1 = jax.random.normal(ks[1], (ch_out,), jnp.float32) * 0.1
    return dict(w1=w1, b1=b1, A=branch(*ks[2:8]), B=branch(*ks[8:14]))


# ---------------------------------------------------------------------------
# Pure-JAX reference (independent check, f32 HIGHEST, uses lax.conv)
# ---------------------------------------------------------------------------
def rrcnn_ref(x_nchw, p):
    x = jnp.transpose(x_nchw, (0, 2, 3, 1))
    x0 = jnp.einsum("nhwc,cd->nhwd", x, p["w1"],
                    precision=jax.lax.Precision.HIGHEST) + p["b1"]

    def branch(xin, br):
        scale, shift = _bn_fold(br["bias"], br["gamma"], br["beta"],
                                br["mean"], br["var"])
        c = br["w9"].shape[1]
        wk = br["w9"].reshape(3, 3, c, c)          # HWIO

        def conv(z):
            y = jax.lax.conv_general_dilated(
                z, wk, (1, 1), "SAME",
                dimension_numbers=("NHWC", "HWIO", "NHWC"),
                precision=jax.lax.Precision.HIGHEST)
            return jnp.maximum(y * scale + shift, 0.0)

        x1 = conv(xin)
        x1 = conv(xin + x1)
        x1 = conv(xin + x1)
        return x1

    xr = branch(x0, p["A"])
    xr = branch(xr, p["B"])
    return jnp.transpose(x0 + xr, (0, 3, 1, 2))


# ---------------------------------------------------------------------------
if __name__ == "__main__":
    N, CH_IN, CH_OUT, H, W = 2, 4, 8, 16, 16

    key = jax.random.PRNGKey(0)
    kx, kp_key = jax.random.split(key)
    x = jax.random.normal(kx, (N, CH_IN, H, W), jnp.float32)     # NCHW input
    params = init_params(kp_key, CH_IN, CH_OUT)
    kparams = prepare_params(params, W)

    out = jax.block_until_ready(rrcnn_forward(x, kparams))
    assert out.shape == (N, CH_OUT, H, W), out.shape

    ref = jax.block_until_ready(rrcnn_ref(x, params))
    # bf16 matmul operands in the kernel vs f32 HIGHEST reference -> loose tol.
    np.testing.assert_allclose(np.asarray(out), np.asarray(ref),
                               rtol=5e-2, atol=5e-2)

    print("KERNEL_OK")
</pallas_src>

<mosaic_0001>
module attributes {stable_mosaic.version = 11 : i64} {
  func.func @_rrcnn_kernel(%arg0: i32, %arg1: memref<1x16x64xf32, #tpu.memory_space<vmem>>, %arg2: memref<64x128xbf16, #tpu.memory_space<vmem>>, %arg3: memref<1x128xf32, #tpu.memory_space<vmem>>, %arg4: memref<9x128x128xbf16, #tpu.memory_space<vmem>>, %arg5: memref<1x128xf32, #tpu.memory_space<vmem>>, %arg6: memref<9x128x128xbf16, #tpu.memory_space<vmem>>, %arg7: memref<1x128xf32, #tpu.memory_space<vmem>>, %arg8: memref<1x16x128xf32, #tpu.memory_space<vmem>>, %arg9: memref<18x144xbf16, #tpu.memory_space<vmem>>) attributes {dimension_semantics = [#tpu.dimension_semantics<parallel>], iteration_bounds = array<i64: 2>, scalar_prefetch = 0 : i64, scratch_operands = 1 : i64, tpu.core_type = #tpu.core_type<tc>, window_params = [{transform_indices = @transform_0, window_bounds = array<i64: 1, 16, 64>}, {pipeline_mode = #tpu.pipeline_mode<synchronous>, transform_indices = @transform_1, window_bounds = array<i64: 64, 128>}, {pipeline_mode = #tpu.pipeline_mode<synchronous>, transform_indices = @transform_2, window_bounds = array<i64: 1, 128>}, {pipeline_mode = #tpu.pipeline_mode<synchronous>, transform_indices = @transform_3, window_bounds = array<i64: 9, 128, 128>}, {pipeline_mode = #tpu.pipeline_mode<synchronous>, transform_indices = @transform_4, window_bounds = array<i64: 1, 128>}, {pipeline_mode = #tpu.pipeline_mode<synchronous>, transform_indices = @transform_5, window_bounds = array<i64: 9, 128, 128>}, {pipeline_mode = #tpu.pipeline_mode<synchronous>, transform_indices = @transform_6, window_bounds = array<i64: 1, 128>}, {transform_indices = @transform_7, window_bounds = array<i64: 1, 16, 128>}]} {
    %cst = arith.constant 0.000000e+00 : bf16
    %0 = vector.broadcast %cst : bf16 to vector<18x144xbf16>
    %c0 = arith.constant 0 : index
    %c0_0 = arith.constant 0 : index
    %1 = vector.load %arg9[%c0, %c0_0] : memref<18x144xbf16, #tpu.memory_space<vmem>>, vector<18x144xbf16>
    tpu.vector_store %arg9[%c0, %c0_0], %0 {strides = array<i32>} : memref<18x144xbf16, #tpu.memory_space<vmem>>, vector<18x144xbf16>,
    %c0_1 = arith.constant 0 : index
    %c0_2 = arith.constant 0 : index
    %c0_3 = arith.constant 0 : index
    %2 = vector.load %arg1[%c0_1, %c0_2, %c0_3] : memref<1x16x64xf32, #tpu.memory_space<vmem>>, vector<1x16x64xf32>
    %3 = vector.shape_cast %2 : vector<1x16x64xf32> to vector<16x64xf32>
    %4 = arith.truncf %3 : vector<16x64xf32> to vector<16x64xbf16>
    %c0_4 = arith.constant 0 : index
    %c0_5 = arith.constant 0 : index
    %5 = vector.load %arg2[%c0_4, %c0_5] : memref<64x128xbf16, #tpu.memory_space<vmem>>, vector<64x128xbf16>
    %cst_6 = arith.constant dense<0.000000e+00> : vector<16x128xf32>
    %6 = tpu.matmul %4, %5, %cst_6 {dimension_numbers = #tpu.dot_dimension_numbers<[1], [0], [0], [1], [0, 0, 1, 1], [], []>} : vector<16x64xbf16>, vector<64x128xbf16>, vector<16x128xf32> -> vector<16x128xf32>
    %c0_7 = arith.constant 0 : index
    %c0_8 = arith.constant 0 : index
    %7 = vector.load %arg3[%c0_7, %c0_8] : memref<1x128xf32, #tpu.memory_space<vmem>>, vector<1x128xf32>
    %8 = vector.broadcast %7 : vector<1x128xf32> to vector<16x128xf32>
    %9 = arith.addf %6, %8 : vector<16x128xf32>
    %c0_9 = arith.constant 0 : index
    %c0_10 = arith.constant 0 : index
    %10 = vector.load %arg5[%c0_9, %c0_10] : memref<1x128xf32, #tpu.memory_space<vmem>>, vector<1x128xf32>
    %11 = vector.shape_cast %10 : vector<1x128xf32> to vector<1x128xf32>
    %12 = vector.broadcast %11 : vector<1x128xf32> to vector<16x128xf32>
    %c0_11 = arith.constant 0 : index
    %c0_12 = arith.constant 0 : index
    %13 = vector.load %arg7[%c0_11, %c0_12] : memref<1x128xf32, #tpu.memory_space<vmem>>, vector<1x128xf32>
    %14 = vector.shape_cast %13 : vector<1x128xf32> to vector<1x128xf32>
    %15 = vector.broadcast %14 : vector<1x128xf32> to vector<16x128xf32>
    %16 = arith.truncf %9 : vector<16x128xf32> to vector<16x128xbf16>
    %c1 = arith.constant 1 : index
    %c8 = arith.constant 8 : index
    %17 = vector.load %arg9[%c1, %c8] : memref<18x144xbf16, #tpu.memory_space<vmem>>, vector<16x128xbf16>
    tpu.vector_store %arg9[%c1, %c8], %16 {strides = array<i32>} : memref<18x144xbf16, #tpu.memory_space<vmem>>, vector<16x128xbf16>,
    %c4 = arith.constant 4 : index
    %c0_13 = arith.constant 0 : index
    %c0_14 = arith.constant 0 : index
    %18 = vector.load %arg4[%c4, %c0_13, %c0_14] : memref<9x128x128xbf16, #tpu.memory_space<vmem>>, vector<1x128x128xbf16>
    %19 = vector.shape_cast %18 : vector<1x128x128xbf16> to vector<128x128xbf16>
    %cst_15 = arith.constant dense<0.000000e+00> : vector<16x128xf32>
    %20 = tpu.matmul %16, %19, %cst_15 {dimension_numbers = #tpu.dot_dimension_numbers<[1], [0], [0], [1], [0, 0, 1, 1], [], []>} : vector<16x128xbf16>, vector<128x128xbf16>, vector<16x128xf32> -> vector<16x128xf32>
    %c0_16 = arith.constant 0 : index
    %c0_17 = arith.constant 0 : index
    %21 = vector.load %arg9[%c0_16, %c0_17] : memref<18x144xbf16, #tpu.memory_space<vmem>>, vector<16x128xbf16>
    %c0_18 = arith.constant 0 : index
    %c0_19 = arith.constant 0 : index
    %c0_20 = arith.constant 0 : index
    %22 = vector.load %arg4[%c0_18, %c0_19, %c0_20] : memref<9x128x128xbf16, #tpu.memory_space<vmem>>, vector<1x128x128xbf16>
    %23 = vector.shape_cast %22 : vector<1x128x128xbf16> to vector<128x128xbf16>
    %cst_21 = arith.constant dense<0.000000e+00> : vector<16x128xf32>
    %24 = tpu.matmul %21, %23, %cst_21 {dimension_numbers = #tpu.dot_dimension_numbers<[1], [0], [0], [1], [0, 0, 1, 1], [], []>} : vector<16x128xbf16>, vector<128x128xbf16>, vector<16x128xf32> -> vector<16x128xf32>
    %25 = arith.addf %20, %24 : vector<16x128xf32>
    %c0_22 = arith.constant 0 : index
    %c8_23 = arith.constant 8 : index
    %26 = vector.load %arg9[%c0_22, %c8_23] : memref<18x144xbf16, #tpu.memory_space<vmem>>, vector<16x128xbf16>
    %c1_24 = arith.constant 1 : index
    %c0_25 = arith.constant 0 : index
    %c0_26 = arith.constant 0 : index
    %27 = vector.load %arg4[%c1_24, %c0_25, %c0_26] : memref<9x128x128xbf16, #tpu.memory_space<vmem>>, vector<1x128x128xbf16>
    %28 = vector.shape_cast %27 : vector<1x128x128xbf16> to vector<128x128xbf16>
    %cst_27 = arith.constant dense<0.000000e+00> : vector<16x128xf32>
    %29 = tpu.matmul %26, %28, %cst_27 {dimension_numbers = #tpu.dot_dimension_numbers<[1], [0], [0], [1], [0, 0, 1, 1], [], []>} : vector<16x128xbf16>, vector<128x128xbf16>, vector<16x128xf32> -> vector<16x128xf32>
    %30 = arith.addf %25, %29 : vector<16x128xf32>
    %c0_28 = arith.constant 0 : index
    %c16 = arith.constant 16 : index
    %31 = vector.load %arg9[%c0_28, %c16] : memref<18x144xbf16, #tpu.memory_space<vmem>>, vector<16x128xbf16>
    %c2 = arith.constant 2 : index
    %c0_29 = arith.constant 0 : index
    %c0_30 = arith.constant 0 : index
    %32 = vector.load %arg4[%c2, %c0_29, %c0_30] : memref<9x128x128xbf16, #tpu.memory_space<vmem>>, vector<1x128x128xbf16>
    %33 = vector.shape_cast %32 : vector<1x128x128xbf16> to vector<128x128xbf16>
    %cst_31 = arith.constant dense<0.000000e+00> : vector<16x128xf32>
    %34 = tpu.matmul %31, %33, %cst_31 {dimension_numbers = #tpu.dot_dimension_numbers<[1], [0], [0], [1], [0, 0, 1, 1], [], []>} : vector<16x128xbf16>, vector<128x128xbf16>, vector<16x128xf32> -> vector<16x128xf32>
    %35 = arith.addf %30, %34 : vector<16x128xf32>
    %c1_32 = arith.constant 1 : index
    %c0_33 = arith.constant 0 : index
    %36 = vector.load %arg9[%c1_32, %c0_33] : memref<18x144xbf16, #tpu.memory_space<vmem>>, vector<16x128xbf16>
    %c3 = arith.constant 3 : index
    %c0_34 = arith.constant 0 : index
    %c0_35 = arith.constant 0 : index
    %37 = vector.load %arg4[%c3, %c0_34, %c0_35] : memref<9x128x128xbf16, #tpu.memory_space<vmem>>, vector<1x128x128xbf16>
    %38 = vector.shape_cast %37 : vector<1x128x128xbf16> to vector<128x128xbf16>
    %cst_36 = arith.constant dense<0.000000e+00> : vector<16x128xf32>
    %39 = tpu.matmul %36, %38, %cst_36 {dimension_numbers = #tpu.dot_dimension_numbers<[1], [0], [0], [1], [0, 0, 1, 1], [], []>} : vector<16x128xbf16>, vector<128x128xbf16>, vector<16x128xf32> -> vector<16x128xf32>
    %40 = arith.addf %35, %39 : vector<16x128xf32>
    %c1_37 = arith.constant 1 : index
    %c16_38 = arith.constant 16 : index
    %41 = vector.load %arg9[%c1_37, %c16_38] : memref<18x144xbf16, #tpu.memory_space<vmem>>, vector<16x128xbf16>
    %c5 = arith.constant 5 : index
    %c0_39 = arith.constant 0 : index
    %c0_40 = arith.constant 0 : index
    %42 = vector.load %arg4[%c5, %c0_39, %c0_40] : memref<9x128x128xbf16, #tpu.memory_space<vmem>>, vector<1x128x128xbf16>
    %43 = vector.shape_cast %42 : vector<1x128x128xbf16> to vector<128x128xbf16>
    %cst_41 = arith.constant dense<0.000000e+00> : vector<16x128xf32>
    %44 = tpu.matmul %41, %43, %cst_41 {dimension_numbers = #tpu.dot_dimension_numbers<[1], [0], [0], [1], [0, 0, 1, 1], [], []>} : vector<16x128xbf16>, vector<128x128xbf16>, vector<16x128xf32> -> vector<16x128xf32>
    %45 = arith.addf %40, %44 : vector<16x128xf32>
    %c2_42 = arith.constant 2 : index
    %c0_43 = arith.constant 0 : index
    %46 = vector.load %arg9[%c2_42, %c0_43] : memref<18x144xbf16, #tpu.memory_space<vmem>>, vector<16x128xbf16>
    %c6 = arith.constant 6 : index
    %c0_44 = arith.constant 0 : index
    %c0_45 = arith.constant 0 : index
    %47 = vector.load %arg4[%c6, %c0_44, %c0_45] : memref<9x128x128xbf16, #tpu.memory_space<vmem>>, vector<1x128x128xbf16>
    %48 = vector.shape_cast %47 : vector<1x128x128xbf16> to vector<128x128xbf16>
    %cst_46 = arith.constant dense<0.000000e+00> : vector<16x128xf32>
    %49 = tpu.matmul %46, %48, %cst_46 {dimension_numbers = #tpu.dot_dimension_numbers<[1], [0], [0], [1], [0, 0, 1, 1], [], []>} : vector<16x128xbf16>, vector<128x128xbf16>, vector<16x128xf32> -> vector<16x128xf32>
    %50 = arith.addf %45, %49 : vector<16x128xf32>
    %c2_47 = arith.constant 2 : index
    %c8_48 = arith.constant 8 : index
    %51 = vector.load %arg9[%c2_47, %c8_48] : memref<18x144xbf16, #tpu.memory_space<vmem>>, vector<16x128xbf16>
    %c7 = arith.constant 7 : index
    %c0_49 = arith.constant 0 : index
    %c0_50 = arith.constant 0 : index
    %52 = vector.load %arg4[%c7, %c0_49, %c0_50] : memref<9x128x128xbf16, #tpu.memory_space<vmem>>, vector<1x128x128xbf16>
    %53 = vector.shape_cast %52 : vector<1x128x128xbf16> to vector<128x128xbf16>
    %cst_51 = arith.constant dense<0.000000e+00> : vector<16x128xf32>
    %54 = tpu.matmul %51, %53, %cst_51 {dimension_numbers = #tpu.dot_dimension_numbers<[1], [0], [0], [1], [0, 0, 1, 1], [], []>} : vector<16x128xbf16>, vector<128x128xbf16>, vector<16x128xf32> -> vector<16x128xf32>
    %55 = arith.addf %50, %54 : vector<16x128xf32>
    %c2_52 = arith.constant 2 : index
    %c16_53 = arith.constant 16 : index
    %56 = vector.load %arg9[%c2_52, %c16_53] : memref<18x144xbf16, #tpu.memory_space<vmem>>, vector<16x128xbf16>
    %c8_54 = arith.constant 8 : index
    %c0_55 = arith.constant 0 : index
    %c0_56 = arith.constant 0 : index
    %57 = vector.load %arg4[%c8_54, %c0_55, %c0_56] : memref<9x128x128xbf16, #tpu.memory_space<vmem>>, vector<1x128x128xbf16>
    %58 = vector.shape_cast %57 : vector<1x128x128xbf16> to vector<128x128xbf16>
    %cst_57 = arith.constant dense<0.000000e+00> : vector<16x128xf32>
    %59 = tpu.matmul %56, %58, %cst_57 {dimension_numbers = #tpu.dot_dimension_numbers<[1], [0], [0], [1], [0, 0, 1, 1], [], []>} : vector<16x128xbf16>, vector<128x128xbf16>, vector<16x128xf32> -> vector<16x128xf32>
    %60 = arith.addf %55, %59 : vector<16x128xf32>
    %61 = arith.addf %60, %12 : vector<16x128xf32>
    %cst_58 = arith.constant 0.000000e+00 : f32
    %62 = vector.broadcast %cst_58 : f32 to vector<16x128xf32>
    %63 = arith.maximumf %61, %62 : vector<16x128xf32>
    %64 = arith.addf %9, %63 : vector<16x128xf32>
    %65 = arith.truncf %64 : vector<16x128xf32> to vector<16x128xbf16>
    %c1_59 = arith.constant 1 : index
    %c8_60 = arith.constant 8 : index
    %66 = vector.load %arg9[%c1_59, %c8_60] : memref<18x144xbf16, #tpu.memory_space<vmem>>, vector<16x128xbf16>
    tpu.vector_store %arg9[%c1_59, %c8_60], %65 {strides = array<i32>} : memref<18x144xbf16, #tpu.memory_space<vmem>>, vector<16x128xbf16>,
    %c4_61 = arith.constant 4 : index
    %c0_62 = arith.constant 0 : index
    %c0_63 = arith.constant 0 : index
    %67 = vector.load %arg4[%c4_61, %c0_62, %c0_63] : memref<9x128x128xbf16, #tpu.memory_space<vmem>>, vector<1x128x128xbf16>
    %68 = vector.shape_cast %67 : vector<1x128x128xbf16> to vector<128x128xbf16>
    %cst_64 = arith.constant dense<0.000000e+00> : vector<16x128xf32>
    %69 = tpu.matmul %65, %68, %cst_64 {dimension_numbers = #tpu.dot_dimension_numbers<[1], [0], [0], [1], [0, 0, 1, 1], [], []>} : vector<16x128xbf16>, vector<128x128xbf16>, vector<16x128xf32> -> vector<16x128xf32>
    %c0_65 = arith.constant 0 : index
    %c0_66 = arith.constant 0 : index
    %70 = vector.load %arg9[%c0_65, %c0_66] : memref<18x144xbf16, #tpu.memory_space<vmem>>, vector<16x128xbf16>
    %c0_67 = arith.constant 0 : index
    %c0_68 = arith.constant 0 : index
    %c0_69 = arith.constant 0 : index
    %71 = vector.load %arg4[%c0_67, %c0_68, %c0_69] : memref<9x128x128xbf16, #tpu.memory_space<vmem>>, vector<1x128x128xbf16>
    %72 = vector.shape_cast %71 : vector<1x128x128xbf16> to vector<128x128xbf16>
    %cst_70 = arith.constant dense<0.000000e+00> : vector<16x128xf32>
    %73 = tpu.matmul %70, %72, %cst_70 {dimension_numbers = #tpu.dot_dimension_numbers<[1], [0], [0], [1], [0, 0, 1, 1], [], []>} : vector<16x128xbf16>, vector<128x128xbf16>, vector<16x128xf32> -> vector<16x128xf32>
    %74 = arith.addf %69, %73 : vector<16x128xf32>
    %c0_71 = arith.constant 0 : index
    %c8_72 = arith.constant 8 : index
    %75 = vector.load %arg9[%c0_71, %c8_72] : memref<18x144xbf16, #tpu.memory_space<vmem>>, vector<16x128xbf16>
    %c1_73 = arith.constant 1 : index
    %c0_74 = arith.constant 0 : index
    %c0_75 = arith.constant 0 : index
    %76 = vector.load %arg4[%c1_73, %c0_74, %c0_75] : memref<9x128x128xbf16, #tpu.memory_space<vmem>>, vector<1x128x128xbf16>
    %77 = vector.shape_cast %76 : vector<1x128x128xbf16> to vector<128x128xbf16>
    %cst_76 = arith.constant dense<0.000000e+00> : vector<16x128xf32>
    %78 = tpu.matmul %75, %77, %cst_76 {dimension_numbers = #tpu.dot_dimension_numbers<[1], [0], [0], [1], [0, 0, 1, 1], [], []>} : vector<16x128xbf16>, vector<128x128xbf16>, vector<16x128xf32> -> vector<16x128xf32>
    %79 = arith.addf %74, %78 : vector<16x128xf32>
    %c0_77 = arith.constant 0 : index
    %c16_78 = arith.constant 16 : index
    %80 = vector.load %arg9[%c0_77, %c16_78] : memref<18x144xbf16, #tpu.memory_space<vmem>>, vector<16x128xbf16>
    %c2_79 = arith.constant 2 : index
    %c0_80 = arith.constant 0 : index
    %c0_81 = arith.constant 0 : index
    %81 = vector.load %arg4[%c2_79, %c0_80, %c0_81] : memref<9x128x128xbf16, #tpu.memory_space<vmem>>, vector<1x128x128xbf16>
    %82 = vector.shape_cast %81 : vector<1x128x128xbf16> to vector<128x128xbf16>
    %cst_82 = arith.constant dense<0.000000e+00> : vector<16x128xf32>
    %83 = tpu.matmul %80, %82, %cst_82 {dimension_numbers = #tpu.dot_dimension_numbers<[1], [0], [0], [1], [0, 0, 1, 1], [], []>} : vector<16x128xbf16>, vector<128x128xbf16>, vector<16x128xf32> -> vector<16x128xf32>
    %84 = arith.addf %79, %83 : vector<16x128xf32>
    %c1_83 = arith.constant 1 : index
    %c0_84 = arith.constant 0 : index
    %85 = vector.load %arg9[%c1_83, %c0_84] : memref<18x144xbf16, #tpu.memory_space<vmem>>, vector<16x128xbf16>
    %c3_85 = arith.constant 3 : index
    %c0_86 = arith.constant 0 : index
    %c0_87 = arith.constant 0 : index
    %86 = vector.load %arg4[%c3_85, %c0_86, %c0_87] : memref<9x128x128xbf16, #tpu.memory_space<vmem>>, vector<1x128x128xbf16>
    %87 = vector.shape_cast %86 : vector<1x128x128xbf16> to vector<128x128xbf16>
    %cst_88 = arith.constant dense<0.000000e+00> : vector<16x128xf32>
    %88 = tpu.matmul %85, %87, %cst_88 {dimension_numbers = #tpu.dot_dimension_numbers<[1], [0], [0], [1], [0, 0, 1, 1], [], []>} : vector<16x128xbf16>, vector<128x128xbf16>, vector<16x128xf32> -> vector<16x128xf32>
    %89 = arith.addf %84, %88 : vector<16x128xf32>
    %c1_89 = arith.constant 1 : index
    %c16_90 = arith.constant 16 : index
    %90 = vector.load %arg9[%c1_89, %c16_90] : memref<18x144xbf16, #tpu.memory_space<vmem>>, vector<16x128xbf16>
    %c5_91 = arith.constant 5 : index
    %c0_92 = arith.constant 0 : index
    %c0_93 = arith.constant 0 : index
    %91 = vector.load %arg4[%c5_91, %c0_92, %c0_93] : memref<9x128x128xbf16, #tpu.memory_space<vmem>>, vector<1x128x128xbf16>
    %92 = vector.shape_cast %91 : vector<1x128x128xbf16> to vector<128x128xbf16>
    %cst_94 = arith.constant dense<0.000000e+00> : vector<16x128xf32>
    %93 = tpu.matmul %90, %92, %cst_94 {dimension_numbers = #tpu.dot_dimension_numbers<[1], [0], [0], [1], [0, 0, 1, 1], [], []>} : vector<16x128xbf16>, vector<128x128xbf16>, vector<16x128xf32> -> vector<16x128xf32>
    %94 = arith.addf %89, %93 : vector<16x128xf32>
    %c2_95 = arith.constant 2 : index
    %c0_96 = arith.constant 0 : index
    %95 = vector.load %arg9[%c2_95, %c0_96] : memref<18x144xbf16, #tpu.memory_space<vmem>>, vector<16x128xbf16>
    %c6_97 = arith.constant 6 : index
    %c0_98 = arith.constant 0 : index
    %c0_99 = arith.constant 0 : index
    %96 = vector.load %arg4[%c6_97, %c0_98, %c0_99] : memref<9x128x128xbf16, #tpu.memory_space<vmem>>, vector<1x128x128xbf16>
    %97 = vector.shape_cast %96 : vector<1x128x128xbf16> to vector<128x128xbf16>
    %cst_100 = arith.constant dense<0.000000e+00> : vector<16x128xf32>
    %98 = tpu.matmul %95, %97, %cst_100 {dimension_numbers = #tpu.dot_dimension_numbers<[1], [0], [0], [1], [0, 0, 1, 1], [], []>} : vector<16x128xbf16>, vector<128x128xbf16>, vector<16x128xf32> -> vector<16x128xf32>
    %99 = arith.addf %94, %98 : vector<16x128xf32>
    %c2_101 = arith.constant 2 : index
    %c8_102 = arith.constant 8 : index
    %100 = vector.load %arg9[%c2_101, %c8_102] : memref<18x144xbf16, #tpu.memory_space<vmem>>, vector<16x128xbf16>
    %c7_103 = arith.constant 7 : index
    %c0_104 = arith.constant 0 : index
    %c0_105 = arith.constant 0 : index
    %101 = vector.load %arg4[%c7_103, %c0_104, %c0_105] : memref<9x128x128xbf16, #tpu.memory_space<vmem>>, vector<1x128x128xbf16>
    %102 = vector.shape_cast %101 : vector<1x128x128xbf16> to vector<128x128xbf16>
    %cst_106 = arith.constant dense<0.000000e+00> : vector<16x128xf32>
    %103 = tpu.matmul %100, %102, %cst_106 {dimension_numbers = #tpu.dot_dimension_numbers<[1], [0], [0], [1], [0, 0, 1, 1], [], []>} : vector<16x128xbf16>, vector<128x128xbf16>, vector<16x128xf32> -> vector<16x128xf32>
    %104 = arith.addf %99, %103 : vector<16x128xf32>
    %c2_107 = arith.constant 2 : index
    %c16_108 = arith.constant 16 : index
    %105 = vector.load %arg9[%c2_107, %c16_108] : memref<18x144xbf16, #tpu.memory_space<vmem>>, vector<16x128xbf16>
    %c8_109 = arith.constant 8 : index
    %c0_110 = arith.constant 0 : index
    %c0_111 = arith.constant 0 : index
    %106 = vector.load %arg4[%c8_109, %c0_110, %c0_111] : memref<9x128x128xbf16, #tpu.memory_space<vmem>>, vector<1x128x128xbf16>
    %107 = vector.shape_cast %106 : vector<1x128x128xbf16> to vector<128x128xbf16>
    %cst_112 = arith.constant dense<0.000000e+00> : vector<16x128xf32>
    %108 = tpu.matmul %105, %107, %cst_112 {dimension_numbers = #tpu.dot_dimension_numbers<[1], [0], [0], [1], [0, 0, 1, 1], [], []>} : vector<16x128xbf16>, vector<128x128xbf16>, vector<16x128xf32> -> vector<16x128xf32>
    %109 = arith.addf %104, %108 : vector<16x128xf32>
    %110 = arith.addf %109, %12 : vector<16x128xf32>
    %cst_113 = arith.constant 0.000000e+00 : f32
    %111 = vector.broadcast %cst_113 : f32 to vector<16x128xf32>
    %112 = arith.maximumf %110, %111 : vector<16x128xf32>
    %113 = arith.addf %9, %112 : vector<16x128xf32>
    %114 = arith.truncf %113 : vector<16x128xf32> to vector<16x128xbf16>
    %c1_114 = arith.constant 1 : index
    %c8_115 = arith.constant 8 : index
    %115 = vector.load %arg9[%c1_114, %c8_115] : memref<18x144xbf16, #tpu.memory_space<vmem>>, vector<16x128xbf16>
    tpu.vector_store %arg9[%c1_114, %c8_115], %114 {strides = array<i32>} : memref<18x144xbf16, #tpu.memory_space<vmem>>, vector<16x128xbf16>,
    %c4_116 = arith.constant 4 : index
    %c0_117 = arith.constant 0 : index
    %c0_118 = arith.constant 0 : index
    %116 = vector.load %arg4[%c4_116, %c0_117, %c0_118] : memref<9x128x128xbf16, #tpu.memory_space<vmem>>, vector<1x128x128xbf16>
    %117 = vector.shape_cast %116 : vector<1x128x128xbf16> to vector<128x128xbf16>
    %cst_119 = arith.constant dense<0.000000e+00> : vector<16x128xf32>
    %118 = tpu.matmul %114, %117, %cst_119 {dimension_numbers = #tpu.dot_dimension_numbers<[1], [0], [0], [1], [0, 0, 1, 1], [], []>} : vector<16x128xbf16>, vector<128x128xbf16>, vector<16x128xf32> -> vector<16x128xf32>
    %c0_120 = arith.constant 0 : index
    %c0_121 = arith.constant 0 : index
    %119 = vector.load %arg9[%c0_120, %c0_121] : memref<18x144xbf16, #tpu.memory_space<vmem>>, vector<16x128xbf16>
    %c0_122 = arith.constant 0 : index
    %c0_123 = arith.constant 0 : index
    %c0_124 = arith.constant 0 : index
    %120 = vector.load %arg4[%c0_122, %c0_123, %c0_124] : memref<9x128x128xbf16, #tpu.memory_space<vmem>>, vector<1x128x128xbf16>
    %121 = vector.shape_cast %120 : vector<1x128x128xbf16> to vector<128x128xbf16>
    %cst_125 = arith.constant dense<0.000000e+00> : vector<16x128xf32>
    %122 = tpu.matmul %119, %121, %cst_125 {dimension_numbers = #tpu.dot_dimension_numbers<[1], [0], [0], [1], [0, 0, 1, 1], [], []>} : vector<16x128xbf16>, vector<128x128xbf16>, vector<16x128xf32> -> vector<16x128xf32>
    %123 = arith.addf %118, %122 : vector<16x128xf32>
    %c0_126 = arith.constant 0 : index
    %c8_127 = arith.constant 8 : index
    %124 = vector.load %arg9[%c0_126, %c8_127] : memref<18x144xbf16, #tpu.memory_space<vmem>>, vector<16x128xbf16>
    %c1_128 = arith.constant 1 : index
    %c0_129 = arith.constant 0 : index
    %c0_130 = arith.constant 0 : index
    %125 = vector.load %arg4[%c1_128, %c0_129, %c0_130] : memref<9x128x128xbf16, #tpu.memory_space<vmem>>, vector<1x128x128xbf16>
    %126 = vector.shape_cast %125 : vector<1x128x128xbf16> to vector<128x128xbf16>
    %cst_131 = arith.constant dense<0.000000e+00> : vector<16x128xf32>
    %127 = tpu.matmul %124, %126, %cst_131 {dimension_numbers = #tpu.dot_dimension_numbers<[1], [0], [0], [1], [0, 0, 1, 1], [], []>} : vector<16x128xbf16>, vector<128x128xbf16>, vector<16x128xf32> -> vector<16x128xf32>
    %128 = arith.addf %123, %127 : vector<16x128xf32>
    %c0_132 = arith.constant 0 : index
    %c16_133 = arith.constant 16 : index
    %129 = vector.load %arg9[%c0_132, %c16_133] : memref<18x144xbf16, #tpu.memory_space<vmem>>, vector<16x128xbf16>
    %c2_134 = arith.constant 2 : index
    %c0_135 = arith.constant 0 : index
    %c0_136 = arith.constant 0 : index
    %130 = vector.load %arg4[%c2_134, %c0_135, %c0_136] : memref<9x128x128xbf16, #tpu.memory_space<vmem>>, vector<1x128x128xbf16>
    %131 = vector.shape_cast %130 : vector<1x128x128xbf16> to vector<128x128xbf16>
    %cst_137 = arith.constant dense<0.000000e+00> : vector<16x128xf32>
    %132 = tpu.matmul %129, %131, %cst_137 {dimension_numbers = #tpu.dot_dimension_numbers<[1], [0], [0], [1], [0, 0, 1, 1], [], []>} : vector<16x128xbf16>, vector<128x128xbf16>, vector<16x128xf32> -> vector<16x128xf32>
    %133 = arith.addf %128, %132 : vector<16x128xf32>
    %c1_138 = arith.constant 1 : index
    %c0_139 = arith.constant 0 : index
    %134 = vector.load %arg9[%c1_138, %c0_139] : memref<18x144xbf16, #tpu.memory_space<vmem>>, vector<16x128xbf16>
    %c3_140 = arith.constant 3 : index
    %c0_141 = arith.constant 0 : index
    %c0_142 = arith.constant 0 : index
    %135 = vector.load %arg4[%c3_140, %c0_141, %c0_142] : memref<9x128x128xbf16, #tpu.memory_space<vmem>>, vector<1x128x128xbf16>
    %136 = vector.shape_cast %135 : vector<1x128x128xbf16> to vector<128x128xbf16>
    %cst_143 = arith.constant dense<0.000000e+00> : vector<16x128xf32>
    %137 = tpu.matmul %134, %136, %cst_143 {dimension_numbers = #tpu.dot_dimension_numbers<[1], [0], [0], [1], [0, 0, 1, 1], [], []>} : vector<16x128xbf16>, vector<128x128xbf16>, vector<16x128xf32> -> vector<16x128xf32>
    %138 = arith.addf %133, %137 : vector<16x128xf32>
    %c1_144 = arith.constant 1 : index
    %c16_145 = arith.constant 16 : index
    %139 = vector.load %arg9[%c1_144, %c16_145] : memref<18x144xbf16, #tpu.memory_space<vmem>>, vector<16x128xbf16>
    %c5_146 = arith.constant 5 : index
    %c0_147 = arith.constant 0 : index
    %c0_148 = arith.constant 0 : index
    %140 = vector.load %arg4[%c5_146, %c0_147, %c0_148] : memref<9x128x128xbf16, #tpu.memory_space<vmem>>, vector<1x128x128xbf16>
    %141 = vector.shape_cast %140 : vector<1x128x128xbf16> to vector<128x128xbf16>
    %cst_149 = arith.constant dense<0.000000e+00> : vector<16x128xf32>
    %142 = tpu.matmul %139, %141, %cst_149 {dimension_numbers = #tpu.dot_dimension_numbers<[1], [0], [0], [1], [0, 0, 1, 1], [], []>} : vector<16x128xbf16>, vector<128x128xbf16>, vector<16x128xf32> -> vector<16x128xf32>
    %143 = arith.addf %138, %142 : vector<16x128xf32>
    %c2_150 = arith.constant 2 : index
    %c0_151 = arith.constant 0 : index
    %144 = vector.load %arg9[%c2_150, %c0_151] : memref<18x144xbf16, #tpu.memory_space<vmem>>, vector<16x128xbf16>
    %c6_152 = arith.constant 6 : index
    %c0_153 = arith.constant 0 : index
    %c0_154 = arith.constant 0 : index
    %145 = vector.load %arg4[%c6_152, %c0_153, %c0_154] : memref<9x128x128xbf16, #tpu.memory_space<vmem>>, vector<1x128x128xbf16>
    %146 = vector.shape_cast %145 : vector<1x128x128xbf16> to vector<128x128xbf16>
    %cst_155 = arith.constant dense<0.000000e+00> : vector<16x128xf32>
    %147 = tpu.matmul %144, %146, %cst_155 {dimension_numbers = #tpu.dot_dimension_numbers<[1], [0], [0], [1], [0, 0, 1, 1], [], []>} : vector<16x128xbf16>, vector<128x128xbf16>, vector<16x128xf32> -> vector<16x128xf32>
    %148 = arith.addf %143, %147 : vector<16x128xf32>
    %c2_156 = arith.constant 2 : index
    %c8_157 = arith.constant 8 : index
    %149 = vector.load %arg9[%c2_156, %c8_157] : memref<18x144xbf16, #tpu.memory_space<vmem>>, vector<16x128xbf16>
    %c7_158 = arith.constant 7 : index
    %c0_159 = arith.constant 0 : index
    %c0_160 = arith.constant 0 : index
    %150 = vector.load %arg4[%c7_158, %c0_159, %c0_160] : memref<9x128x128xbf16, #tpu.memory_space<vmem>>, vector<1x128x128xbf16>
    %151 = vector.shape_cast %150 : vector<1x128x128xbf16> to vector<128x128xbf16>
    %cst_161 = arith.constant dense<0.000000e+00> : vector<16x128xf32>
    %152 = tpu.matmul %149, %151, %cst_161 {dimension_numbers = #tpu.dot_dimension_numbers<[1], [0], [0], [1], [0, 0, 1, 1], [], []>} : vector<16x128xbf16>, vector<128x128xbf16>, vector<16x128xf32> -> vector<16x128xf32>
    %153 = arith.addf %148, %152 : vector<16x128xf32>
    %c2_162 = arith.constant 2 : index
    %c16_163 = arith.constant 16 : index
    %154 = vector.load %arg9[%c2_162, %c16_163] : memref<18x144xbf16, #tpu.memory_space<vmem>>, vector<16x128xbf16>
    %c8_164 = arith.constant 8 : index
    %c0_165 = arith.constant 0 : index
    %c0_166 = arith.constant 0 : index
    %155 = vector.load %arg4[%c8_164, %c0_165, %c0_166] : memref<9x128x128xbf16, #tpu.memory_space<vmem>>, vector<1x128x128xbf16>
    %156 = vector.shape_cast %155 : vector<1x128x128xbf16> to vector<128x128xbf16>
    %cst_167 = arith.constant dense<0.000000e+00> : vector<16x128xf32>
    %157 = tpu.matmul %154, %156, %cst_167 {dimension_numbers = #tpu.dot_dimension_numbers<[1], [0], [0], [1], [0, 0, 1, 1], [], []>} : vector<16x128xbf16>, vector<128x128xbf16>, vector<16x128xf32> -> vector<16x128xf32>
    %158 = arith.addf %153, %157 : vector<16x128xf32>
    %159 = arith.addf %158, %12 : vector<16x128xf32>
    %cst_168 = arith.constant 0.000000e+00 : f32
    %160 = vector.broadcast %cst_168 : f32 to vector<16x128xf32>
    %161 = arith.maximumf %159, %160 : vector<16x128xf32>
    %162 = arith.truncf %161 : vector<16x128xf32> to vector<16x128xbf16>
    %c1_169 = arith.constant 1 : index
    %c8_170 = arith.constant 8 : index
    %163 = vector.load %arg9[%c1_169, %c8_170] : memref<18x144xbf16, #tpu.memory_space<vmem>>, vector<16x128xbf16>
    tpu.vector_store %arg9[%c1_169, %c8_170], %162 {strides = array<i32>} : memref<18x144xbf16, #tpu.memory_space<vmem>>, vector<16x128xbf16>,
    %c4_171 = arith.constant 4 : index
    %c0_172 = arith.constant 0 : index
    %c0_173 = arith.constant 0 : index
    %164 = vector.load %arg6[%c4_171, %c0_172, %c0_173] : memref<9x128x128xbf16, #tpu.memory_space<vmem>>, vector<1x128x128xbf16>
    %165 = vector.shape_cast %164 : vector<1x128x128xbf16> to vector<128x128xbf16>
    %cst_174 = arith.constant dense<0.000000e+00> : vector<16x128xf32>
    %166 = tpu.matmul %162, %165, %cst_174 {dimension_numbers = #tpu.dot_dimension_numbers<[1], [0], [0], [1], [0, 0, 1, 1], [], []>} : vector<16x128xbf16>, vector<128x128xbf16>, vector<16x128xf32> -> vector<16x128xf32>
    %c0_175 = arith.constant 0 : index
    %c0_176 = arith.constant 0 : index
    %167 = vector.load %arg9[%c0_175, %c0_176] : memref<18x144xbf16, #tpu.memory_space<vmem>>, vector<16x128xbf16>
    %c0_177 = arith.constant 0 : index
    %c0_178 = arith.constant 0 : index
    %c0_179 = arith.constant 0 : index
    %168 = vector.load %arg6[%c0_177, %c0_178, %c0_179] : memref<9x128x128xbf16, #tpu.memory_space<vmem>>, vector<1x128x128xbf16>
    %169 = vector.shape_cast %168 : vector<1x128x128xbf16> to vector<128x128xbf16>
    %cst_180 = arith.constant dense<0.000000e+00> : vector<16x128xf32>
    %170 = tpu.matmul %167, %169, %cst_180 {dimension_numbers = #tpu.dot_dimension_numbers<[1], [0], [0], [1], [0, 0, 1, 1], [], []>} : vector<16x128xbf16>, vector<128x128xbf16>, vector<16x128xf32> -> vector<16x128xf32>
    %171 = arith.addf %166, %170 : vector<16x128xf32>
    %c0_181 = arith.constant 0 : index
    %c8_182 = arith.constant 8 : index
    %172 = vector.load %arg9[%c0_181, %c8_182] : memref<18x144xbf16, #tpu.memory_space<vmem>>, vector<16x128xbf16>
    %c1_183 = arith.constant 1 : index
    %c0_184 = arith.constant 0 : index
    %c0_185 = arith.constant 0 : index
    %173 = vector.load %arg6[%c1_183, %c0_184, %c0_185] : memref<9x128x128xbf16, #tpu.memory_space<vmem>>, vector<1x128x128xbf16>
    %174 = vector.shape_cast %173 : vector<1x128x128xbf16> to vector<128x128xbf16>
    %cst_186 = arith.constant dense<0.000000e+00> : vector<16x128xf32>
    %175 = tpu.matmul %172, %174, %cst_186 {dimension_numbers = #tpu.dot_dimension_numbers<[1], [0], [0], [1], [0, 0, 1, 1], [], []>} : vector<16x128xbf16>, vector<128x128xbf16>, vector<16x128xf32> -> vector<16x128xf32>
    %176 = arith.addf %171, %175 : vector<16x128xf32>
    %c0_187 = arith.constant 0 : index
    %c16_188 = arith.constant 16 : index
    %177 = vector.load %arg9[%c0_187, %c16_188] : memref<18x144xbf16, #tpu.memory_space<vmem>>, vector<16x128xbf16>
    %c2_189 = arith.constant 2 : index
    %c0_190 = arith.constant 0 : index
    %c0_191 = arith.constant 0 : index
    %178 = vector.load %arg6[%c2_189, %c0_190, %c0_191] : memref<9x128x128xbf16, #tpu.memory_space<vmem>>, vector<1x128x128xbf16>
    %179 = vector.shape_cast %178 : vector<1x128x128xbf16> to vector<128x128xbf16>
    %cst_192 = arith.constant dense<0.000000e+00> : vector<16x128xf32>
    %180 = tpu.matmul %177, %179, %cst_192 {dimension_numbers = #tpu.dot_dimension_numbers<[1], [0], [0], [1], [0, 0, 1, 1], [], []>} : vector<16x128xbf16>, vector<128x128xbf16>, vector<16x128xf32> -> vector<16x128xf32>
    %181 = arith.addf %176, %180 : vector<16x128xf32>
    %c1_193 = arith.constant 1 : index
    %c0_194 = arith.constant 0 : index
    %182 = vector.load %arg9[%c1_193, %c0_194] : memref<18x144xbf16, #tpu.memory_space<vmem>>, vector<16x128xbf16>
    %c3_195 = arith.constant 3 : index
    %c0_196 = arith.constant 0 : index
    %c0_197 = arith.constant 0 : index
    %183 = vector.load %arg6[%c3_195, %c0_196, %c0_197] : memref<9x128x128xbf16, #tpu.memory_space<vmem>>, vector<1x128x128xbf16>
    %184 = vector.shape_cast %183 : vector<1x128x128xbf16> to vector<128x128xbf16>
    %cst_198 = arith.constant dense<0.000000e+00> : vector<16x128xf32>
    %185 = tpu.matmul %182, %184, %cst_198 {dimension_numbers = #tpu.dot_dimension_numbers<[1], [0], [0], [1], [0, 0, 1, 1], [], []>} : vector<16x128xbf16>, vector<128x128xbf16>, vector<16x128xf32> -> vector<16x128xf32>
    %186 = arith.addf %181, %185 : vector<16x128xf32>
    %c1_199 = arith.constant 1 : index
    %c16_200 = arith.constant 16 : index
    %187 = vector.load %arg9[%c1_199, %c16_200] : memref<18x144xbf16, #tpu.memory_space<vmem>>, vector<16x128xbf16>
    %c5_201 = arith.constant 5 : index
    %c0_202 = arith.constant 0 : index
    %c0_203 = arith.constant 0 : index
    %188 = vector.load %arg6[%c5_201, %c0_202, %c0_203] : memref<9x128x128xbf16, #tpu.memory_space<vmem>>, vector<1x128x128xbf16>
    %189 = vector.shape_cast %188 : vector<1x128x128xbf16> to vector<128x128xbf16>
    %cst_204 = arith.constant dense<0.000000e+00> : vector<16x128xf32>
    %190 = tpu.matmul %187, %189, %cst_204 {dimension_numbers = #tpu.dot_dimension_numbers<[1], [0], [0], [1], [0, 0, 1, 1], [], []>} : vector<16x128xbf16>, vector<128x128xbf16>, vector<16x128xf32> -> vector<16x128xf32>
    %191 = arith.addf %186, %190 : vector<16x128xf32>
    %c2_205 = arith.constant 2 : index
    %c0_206 = arith.constant 0 : index
    %192 = vector.load %arg9[%c2_205, %c0_206] : memref<18x144xbf16, #tpu.memory_space<vmem>>, vector<16x128xbf16>
    %c6_207 = arith.constant 6 : index
    %c0_208 = arith.constant 0 : index
    %c0_209 = arith.constant 0 : index
    %193 = vector.load %arg6[%c6_207, %c0_208, %c0_209] : memref<9x128x128xbf16, #tpu.memory_space<vmem>>, vector<1x128x128xbf16>
    %194 = vector.shape_cast %193 : vector<1x128x128xbf16> to vector<128x128xbf16>
    %cst_210 = arith.constant dense<0.000000e+00> : vector<16x128xf32>
    %195 = tpu.matmul %192, %194, %cst_210 {dimension_numbers = #tpu.dot_dimension_numbers<[1], [0], [0], [1], [0, 0, 1, 1], [], []>} : vector<16x128xbf16>, vector<128x128xbf16>, vector<16x128xf32> -> vector<16x128xf32>
    %196 = arith.addf %191, %195 : vector<16x128xf32>
    %c2_211 = arith.constant 2 : index
    %c8_212 = arith.constant 8 : index
    %197 = vector.load %arg9[%c2_211, %c8_212] : memref<18x144xbf16, #tpu.memory_space<vmem>>, vector<16x128xbf16>
    %c7_213 = arith.constant 7 : index
    %c0_214 = arith.constant 0 : index
    %c0_215 = arith.constant 0 : index
    %198 = vector.load %arg6[%c7_213, %c0_214, %c0_215] : memref<9x128x128xbf16, #tpu.memory_space<vmem>>, vector<1x128x128xbf16>
    %199 = vector.shape_cast %198 : vector<1x128x128xbf16> to vector<128x128xbf16>
    %cst_216 = arith.constant dense<0.000000e+00> : vector<16x128xf32>
    %200 = tpu.matmul %197, %199, %cst_216 {dimension_numbers = #tpu.dot_dimension_numbers<[1], [0], [0], [1], [0, 0, 1, 1], [], []>} : vector<16x128xbf16>, vector<128x128xbf16>, vector<16x128xf32> -> vector<16x128xf32>
    %201 = arith.addf %196, %200 : vector<16x128xf32>
    %c2_217 = arith.constant 2 : index
    %c16_218 = arith.constant 16 : index
    %202 = vector.load %arg9[%c2_217, %c16_218] : memref<18x144xbf16, #tpu.memory_space<vmem>>, vector<16x128xbf16>
    %c8_219 = arith.constant 8 : index
    %c0_220 = arith.constant 0 : index
    %c0_221 = arith.constant 0 : index
    %203 = vector.load %arg6[%c8_219, %c0_220, %c0_221] : memref<9x128x128xbf16, #tpu.memory_space<vmem>>, vector<1x128x128xbf16>
    %204 = vector.shape_cast %203 : vector<1x128x128xbf16> to vector<128x128xbf16>
    %cst_222 = arith.constant dense<0.000000e+00> : vector<16x128xf32>
    %205 = tpu.matmul %202, %204, %cst_222 {dimension_numbers = #tpu.dot_dimension_numbers<[1], [0], [0], [1], [0, 0, 1, 1], [], []>} : vector<16x128xbf16>, vector<128x128xbf16>, vector<16x128xf32> -> vector<16x128xf32>
    %206 = arith.addf %201, %205 : vector<16x128xf32>
    %207 = arith.addf %206, %15 : vector<16x128xf32>
    %cst_223 = arith.constant 0.000000e+00 : f32
    %208 = vector.broadcast %cst_223 : f32 to vector<16x128xf32>
    %209 = arith.maximumf %207, %208 : vector<16x128xf32>
    %210 = arith.addf %161, %209 : vector<16x128xf32>
    %211 = arith.truncf %210 : vector<16x128xf32> to vector<16x128xbf16>
    %c1_224 = arith.constant 1 : index
    %c8_225 = arith.constant 8 : index
    %212 = vector.load %arg9[%c1_224, %c8_225] : memref<18x144xbf16, #tpu.memory_space<vmem>>, vector<16x128xbf16>
    tpu.vector_store %arg9[%c1_224, %c8_225], %211 {strides = array<i32>} : memref<18x144xbf16, #tpu.memory_space<vmem>>, vector<16x128xbf16>,
    %c4_226 = arith.constant 4 : index
    %c0_227 = arith.constant 0 : index
    %c0_228 = arith.constant 0 : index
    %213 = vector.load %arg6[%c4_226, %c0_227, %c0_228] : memref<9x128x128xbf16, #tpu.memory_space<vmem>>, vector<1x128x128xbf16>
    %214 = vector.shape_cast %213 : vector<1x128x128xbf16> to vector<128x128xbf16>
    %cst_229 = arith.constant dense<0.000000e+00> : vector<16x128xf32>
    %215 = tpu.matmul %211, %214, %cst_229 {dimension_numbers = #tpu.dot_dimension_numbers<[1], [0], [0], [1], [0, 0, 1, 1], [], []>} : vector<16x128xbf16>, vector<128x128xbf16>, vector<16x128xf32> -> vector<16x128xf32>
    %c0_230 = arith.constant 0 : index
    %c0_231 = arith.constant 0 : index
    %216 = vector.load %arg9[%c0_230, %c0_231] : memref<18x144xbf16, #tpu.memory_space<vmem>>, vector<16x128xbf16>
    %c0_232 = arith.constant 0 : index
    %c0_233 = arith.constant 0 : index
    %c0_234 = arith.constant 0 : index
    %217 = vector.load %arg6[%c0_232, %c0_233, %c0_234] : memref<9x128x128xbf16, #tpu.memory_space<vmem>>, vector<1x128x128xbf16>
    %218 = vector.shape_cast %217 : vector<1x128x128xbf16> to vector<128x128xbf16>
    %cst_235 = arith.constant dense<0.000000e+00> : vector<16x128xf32>
    %219 = tpu.matmul %216, %218, %cst_235 {dimension_numbers = #tpu.dot_dimension_numbers<[1], [0], [0], [1], [0, 0, 1, 1], [], []>} : vector<16x128xbf16>, vector<128x128xbf16>, vector<16x128xf32> -> vector<16x128xf32>
    %220 = arith.addf %215, %219 : vector<16x128xf32>
    %c0_236 = arith.constant 0 : index
    %c8_237 = arith.constant 8 : index
    %221 = vector.load %arg9[%c0_236, %c8_237] : memref<18x144xbf16, #tpu.memory_space<vmem>>, vector<16x128xbf16>
    %c1_238 = arith.constant 1 : index
    %c0_239 = arith.constant 0 : index
    %c0_240 = arith.constant 0 : index
    %222 = vector.load %arg6[%c1_238, %c0_239, %c0_240] : memref<9x128x128xbf16, #tpu.memory_space<vmem>>, vector<1x128x128xbf16>
    %223 = vector.shape_cast %222 : vector<1x128x128xbf16> to vector<128x128xbf16>
    %cst_241 = arith.constant dense<0.000000e+00> : vector<16x128xf32>
    %224 = tpu.matmul %221, %223, %cst_241 {dimension_numbers = #tpu.dot_dimension_numbers<[1], [0], [0], [1], [0, 0, 1, 1], [], []>} : vector<16x128xbf16>, vector<128x128xbf16>, vector<16x128xf32> -> vector<16x128xf32>
    %225 = arith.addf %220, %224 : vector<16x128xf32>
    %c0_242 = arith.constant 0 : index
    %c16_243 = arith.constant 16 : index
    %226 = vector.load %arg9[%c0_242, %c16_243] : memref<18x144xbf16, #tpu.memory_space<vmem>>, vector<16x128xbf16>
    %c2_244 = arith.constant 2 : index
    %c0_245 = arith.constant 0 : index
    %c0_246 = arith.constant 0 : index
    %227 = vector.load %arg6[%c2_244, %c0_245, %c0_246] : memref<9x128x128xbf16, #tpu.memory_space<vmem>>, vector<1x128x128xbf16>
    %228 = vector.shape_cast %227 : vector<1x128x128xbf16> to vector<128x128xbf16>
    %cst_247 = arith.constant dense<0.000000e+00> : vector<16x128xf32>
    %229 = tpu.matmul %226, %228, %cst_247 {dimension_numbers = #tpu.dot_dimension_numbers<[1], [0], [0], [1], [0, 0, 1, 1], [], []>} : vector<16x128xbf16>, vector<128x128xbf16>, vector<16x128xf32> -> vector<16x128xf32>
    %230 = arith.addf %225, %229 : vector<16x128xf32>
    %c1_248 = arith.constant 1 : index
    %c0_249 = arith.constant 0 : index
    %231 = vector.load %arg9[%c1_248, %c0_249] : memref<18x144xbf16, #tpu.memory_space<vmem>>, vector<16x128xbf16>
    %c3_250 = arith.constant 3 : index
    %c0_251 = arith.constant 0 : index
    %c0_252 = arith.constant 0 : index
    %232 = vector.load %arg6[%c3_250, %c0_251, %c0_252] : memref<9x128x128xbf16, #tpu.memory_space<vmem>>, vector<1x128x128xbf16>
    %233 = vector.shape_cast %232 : vector<1x128x128xbf16> to vector<128x128xbf16>
    %cst_253 = arith.constant dense<0.000000e+00> : vector<16x128xf32>
    %234 = tpu.matmul %231, %233, %cst_253 {dimension_numbers = #tpu.dot_dimension_numbers<[1], [0], [0], [1], [0, 0, 1, 1], [], []>} : vector<16x128xbf16>, vector<128x128xbf16>, vector<16x128xf32> -> vector<16x128xf32>
    %235 = arith.addf %230, %234 : vector<16x128xf32>
    %c1_254 = arith.constant 1 : index
    %c16_255 = arith.constant 16 : index
    %236 = vector.load %arg9[%c1_254, %c16_255] : memref<18x144xbf16, #tpu.memory_space<vmem>>, vector<16x128xbf16>
    %c5_256 = arith.constant 5 : index
    %c0_257 = arith.constant 0 : index
    %c0_258 = arith.constant 0 : index
    %237 = vector.load %arg6[%c5_256, %c0_257, %c0_258] : memref<9x128x128xbf16, #tpu.memory_space<vmem>>, vector<1x128x128xbf16>
    %238 = vector.shape_cast %237 : vector<1x128x128xbf16> to vector<128x128xbf16>
    %cst_259 = arith.constant dense<0.000000e+00> : vector<16x128xf32>
    %239 = tpu.matmul %236, %238, %cst_259 {dimension_numbers = #tpu.dot_dimension_numbers<[1], [0], [0], [1], [0, 0, 1, 1], [], []>} : vector<16x128xbf16>, vector<128x128xbf16>, vector<16x128xf32> -> vector<16x128xf32>
    %240 = arith.addf %235, %239 : vector<16x128xf32>
    %c2_260 = arith.constant 2 : index
    %c0_261 = arith.constant 0 : index
    %241 = vector.load %arg9[%c2_260, %c0_261] : memref<18x144xbf16, #tpu.memory_space<vmem>>, vector<16x128xbf16>
    %c6_262 = arith.constant 6 : index
    %c0_263 = arith.constant 0 : index
    %c0_264 = arith.constant 0 : index
    %242 = vector.load %arg6[%c6_262, %c0_263, %c0_264] : memref<9x128x128xbf16, #tpu.memory_space<vmem>>, vector<1x128x128xbf16>
    %243 = vector.shape_cast %242 : vector<1x128x128xbf16> to vector<128x128xbf16>
    %cst_265 = arith.constant dense<0.000000e+00> : vector<16x128xf32>
    %244 = tpu.matmul %241, %243, %cst_265 {dimension_numbers = #tpu.dot_dimension_numbers<[1], [0], [0], [1], [0, 0, 1, 1], [], []>} : vector<16x128xbf16>, vector<128x128xbf16>, vector<16x128xf32> -> vector<16x128xf32>
    %245 = arith.addf %240, %244 : vector<16x128xf32>
    %c2_266 = arith.constant 2 : index
    %c8_267 = arith.constant 8 : index
    %246 = vector.load %arg9[%c2_266, %c8_267] : memref<18x144xbf16, #tpu.memory_space<vmem>>, vector<16x128xbf16>
    %c7_268 = arith.constant 7 : index
    %c0_269 = arith.constant 0 : index
    %c0_270 = arith.constant 0 : index
    %247 = vector.load %arg6[%c7_268, %c0_269, %c0_270] : memref<9x128x128xbf16, #tpu.memory_space<vmem>>, vector<1x128x128xbf16>
    %248 = vector.shape_cast %247 : vector<1x128x128xbf16> to vector<128x128xbf16>
    %cst_271 = arith.constant dense<0.000000e+00> : vector<16x128xf32>
    %249 = tpu.matmul %246, %248, %cst_271 {dimension_numbers = #tpu.dot_dimension_numbers<[1], [0], [0], [1], [0, 0, 1, 1], [], []>} : vector<16x128xbf16>, vector<128x128xbf16>, vector<16x128xf32> -> vector<16x128xf32>
    %250 = arith.addf %245, %249 : vector<16x128xf32>
    %c2_272 = arith.constant 2 : index
    %c16_273 = arith.constant 16 : index
    %251 = vector.load %arg9[%c2_272, %c16_273] : memref<18x144xbf16, #tpu.memory_space<vmem>>, vector<16x128xbf16>
    %c8_274 = arith.constant 8 : index
    %c0_275 = arith.constant 0 : index
    %c0_276 = arith.constant 0 : index
    %252 = vector.load %arg6[%c8_274, %c0_275, %c0_276] : memref<9x128x128xbf16, #tpu.memory_space<vmem>>, vector<1x128x128xbf16>
    %253 = vector.shape_cast %252 : vector<1x128x128xbf16> to vector<128x128xbf16>
    %cst_277 = arith.constant dense<0.000000e+00> : vector<16x128xf32>
    %254 = tpu.matmul %251, %253, %cst_277 {dimension_numbers = #tpu.dot_dimension_numbers<[1], [0], [0], [1], [0, 0, 1, 1], [], []>} : vector<16x128xbf16>, vector<128x128xbf16>, vector<16x128xf32> -> vector<16x128xf32>
    %255 = arith.addf %250, %254 : vector<16x128xf32>
    %256 = arith.addf %255, %15 : vector<16x128xf32>
    %cst_278 = arith.constant 0.000000e+00 : f32
    %257 = vector.broadcast %cst_278 : f32 to vector<16x128xf32>
    %258 = arith.maximumf %256, %257 : vector<16x128xf32>
    %259 = arith.addf %161, %258 : vector<16x128xf32>
    %260 = arith.truncf %259 : vector<16x128xf32> to vector<16x128xbf16>
    %c1_279 = arith.constant 1 : index
    %c8_280 = arith.constant 8 : index
    %261 = vector.load %arg9[%c1_279, %c8_280] : memref<18x144xbf16, #tpu.memory_space<vmem>>, vector<16x128xbf16>
    tpu.vector_store %arg9[%c1_279, %c8_280], %260 {strides = array<i32>} : memref<18x144xbf16, #tpu.memory_space<vmem>>, vector<16x128xbf16>,
    %c4_281 = arith.constant 4 : index
    %c0_282 = arith.constant 0 : index
    %c0_283 = arith.constant 0 : index
    %262 = vector.load %arg6[%c4_281, %c0_282, %c0_283] : memref<9x128x128xbf16, #tpu.memory_space<vmem>>, vector<1x128x128xbf16>
    %263 = vector.shape_cast %262 : vector<1x128x128xbf16> to vector<128x128xbf16>
    %cst_284 = arith.constant dense<0.000000e+00> : vector<16x128xf32>
    %264 = tpu.matmul %260, %263, %cst_284 {dimension_numbers = #tpu.dot_dimension_numbers<[1], [0], [0], [1], [0, 0, 1, 1], [], []>} : vector<16x128xbf16>, vector<128x128xbf16>, vector<16x128xf32> -> vector<16x128xf32>
    %c0_285 = arith.constant 0 : index
    %c0_286 = arith.constant 0 : index
    %265 = vector.load %arg9[%c0_285, %c0_286] : memref<18x144xbf16, #tpu.memory_space<vmem>>, vector<16x128xbf16>
    %c0_287 = arith.constant 0 : index
    %c0_288 = arith.constant 0 : index
    %c0_289 = arith.constant 0 : index
    %266 = vector.load %arg6[%c0_287, %c0_288, %c0_289] : memref<9x128x128xbf16, #tpu.memory_space<vmem>>, vector<1x128x128xbf16>
    %267 = vector.shape_cast %266 : vector<1x128x128xbf16> to vector<128x128xbf16>
    %cst_290 = arith.constant dense<0.000000e+00> : vector<16x128xf32>
    %268 = tpu.matmul %265, %267, %cst_290 {dimension_numbers = #tpu.dot_dimension_numbers<[1], [0], [0], [1], [0, 0, 1, 1], [], []>} : vector<16x128xbf16>, vector<128x128xbf16>, vector<16x128xf32> -> vector<16x128xf32>
    %269 = arith.addf %264, %268 : vector<16x128xf32>
    %c0_291 = arith.constant 0 : index
    %c8_292 = arith.constant 8 : index
    %270 = vector.load %arg9[%c0_291, %c8_292] : memref<18x144xbf16, #tpu.memory_space<vmem>>, vector<16x128xbf16>
    %c1_293 = arith.constant 1 : index
    %c0_294 = arith.constant 0 : index
    %c0_295 = arith.constant 0 : index
    %271 = vector.load %arg6[%c1_293, %c0_294, %c0_295] : memref<9x128x128xbf16, #tpu.memory_space<vmem>>, vector<1x128x128xbf16>
    %272 = vector.shape_cast %271 : vector<1x128x128xbf16> to vector<128x128xbf16>
    %cst_296 = arith.constant dense<0.000000e+00> : vector<16x128xf32>
    %273 = tpu.matmul %270, %272, %cst_296 {dimension_numbers = #tpu.dot_dimension_numbers<[1], [0], [0], [1], [0, 0, 1, 1], [], []>} : vector<16x128xbf16>, vector<128x128xbf16>, vector<16x128xf32> -> vector<16x128xf32>
    %274 = arith.addf %269, %273 : vector<16x128xf32>
    %c0_297 = arith.constant 0 : index
    %c16_298 = arith.constant 16 : index
    %275 = vector.load %arg9[%c0_297, %c16_298] : memref<18x144xbf16, #tpu.memory_space<vmem>>, vector<16x128xbf16>
    %c2_299 = arith.constant 2 : index
    %c0_300 = arith.constant 0 : index
    %c0_301 = arith.constant 0 : index
    %276 = vector.load %arg6[%c2_299, %c0_300, %c0_301] : memref<9x128x128xbf16, #tpu.memory_space<vmem>>, vector<1x128x128xbf16>
    %277 = vector.shape_cast %276 : vector<1x128x128xbf16> to vector<128x128xbf16>
    %cst_302 = arith.constant dense<0.000000e+00> : vector<16x128xf32>
    %278 = tpu.matmul %275, %277, %cst_302 {dimension_numbers = #tpu.dot_dimension_numbers<[1], [0], [0], [1], [0, 0, 1, 1], [], []>} : vector<16x128xbf16>, vector<128x128xbf16>, vector<16x128xf32> -> vector<16x128xf32>
    %279 = arith.addf %274, %278 : vector<16x128xf32>
    %c1_303 = arith.constant 1 : index
    %c0_304 = arith.constant 0 : index
    %280 = vector.load %arg9[%c1_303, %c0_304] : memref<18x144xbf16, #tpu.memory_space<vmem>>, vector<16x128xbf16>
    %c3_305 = arith.constant 3 : index
    %c0_306 = arith.constant 0 : index
    %c0_307 = arith.constant 0 : index
    %281 = vector.load %arg6[%c3_305, %c0_306, %c0_307] : memref<9x128x128xbf16, #tpu.memory_space<vmem>>, vector<1x128x128xbf16>
    %282 = vector.shape_cast %281 : vector<1x128x128xbf16> to vector<128x128xbf16>
    %cst_308 = arith.constant dense<0.000000e+00> : vector<16x128xf32>
    %283 = tpu.matmul %280, %282, %cst_308 {dimension_numbers = #tpu.dot_dimension_numbers<[1], [0], [0], [1], [0, 0, 1, 1], [], []>} : vector<16x128xbf16>, vector<128x128xbf16>, vector<16x128xf32> -> vector<16x128xf32>
    %284 = arith.addf %279, %283 : vector<16x128xf32>
    %c1_309 = arith.constant 1 : index
    %c16_310 = arith.constant 16 : index
    %285 = vector.load %arg9[%c1_309, %c16_310] : memref<18x144xbf16, #tpu.memory_space<vmem>>, vector<16x128xbf16>
    %c5_311 = arith.constant 5 : index
    %c0_312 = arith.constant 0 : index
    %c0_313 = arith.constant 0 : index
    %286 = vector.load %arg6[%c5_311, %c0_312, %c0_313] : memref<9x128x128xbf16, #tpu.memory_space<vmem>>, vector<1x128x128xbf16>
    %287 = vector.shape_cast %286 : vector<1x128x128xbf16> to vector<128x128xbf16>
    %cst_314 = arith.constant dense<0.000000e+00> : vector<16x128xf32>
    %288 = tpu.matmul %285, %287, %cst_314 {dimension_numbers = #tpu.dot_dimension_numbers<[1], [0], [0], [1], [0, 0, 1, 1], [], []>} : vector<16x128xbf16>, vector<128x128xbf16>, vector<16x128xf32> -> vector<16x128xf32>
    %289 = arith.addf %284, %288 : vector<16x128xf32>
    %c2_315 = arith.constant 2 : index
    %c0_316 = arith.constant 0 : index
    %290 = vector.load %arg9[%c2_315, %c0_316] : memref<18x144xbf16, #tpu.memory_space<vmem>>, vector<16x128xbf16>
    %c6_317 = arith.constant 6 : index
    %c0_318 = arith.constant 0 : index
    %c0_319 = arith.constant 0 : index
    %291 = vector.load %arg6[%c6_317, %c0_318, %c0_319] : memref<9x128x128xbf16, #tpu.memory_space<vmem>>, vector<1x128x128xbf16>
    %292 = vector.shape_cast %291 : vector<1x128x128xbf16> to vector<128x128xbf16>
    %cst_320 = arith.constant dense<0.000000e+00> : vector<16x128xf32>
    %293 = tpu.matmul %290, %292, %cst_320 {dimension_numbers = #tpu.dot_dimension_numbers<[1], [0], [0], [1], [0, 0, 1, 1], [], []>} : vector<16x128xbf16>, vector<128x128xbf16>, vector<16x128xf32> -> vector<16x128xf32>
    %294 = arith.addf %289, %293 : vector<16x128xf32>
    %c2_321 = arith.constant 2 : index
    %c8_322 = arith.constant 8 : index
    %295 = vector.load %arg9[%c2_321, %c8_322] : memref<18x144xbf16, #tpu.memory_space<vmem>>, vector<16x128xbf16>
    %c7_323 = arith.constant 7 : index
    %c0_324 = arith.constant 0 : index
    %c0_325 = arith.constant 0 : index
    %296 = vector.load %arg6[%c7_323, %c0_324, %c0_325] : memref<9x128x128xbf16, #tpu.memory_space<vmem>>, vector<1x128x128xbf16>
    %297 = vector.shape_cast %296 : vector<1x128x128xbf16> to vector<128x128xbf16>
    %cst_326 = arith.constant dense<0.000000e+00> : vector<16x128xf32>
    %298 = tpu.matmul %295, %297, %cst_326 {dimension_numbers = #tpu.dot_dimension_numbers<[1], [0], [0], [1], [0, 0, 1, 1], [], []>} : vector<16x128xbf16>, vector<128x128xbf16>, vector<16x128xf32> -> vector<16x128xf32>
    %299 = arith.addf %294, %298 : vector<16x128xf32>
    %c2_327 = arith.constant 2 : index
    %c16_328 = arith.constant 16 : index
    %300 = vector.load %arg9[%c2_327, %c16_328] : memref<18x144xbf16, #tpu.memory_space<vmem>>, vector<16x128xbf16>
    %c8_329 = arith.constant 8 : index
    %c0_330 = arith.constant 0 : index
    %c0_331 = arith.constant 0 : index
    %301 = vector.load %arg6[%c8_329, %c0_330, %c0_331] : memref<9x128x128xbf16, #tpu.memory_space<vmem>>, vector<1x128x128xbf16>
    %302 = vector.shape_cast %301 : vector<1x128x128xbf16> to vector<128x128xbf16>
    %cst_332 = arith.constant dense<0.000000e+00> : vector<16x128xf32>
    %303 = tpu.matmul %300, %302, %cst_332 {dimension_numbers = #tpu.dot_dimension_numbers<[1], [0], [0], [1], [0, 0, 1, 1], [], []>} : vector<16x128xbf16>, vector<128x128xbf16>, vector<16x128xf32> -> vector<16x128xf32>
    %304 = arith.addf %299, %303 : vector<16x128xf32>
    %305 = arith.addf %304, %15 : vector<16x128xf32>
    %cst_333 = arith.constant 0.000000e+00 : f32
    %306 = vector.broadcast %cst_333 : f32 to vector<16x128xf32>
    %307 = arith.maximumf %305, %306 : vector<16x128xf32>
    %308 = arith.addf %9, %307 : vector<16x128xf32>
    %c0_334 = arith.constant 0 : index
    %c0_335 = arith.constant 0 : index
    %c0_336 = arith.constant 0 : index
    %309 = vector.load %arg8[%c0_334, %c0_335, %c0_336] : memref<1x16x128xf32, #tpu.memory_space<vmem>>, vector<1x16x128xf32>
    %310 = vector.shape_cast %309 : vector<1x16x128xf32> to vector<16x128xf32>
    %311 = vector.shape_cast %308 : vector<16x128xf32> to vector<1x16x128xf32>
    tpu.vector_store %arg8[%c0_334, %c0_335, %c0_336], %311 {strides = array<i32>} : memref<1x16x128xf32, #tpu.memory_space<vmem>>, vector<1x16x128xf32>,
    return
  }
  func.func @transform_0(%arg0: i32) -> (i32, i32, i32) {
    %c0_i32 = arith.constant 0 : i32
    %c0_i32_0 = arith.constant 0 : i32
    %c0_i32_1 = arith.constant 0 : i32
    return %arg0, %c0_i32, %c0_i32_0 : i32, i32, i32
  }
  func.func @transform_1(%arg0: i32) -> (i32, i32) {
    %c0_i32 = arith.constant 0 : i32
    %c0_i32_0 = arith.constant 0 : i32
    %c0_i32_1 = arith.constant 0 : i32
    return %c0_i32, %c0_i32_0 : i32, i32
  }
  func.func @transform_2(%arg0: i32) -> (i32, i32) {
    %c0_i32 = arith.constant 0 : i32
    %c0_i32_0 = arith.constant 0 : i32
    %c0_i32_1 = arith.constant 0 : i32
    return %c0_i32, %c0_i32_0 : i32, i32
  }
  func.func @transform_3(%arg0: i32) -> (i32, i32, i32) {
    %c0_i32 = arith.constant 0 : i32
    %c0_i32_0 = arith.constant 0 : i32
    %c0_i32_1 = arith.constant 0 : i32
    %c0_i32_2 = arith.constant 0 : i32
    return %c0_i32, %c0_i32_0, %c0_i32_1 : i32, i32, i32
  }
  func.func @transform_4(%arg0: i32) -> (i32, i32) {
    %c0_i32 = arith.constant 0 : i32
    %c0_i32_0 = arith.constant 0 : i32
    %c0_i32_1 = arith.constant 0 : i32
    return %c0_i32, %c0_i32_0 : i32, i32
  }
  func.func @transform_5(%arg0: i32) -> (i32, i32, i32) {
    %c0_i32 = arith.constant 0 : i32
    %c0_i32_0 = arith.constant 0 : i32
    %c0_i32_1 = arith.constant 0 : i32
    %c0_i32_2 = arith.constant 0 : i32
    return %c0_i32, %c0_i32_0, %c0_i32_1 : i32, i32, i32
  }
  func.func @transform_6(%arg0: i32) -> (i32, i32) {
    %c0_i32 = arith.constant 0 : i32
    %c0_i32_0 = arith.constant 0 : i32
    %c0_i32_1 = arith.constant 0 : i32
    return %c0_i32, %c0_i32_0 : i32, i32
  }
  func.func @transform_7(%arg0: i32) -> (i32, i32, i32) {
    %c0_i32 = arith.constant 0 : i32
    %c0_i32_0 = arith.constant 0 : i32
    %c0_i32_1 = arith.constant 0 : i32
    return %arg0, %c0_i32, %c0_i32_0 : i32, i32, i32
  }
}

</mosaic_0001>

<bundles_post_ra>
// kernel: rrcnn_forward.1
= control target key start
LH: loop header
LB: loop body
LE: loop exit
PB: predicated region body
PF: predicated region fallthrough
CT: control target
= control target key end

     0   :  { %12 = vsyncpa [#allocation4], 0  ;;  %s11192_s0 = inlined_call_operand.vmem [shape: f32[2,16,64], index: 0, kind: input, shape index: {}]   ;;  %s11193_s1 = inlined_call_operand.vmem [shape: bf16[64,128], index: 1, kind: input, shape index: {}]   ;;  %s11194_s2 = inlined_call_operand.vmem [shape: f32[1,128], index: 2, kind: input, shape index: {}]   ;;  %s11195_s3 = inlined_call_operand.hbm [shape: bf16[9,128,128], index: 3, kind: input, shape index: {}]   ;;  %s11196_s4 = inlined_call_operand.vmem [shape: f32[1,128], index: 4, kind: input, shape index: {}]   ;;  %s11197_s5 = inlined_call_operand.hbm [shape: bf16[9,128,128], index: 5, kind: input, shape index: {}]   ;;  %s11198_s6 = inlined_call_operand.vmem [shape: f32[1,128], index: 6, kind: input, shape index: {}]   ;;  %s11199_s7 = inlined_call_operand.vmem [shape: f32[2,16,128], index: 7, kind: output, shape index: {}]  }
   0x1   :  { %13 = vsyncpa [#allocation6], 0  ;;  %s10161_s24 = smov 0  }
   0x2 LB: > { %s10167_s25 = sadd.s32 4294967295, %s10109_s24   ;;  %p7386_p0 = scmp.ge.s32.totalorder %s10109_s24, 1  ;;  %s10109_s24 = sphi %s10161_s24, %s19_s24  }
   0x3   : > { %p202_p1 = scmp.lt.s32.totalorder %s10109_s24, 3  ;;  %s10111_s26 = smov [#allocation3]  }
   0x4   : > { %s220_s27 = sshll.u32 %s10111_s26, 4  ;;  %p9535_p3 = scmp.eq.s32.totalorder %s10167_s25, 0  ;;  %s221_s27 = int_to_ptr.vmem [resolvable:$true] %s220_s27 }
   0x5   : > { %p10171_p2 = pnand %p7386_p0, %p202_p1  ;;  %s10112_s29 = smov [#allocation5]  }
   0x6   : > { %s236_s30 = sshll.u32 %s10112_s29, 4  ;;  %s10054_s9 = scalar_lea.vmem %s221_s27, 9216  ;;  %s237_s30 = int_to_ptr.vmem [resolvable:$true] %s236_s30 }
   0x7   : > { %p9528_p4 = pneg %p10171_p2  ;;  %p10055_p7 = scmp.ne.s32.totalorder %s221_s27, %s10054_s9 }
   0x8   : > { %p10062_p10 = scmp.lt.s32.totalorder %s221_s27, %s221_s27  ;;  %p10063_p11 = scmp.lt.s32.totalorder %s10054_s9, %s10054_s9 }
   0x9   : > { %p10180_p5 = pnand %p9535_p3, %p9528_p4 }
   0xa   : > { %p10064_p12 = por %p10063_p11, %p10062_p10 }
   0xb   : > { %p10045_p6 = pneg %p10180_p5 }
   0xd   : > { %p10057_p8 = pnand %p10055_p7, %p10045_p6 }
   0xf   : > { %p10058_p9 = pneg %p10057_p8 }
  0x11   : > { %p10065_p13 = pnand %p10064_p12, %p10058_p9 }
  0x13   : > { %10068 = shalt.err (!%p10065_p13)
}
  0x14   : > { %s10113_s10 = smov 64   ;;  %s10114_s11 = smov 4  }
  0x15   : > { %9531 = dma.hbm_to_vmem [thread:$0]  (!%p10180_p5), %s11195_s3, 9216, %s221_s27, [#allocation4], %s10113_s10, %s10113_s10, %s10114_s11  }
  0x16   : > { %s10080_s14 = scalar_lea.vmem %s237_s30, 9216  ;;  %p10088_p7 = scmp.lt.s32.totalorder %s237_s30, %s237_s30 }
  0x17   : > { %p10081_p0 = scmp.ne.s32.totalorder %s237_s30, %s10080_s14  ;;  %p10089_p8 = scmp.lt.s32.totalorder %s10080_s14, %s10080_s14 }
  0x19   : > { %p10083_p1 = pnand %p10081_p0, %p10045_p6  ;;  %p10090_p10 = por %p10089_p8, %p10088_p7 }
  0x1b   : > { %p10084_p4 = pneg %p10083_p1 }
  0x1d   : > { %p10091_p9 = pnand %p10090_p10, %p10084_p4 }
  0x1f   : > { %10094 = shalt.err (!%p10091_p9)
}
  0x20   : > { %9534 = dma.hbm_to_vmem [thread:$0]  (!%p10180_p5), %s11197_s5, 9216, %s237_s30, [#allocation6], %s10113_s10, %s10113_s10, %s10114_s11  }
  0x21   : > { %263 = sbr.rel (%p10171_p2) target bundleno = 3581 (0xdfd), region = 48 }
  0x26   : > { %10100 = dma.done.wait (%p9535_p3), [#allocation4], 9216  }
  0x27   : > { %10102 = vsyncadd (%p9535_p3), [#allocation4], 4294958080 }
  0x28   : > { %10104 = dma.done.wait (%p9535_p3), [#allocation6], 9216  }
  0x29   : > { %10106 = vsyncadd (%p9535_p3), [#allocation6], 4294958080  ;;  %v10115_v0 = vmov 0.0   ;;  %vm10116_vm0 = vmmov 0   ;;  %p299_p2 = scmp.lt.s32.totalorder %s10167_s25, 1  ;;  %v9557_v1 = vld [vmem:[%s11193_s1 + $0x18] sm:$0xff]  }
  0x2a   : > { %8428 = vmatprep.subr.bf16.mxu0 %v10115_v0  ;;  %8436 = vmatprep.mubr.msk.bf16.mxu0 %vm10116_vm0, %v10115_v0  ;;  %v9558_v2 = vld [vmem:[%s11193_s1 + $0x10] sm:$0xff]   ;;  %v9559_v3 = vld [vmem:[%s11193_s1 + $0x8] sm:$0xff]   ;;  %v9560_v4 = vld [vmem:[%s11193_s1] sm:$0xff]   ;;  %vm361_vm1 = vcmask 523264   ;;  %vm310_vm2 = vcmask 1043456   ;;  %vm311_vm3 = vcmask 130052  }
  0x2b   : > { %8440 = vmatprep.subr.bf16.mxu1 %v10115_v0  ;;  %8456 = vmatprep.mubr.msk.bf16.mxu1 %vm10116_vm0, %v10115_v0  ;;  %s11211_s25 = smov (!%p299_p2, %s10167_s25), 1  ;;  %v9561_v7 = vld [vmem:[#allocation3 + $0x138] sm:$0xff]   ;;  %v9562_v9 = vld [vmem:[#allocation3 + $0x130] sm:$0xff]   ;;  %v9563_v10 = vld [vmem:[#allocation3 + $0x128] sm:$0xff]   ;;  %v10117_v18 = vmov 0   ;;  %vm315_vm5 = vcmask 1040384  }
  0x2c   : > { %8429 = vmatpush3.bf16.msra.mxu0 %v9557_v1  ;;  %s7923_s21 = sshll.u32 %s11211_s25, 4  ;;  %v9564_v11 = vld [vmem:[#allocation3 + $0x120] sm:$0xff]   ;;  %v9565_v12 = vld [vmem:[#allocation3 + $0x118] sm:$0xff]   ;;  %v9566_v13 = vld [vmem:[#allocation3 + $0x110] sm:$0xff]   ;;  %vm316_vm6 = vcmask 126980   ;;  %s10118_s10 = smov 8  }
  0x2d   : > { %8430 = vmatprep.subr.bf16.mxu0 %v10115_v0  ;;  %s303_s28 = scalar_lea.vmem %s11192_s0, %s7923_s21  ;;  %v9567_v14 = vld [vmem:[#allocation3 + $0x108] sm:$0xff]   ;;  %v9568_v15 = vld [vmem:[#allocation3 + $0x100] sm:$0xff]   ;;  %v9569_v16 = vld [vmem:[#allocation3 + $0x38] sm:$0xff]   ;;  %vm426_vm8 = vsmask.f32 256  ;;  %vm462_vm11 = vcmask 1043520   ;;  %s308_s26 = scalar_lea.vmem %s11199_s7, %s7923_s21 }
  0x2e   : > { %v319_v5 = vld [vmem:[%s303_s28] sm:$0xff]  ;;  %v320_v6 = vld [vmem:[%s303_s28 + $0x8] sm:$0xff]  ;;  %vm312_vm4 = vmor %vm311_vm3, %vm310_vm2  ;;  %8441 = vmatpush3.bf16.msra.mxu1 %v9569_v16  ;;  %vm427_vm9 = vsmask.f32 4368  ;;  %vm463_vm12 = vsmask.f32 7938 }
  0x2f   : > { %v321_v8 = vpack.c.bf16 %v320_v6, %v319_v5  ;;  %v9570_v17 = vld [vmem:[#allocation3 + $0x30] sm:$0xff]   ;;  %313 = vst.msk [vmem:[#allocation2] sm:$0xff] %vm312_vm4, %v10117_v18  ;;  %314 = vst.msk [vmem:[#allocation2 + $0x8] sm:$0xff] %vm312_vm4, %v10117_v18  ;;  %8442 = vmatprep.subr.bf16.mxu1 %v10115_v0  ;;  %v9571_v19 = vld [vmem:[#allocation3 + $0x28] sm:$0xff]   ;;  %vm465_vm13 = vcmask 64516   ;;  %vm476_vm15 = vcmask 1040448  }
  0x30   : > { %8431 = vmatpush3.bf16.msra.mxu0 %v9558_v2  ;;  %v9572_v20 = vld [vmem:[#allocation3 + $0x20] sm:$0xff]   ;;  %v7397_v21 = vld [vmem:[%s11194_s2] ss:$0 sm:$0xff]  ;;  %vm317_vm7 = vmor %vm316_vm6, %vm315_vm5  ;;  %vm466_vm14 = vsmask.f32 7954  ;;  %vm478_vm3 = vcmask 61444  }
  0x31   : > { %8432 = vmatprep.subr.bf16.mxu0 %v10115_v0  ;;  %318 = vst.msk [vmem:[#allocation2 + $0x10] sm:$0x11] %vm317_vm7, %v10117_v18  ;;  %v9573_v22 = vld [vmem:[#allocation3 + $0x18] sm:$0xff]   ;;  %v9574_v26 = vld [vmem:[#allocation3 + $0x10] sm:$0xff]   ;;  %v9575_v33 = vld [vmem:[#allocation3 + $0x8] sm:$0xff]   ;;  %vm455_vm6 = vcmask 64512  }
  0x32   : > { %8443 = vmatpush3.bf16.msra.mxu1 %v9570_v17  ;;  %v9576_v37 = vld [vmem:[#allocation3] sm:$0xff]   ;;  %vm10279_vm10 = vmor %vm426_vm8, %vm427_vm9  ;;  %v9584_v47 = vld [vmem:[#allocation3 + $0xb8] sm:$0xff]   ;;  %vm479_vm4 = vsmask.f32 4352  ;;  %s10119_s11 = smov 120   ;;  %s10120_s12 = smov 112  }
  0x33   : > { %8444 = vmatprep.subr.bf16.mxu1 %v10115_v0  ;;  %v9586_v48 = vld [vmem:[#allocation3 + $0xb0] sm:$0xff]   ;;  %v9588_v49 = vld [vmem:[#allocation3 + $0xa8] sm:$0xff]   ;;  %v9590_v50 = vld [vmem:[#allocation3 + $0xa0] sm:$0xff]  }
  0x34   : > { %8433 = vmatpush3.bf16.msra.mxu0 %v9559_v3  ;;  %v9592_v51 = vld [vmem:[#allocation3 + $0x98] sm:$0xff]   ;;  %v9594_v52 = vld [vmem:[#allocation3 + $0x90] sm:$0xff]   ;;  %v9596_v53 = vld [vmem:[#allocation3 + $0x88] sm:$0xff]  }
  0x35   : > { %8434 = vmatprep.subr.bf16.mxu0 %v10115_v0  ;;  %vm467_vm2 = vmand %vm465_vm13, %vm466_vm14  ;;  %v9597_v5 = vld [vmem:[#allocation3 + $0x80] sm:$0xff]   ;;  %vm735_vm14 = vcmask 982016   ;;  %v9992_v42 = vld [vmem:[#allocation5 + $0x98] sm:$0xff]  }
  0x36   : > { %8445 = vmatpush3.bf16.msra.mxu1 %v9571_v19  ;;  %vm477_vm5 = vmand %vm476_vm15, %vm426_vm8  ;;  %v469_v57 = vld [vmem:[#allocation2] sm:$0xff]  ;;  %vm850_vm15 = vcmask 916480   ;;  %v9982_v55 = vld [vmem:[#allocation5 + $0x78] sm:$0xff]  }
  0x37   : > { %8446 = vmatprep.subr.bf16.mxu1 %v10115_v0  ;;  %vm480_vm9 = vmand %vm478_vm3, %vm479_vm4 }
  0x38   : > { %8435 = vmatpush3.bf16.msra.mxu0 %v9560_v4  ;;  %v482_v63 = vld [vmem:[#allocation2 + $0x10] sm:$0x11]  ;;  %vm10314_vm8 = vmor %vm465_vm13, %vm462_vm11  ;;  %vm1252_vm13 = vcmask 1046528  }
  0x39   : > { %8460 = vmatprep.subr.bf16.mxu0 %v10115_v0 }
  0x3a   : > { %8447 = vmatpush3.bf16.msra.mxu1 %v9572_v20  ;;  %v9583_v20 = vld [vmem:[#allocation3 + $0x70] sm:$0xff]  }
  0x3b   : > { %8437 = vmatmul.mubr.msk.bf16.vlgmr.msra.gmra.mxu0 %vm361_vm1, %v321_v8  ;;  %8448 = vmatprep.subr.bf16.mxu1 %v10115_v0  ;;  %vm464_vm1 = vmand %vm462_vm11, %vm463_vm12  ;;  %v9582_v8 = vld [vmem:[#allocation3 + $0x78] sm:$0xff]   ;;  %vm972_vm11 = vsmask.f32 7424 }
  0x3c   : > { %8461 = vmatpush3.bf16.msra.mxu0 %v9561_v7  ;;  %8476 = vmatprep.mubr.msk.bf16.mxu0 %vm10116_vm0, %v10115_v0  ;;  %vm10298_vm7 = vmor %vm467_vm2, %vm464_vm1 }
  0x3d   : > { %8462 = vmatprep.subr.bf16.mxu0 %v10115_v0  ;;  %vm10308_vm12 = vmor %vm480_vm9, %vm477_vm5 }
  0x3e   : > { %8449 = vmatpush3.bf16.msra.mxu1 %v9573_v22 }
  0x3f   : > { %8450 = vmatprep.subr.bf16.mxu1 %v10115_v0 }
  0x40   : > { %8463 = vmatpush3.bf16.msra.mxu0 %v9562_v9 }
  0x41   : > { %8464 = vmatprep.subr.bf16.mxu0 %v10115_v0 }
  0x42   : > { %8451 = vmatpush3.bf16.msra.mxu1 %v9574_v26 }
  0x43   : > { %8452 = vmatprep.subr.bf16.mxu1 %v10115_v0 }
  0x44   : > { %8465 = vmatpush3.bf16.msra.mxu0 %v9563_v10 }
  0x45   : > { %8466 = vmatprep.subr.bf16.mxu0 %v10115_v0 }
  0x46   : > { %8453 = vmatpush3.bf16.msra.mxu1 %v9575_v33 }
  0x47   : > { %8454 = vmatprep.subr.bf16.mxu1 %v10115_v0 }
  0x48   : > { %8467 = vmatpush3.bf16.msra.mxu0 %v9564_v11 }
  0x49   : > { %8468 = vmatprep.subr.bf16.mxu0 %v10115_v0 }
  0x4a   : > { %8455 = vmatpush3.bf16.msra.mxu1 %v9576_v37 }
  0x4b   : > { %8480 = vmatprep.subr.bf16.mxu1 %v10115_v0 }
  0x4c   : > { %8469 = vmatpush3.bf16.msra.mxu0 %v9565_v12 }
  0x4d   : > { %8470 = vmatprep.subr.bf16.mxu0 %v10115_v0 }
  0x50   : > { %8471 = vmatpush3.bf16.msra.mxu0 %v9566_v13 }
  0x51   : > { %8472 = vmatprep.subr.bf16.mxu0 %v10115_v0 }
  0x54   : > { %8473 = vmatpush3.bf16.msra.mxu0 %v9567_v14 }
  0x55   : > { %8474 = vmatprep.subr.bf16.mxu0 %v10115_v0 }
  0x58   : > { %8475 = vmatpush3.bf16.msra.mxu0 %v9568_v15 }
  0x59   : > { %8500 = vmatprep.subr.bf16.mxu0 %v10115_v0 }
  0xfb   : > { %v399_v23 = vpop.f32.mrf.mxu0 }
  0xfc   : > { %v10261_v24 = vadd.f32 %v7397_v21, %v399_v23 }
  0xfd   : > { %v8438_v25 = vpop.f32.mrf.mxu0 }
  0xfe   : > { %v7925_v27 = vpack.c.bf16 %v10261_v24, %v10261_v24 }
  0xff   : > { %v402_v28 = vpop.f32.mrf.mxu0 }
 0x100   : > { %v10266_v29 = vadd.f32 %v7397_v21, %v402_v28  ;;  %v430_v30 = vshrl.u32 %v7925_v27, 16  ;;  %v433_v32 = vshll.u32 %v7925_v27, 16 }
 0x101   : > { %v8439_v31 = vpop.f32.mrf.mxu0 }
 0x102   : > { %v420_v34 = vpack.c.bf16 %v10266_v29, %v10261_v24  ;;  %v432_v35 = vrot.slane %v430_v30, 7  ;;  %v7926_v36 = vpack.c.bf16 %v10266_v29, %v10266_v29 }
 0x104   : > { %8477 = vmatmul.mubr.bf16.vlgmr.msra.gmra.mxu0 %v420_v34  ;;  %v435_v38 = vor.u32 %v433_v32, %v432_v35  ;;  %v438_v39 = vshrl.u32 %v7926_v36, 16  ;;  %v441_v41 = vshll.u32 %v7926_v36, 16  ;;  %v436_v43 = vrot.slane %v432_v35, 4  ;;  %v9585_v34 = vld [vmem:[#allocation3 + $0x68] sm:$0xff]  }
 0x105   : > { %8516 = vmatprep.mubr.msk.bf16.mxu0 %vm10116_vm0, %v10115_v0  ;;  %8501 = vmatpush3.bf16.msra.mxu0 %v9584_v47  ;;  %v9593_v47 = vld [vmem:[#allocation3 + $0x48] sm:$0xff]  }
 0x106   : > { %446 = vrot.lane.b32.xlu0 %v435_v38, %s10118_s10  ;;  %v440_v40 = vrot.slane %v438_v39, 7  ;;  %8502 = vmatprep.subr.bf16.mxu0 %v10115_v0 }
 0x108   : > { %v445_v44 = vrot.slane %v440_v40, 4  ;;  %v443_v45 = vor.u32 %v441_v41, %v440_v40  ;;  %v9587_v41 = vld [vmem:[#allocation3 + $0x60] sm:$0xff]  }
 0x109   : > { %8503 = vmatpush3.bf16.msra.mxu0 %v9586_v48  ;;  %v9595_v48 = vld [vmem:[#allocation3 + $0x40] sm:$0xff]  }
 0x10a   : > { %450 = vrot.lane.b32.xlu1 %v445_v44, %s10118_s10  ;;  %v444_v46 = vsel %vm10279_vm10, %v436_v43, %v443_v45  ;;  %8504 = vmatprep.subr.bf16.mxu0 %v10115_v0  ;;  %v9589_v45 = vld [vmem:[#allocation3 + $0x58] sm:$0xff]  }
 0x10b   : > { %448 = vrot.lane.b32.xlu0 %v444_v46, %s10118_s10  ;;  %v9591_v46 = vld [vmem:[#allocation3 + $0x50] sm:$0xff]  }
 0x10d   : > { %8505 = vmatpush3.bf16.msra.mxu0 %v9588_v49 }
 0x10e   : > { %8506 = vmatprep.subr.bf16.mxu0 %v10115_v0 }
 0x111   : > { %8507 = vmatpush3.bf16.msra.mxu0 %v9590_v50 }
 0x112   : > { %8508 = vmatprep.subr.bf16.mxu0 %v10115_v0 }
 0x115   : > { %8509 = vmatpush3.bf16.msra.mxu0 %v9592_v51 }
 0x116   : > { %8510 = vmatprep.subr.bf16.mxu0 %v10115_v0 }
 0x119   : > { %8511 = vmatpush3.bf16.msra.mxu0 %v9594_v52 }
 0x11a   : > { %8512 = vmatprep.subr.bf16.mxu0 %v10115_v0 }
 0x11d   : > { %8513 = vmatpush3.bf16.msra.mxu0 %v9596_v53  ;;  %v9598_v53 = vld [vmem:[#allocation3 + $0xf8] sm:$0xff]  }
 0x11e   : > { %8514 = vmatprep.subr.bf16.mxu0 %v10115_v0 }
 0x121   : > { %8515 = vmatpush3.bf16.msra.mxu0 %v9597_v5  ;;  %v9603_v5 = vld [vmem:[#allocation3 + $0xe0] sm:$0xff]  }
 0x122   : > { %8540 = vmatprep.subr.bf16.mxu0 %v10115_v0 }
 0x178   : > { %v447_v54 = vpop.permute.xlu0 %446 }
 0x179   : > { %v452_v56 = vrot.slane %v447_v54, 4 }
 0x17b   : > { %v456_v58 = vsel %vm455_vm6, %v452_v56, %v447_v54 }
 0x17c   : > { %v10305_v59 = vsel %vm10298_vm7, %v456_v58, %v469_v57  ;;  %v451_v60 = vpop.permute.xlu1 %450  ;;  %v9599_v58 = vld [vmem:[#allocation3 + $0xf0] sm:$0xff]  }
 0x17d   : > { %471 = vst [vmem:[#allocation2] sm:$0xff] %v10305_v59  ;;  %v454_v62 = vrot.slane %v451_v60, 4  ;;  %v449_v1 = vpop.permute.xlu0 %448 }
 0x17e   : > { %v453_v3 = vrot.slane %v449_v1, 4 }
 0x17f   : > { %v458_v4 = vsel %vm455_vm6, %v454_v62, %v451_v60  ;;  %v9600_v60 = vld [vmem:[#allocation3 + $0x178] sm:$0xff]  }
 0x180   : > { %v483_v6 = vsel %vm10308_vm12, %v458_v4, %v482_v63  ;;  %v457_v7 = vsel %vm455_vm6, %v453_v3, %v449_v1  ;;  %v9601_v3 = vld [vmem:[#allocation3 + $0xe8] sm:$0xff]   ;;  %v9602_v4 = vld [vmem:[#allocation3 + $0x170] sm:$0xff]  }
 0x181   : > { %484 = vst [vmem:[#allocation2 + $0x10] sm:$0x11] %v483_v6  ;;  %475 = vst.msk [vmem:[#allocation2 + $0x8] sm:$0xff] %vm10314_vm8, %v457_v7  ;;  %v9604_v6 = vld [vmem:[#allocation3 + $0x168] sm:$0xff]  }
 0x184   : > { %v1348_v26 = vld [vmem:[#allocation2] sm:$0xee] }
 0x188   : > { %v705_v9 = vld [vmem:[#allocation2 + $0x8] sm:$0xff]  ;;  %v1079_v13 = vld [vmem:[#allocation2 + $0x10] sm:$0x11] }
 0x189   : > { %v9577_v10 = vld [vmem:[#allocation2] ss:$8 sps:$4 sm:$0xff]   ;;  %v7425_v11 = vcombine.high %v10305_v59, %v705_v9  ;;  %v7424_v12 = vcombine.low %v10305_v59, %v705_v9  ;;  %v7455_v14 = vcombine.high %v1079_v13, %v1079_v13  ;;  %v7454_v15 = vcombine.low %v1079_v13, %v1079_v13  ;;  %v9608_v13 = vld [vmem:[#allocation3 + $0x158] sm:$0xff]  }
 0x18a   : > { %8457 = vmatmul.mubr.bf16.vlgmr.msra.gmra.mxu1 %v9577_v10  ;;  %v7474_v27 = vcombine.high %v1348_v26, %v705_v9  ;;  %v7473_v28 = vcombine.low %v1348_v26, %v705_v9  ;;  %v10366_v7 = vld [vmem:[#allocation2 + $0x8] sm:$0xf]  ;;  %v9606_v9 = vld [vmem:[#allocation3 + $0x160] sm:$0xff]   ;;  %v944_v10 = vld [vmem:[#allocation2] sm:$0xf] }
 0x18b   : > { %733 = vrot.lane.b32.xlu0 %v7425_v11, %s10119_s11  ;;  %731 = vrot.lane.b32.xlu1 %v7424_v12, %s10119_s11  ;;  %v1125_v16 = vshll.u32 %v7425_v11, 16  ;;  %v1113_v17 = vshll.u32 %v7424_v12, 16  ;;  %v1130_v18 = vshll.u32 %v7455_v14, 16  ;;  %v1118_v19 = vshll.u32 %v7454_v15, 16  ;;  %v9615_v26 = vld [vmem:[#allocation3 + $0x140] sm:$0xff]  }
 0x18c   : > { %8481 = vmatpush3.bf16.msra.mxu1 %v9582_v8  ;;  %8496 = vmatprep.mubr.msk.bf16.mxu1 %vm10116_vm0, %v10115_v0  ;;  %v1123_v21 = vshrl.u32 %v7425_v11, 16  ;;  %v1111_v23 = vshrl.u32 %v7424_v12, 16  ;;  %v1374_v37 = vrot.slane %v7474_v27, 1  ;;  %v1375_v38 = vrot.slane %v7455_v14, 1  ;;  %v9605_v8 = vld [vmem:[#allocation3 + $0xd8] sm:$0xff]  }
 0x18d   : > { %v1127_v22 = vrot.slane %v1125_v16, 1  ;;  %v1115_v25 = vrot.slane %v1113_v17, 1  ;;  %8482 = vmatprep.subr.bf16.mxu1 %v10115_v0  ;;  %v1132_v31 = vrot.slane %v1130_v18, 1  ;;  %v1120_v33 = vrot.slane %v1118_v19, 1  ;;  %v9610_v16 = vld [vmem:[#allocation3 + $0x150] sm:$0xff]   ;;  %v9611_v19 = vld [vmem:[#allocation3 + $0xc0] sm:$0xff]  }
 0x18e   : > { %v1371_v39 = vrot.slane %v7473_v28, 1  ;;  %v1372_v40 = vrot.slane %v7454_v15, 1  ;;  %v1376_v43 = vsel %vm1252_vm13, %v1374_v37, %v1375_v38  ;;  %v9609_v15 = vld [vmem:[#allocation3 + $0xc8] sm:$0xff]   ;;  %v10373_v17 = vld [vmem:[#allocation2 + $0x10] ss:$0 sps:$4 sm:$0x11]  }
 0x18f   : > { %848 = vrot.lane.b32.xlu0 %v7425_v11, %s10120_s12  ;;  %846 = vrot.lane.b32.xlu1 %v7424_v12, %s10120_s12  ;;  %v1128_v30 = vor.u32 %v1127_v22, %v1123_v21  ;;  %v1116_v32 = vor.u32 %v1115_v25, %v1111_v23  ;;  %v7442_v11 = vcombine.low %v944_v10, %v10366_v7  ;;  %v9607_v12 = vld [vmem:[#allocation3 + $0xd0] sm:$0xff]   ;;  %v981_v22 = vshll.u32 %v10373_v17, 16  ;;  %v9616_v27 = vld [vmem:[#allocation3 + $0x1b8] sm:$0xff]   ;;  %v9621_v37 = vld [vmem:[#allocation3 + $0x1a0] sm:$0xff]  }
 0x190   : > { %8483 = vmatpush3.bf16.msra.mxu1 %v9583_v20  ;;  %v1373_v44 = vsel %vm1252_vm13, %v1371_v39, %v1372_v40  ;;  %v9612_v20 = vld [vmem:[#allocation3 + $0x148] sm:$0xff]   ;;  %v9623_v39 = vld [vmem:[#allocation3 + $0x198] sm:$0xff]   ;;  %v9624_v40 = vld [vmem:[#allocation3 + $0x1e0] sm:$0xff]  }
 0x191   : > { %v1133_v35 = vsel %vm972_vm11, %v1128_v30, %v1132_v31  ;;  %v1121_v36 = vsel %vm972_vm11, %v1116_v32, %v1120_v33  ;;  %8484 = vmatprep.subr.bf16.mxu1 %v10115_v0  ;;  %v976_v14 = vshll.u32 %v7442_v11, 16  ;;  %v974_v21 = vshrl.u32 %v7442_v11, 16  ;;  %v9617_v32 = vld [vmem:[#allocation3 + $0x1b0] sm:$0xff]   ;;  %v9618_v33 = vld [vmem:[#allocation3 + $0x1f8] sm:$0xff]   ;;  %v9622_v38 = vld [vmem:[#allocation3 + $0x1e8] sm:$0xff]  }
 0x192   : > { %v983_v25 = vrot.slane %v981_v22, 1  ;;  %v9639_v10 = vld [vmem:[#allocation3 + $0x208] sm:$0xff]   ;;  %v9640_v11 = vld [vmem:[#allocation3 + $0x200] sm:$0xff]  }
 0x193   : > { %1136 = vrot.lane.b32.xlu0 %v1133_v35, %s10120_s12  ;;  %1134 = vrot.lane.b32.xlu1 %v1121_v36, %s10120_s12  ;;  %v978_v18 = vrot.slane %v976_v14, 1  ;;  %v9619_v35 = vld [vmem:[#allocation3 + $0x1a8] sm:$0xff]   ;;  %v9620_v36 = vld [vmem:[#allocation3 + $0x1f0] sm:$0xff]   ;;  %v9648_v22 = vld [vmem:[#allocation3 + $0x100] sm:$0xff]  }
 0x194   : > { %8485 = vmatpush3.bf16.msra.mxu1 %v9585_v34 }
 0x195   : > { %8486 = vmatprep.subr.bf16.mxu1 %v10115_v0  ;;  %v979_v23 = vor.u32 %v978_v18, %v974_v21  ;;  %v9644_v18 = vld [vmem:[#allocation3 + $0x120] sm:$0xff]   ;;  %v9647_v21 = vld [vmem:[#allocation3 + $0x108] sm:$0xff]  }
 0x197   : > { %1379 = vrot.lane.b32.xlu0 %v1376_v43, %s10119_s11  ;;  %1377 = vrot.lane.b32.xlu1 %v1373_v44, %s10119_s11  ;;  %v984_v28 = vsel %vm972_vm11, %v979_v23, %v983_v25  ;;  %v9649_v23 = vld [vmem:[#allocation3 + $0x38] sm:$0xff]   ;;  %v9650_v25 = vld [vmem:[#allocation3 + $0x30] sm:$0xff]  }
 0x198   : > { %8487 = vmatpush3.bf16.msra.mxu1 %v9587_v41  ;;  %v9625_v41 = vld [vmem:[#allocation3 + $0x190] sm:$0xff]  }
 0x199   : > { %8488 = vmatprep.subr.bf16.mxu1 %v10115_v0 }
 0x19b   : > { %1493 = vrot.lane.b32.xlu0 %v1376_v43, %s10120_s12  ;;  %1491 = vrot.lane.b32.xlu1 %v1373_v44, %s10120_s12  ;;  %v9626_v43 = vld [vmem:[#allocation3 + $0x1d8] sm:$0xff]   ;;  %v9627_v44 = vld [vmem:[#allocation3 + $0x188] sm:$0xff]  }
 0x19c   : > { %8489 = vmatpush3.bf16.msra.mxu1 %v9589_v45  ;;  %v9628_v45 = vld [vmem:[#allocation3 + $0x1d0] sm:$0xff]  }
 0x19d   : > { %8490 = vmatprep.subr.bf16.mxu1 %v10115_v0 }
 0x1a0   : > { %8491 = vmatpush3.bf16.msra.mxu1 %v9591_v46  ;;  %v1231_v46 = vld [vmem:[#allocation2] sm:$0xe] }
 0x1a1   : > { %8492 = vmatprep.subr.bf16.mxu1 %v10115_v0 }
 0x1a4   : > { %8493 = vmatpush3.bf16.msra.mxu1 %v9593_v47  ;;  %v7464_v47 = vcombine.low %v1231_v46, %v10366_v7 }
 0x1a5   : > { %8494 = vmatprep.subr.bf16.mxu1 %v10115_v0 }
 0x1a8   : > { %8495 = vmatpush3.bf16.msra.mxu1 %v9595_v48  ;;  %v9629_v48 = vld [vmem:[#allocation3 + $0x180] sm:$0xff]  }
 0x1a9   : > { %8520 = vmatprep.subr.bf16.mxu1 %v10115_v0 }
 0x1c4   : > { %v10351_v49 = vpop.f32.mrf.mxu0 }
 0x1c6   : > { %v8478_v50 = vpop.f32.mrf.mxu0 }
 0x1c7   : > { %v9630_v50 = vld [vmem:[#allocation3 + $0x1c8] sm:$0xff]  }
 0x1c8   : > { %v10353_v51 = vpop.f32.mrf.mxu0 }
 0x1ca   : > { %v8479_v52 = vpop.f32.mrf.mxu0 }
 0x1cb   : > { %v1253_v52 = vrot.slane %v7464_v47, 1 }
 0x1fd   : > { %v734_v54 = vpop.permute.xlu0 %733  ;;  %v732_v56 = vpop.permute.xlu1 %731 }
 0x1fe   : > { %v736_v57 = vsel %vm735_vm14, %v732_v56, %v734_v54  ;;  %v9632_v54 = vld [vmem:[#allocation3 + $0x1c0] sm:$0xff]   ;;  %v9633_v56 = vld [vmem:[#allocation3 + $0x238] sm:$0xff]  }
 0x1ff   : > { %8497 = vmatmul.mubr.bf16.vlgmr.msra.gmra.mxu1 %v736_v57 }
 0x200   : > { %8521 = vmatpush3.bf16.msra.mxu1 %v9598_v53  ;;  %8536 = vmatprep.mubr.msk.bf16.mxu1 %vm10116_vm0, %v10115_v0  ;;  %v1254_v53 = vrot.slane %v10373_v17, 1  ;;  %v9643_v17 = vld [vmem:[#allocation3 + $0x128] sm:$0xff]  }
 0x201   : > { %v849_v62 = vpop.permute.xlu0 %848  ;;  %v847_v63 = vpop.permute.xlu1 %846  ;;  %8522 = vmatprep.subr.bf16.mxu1 %v10115_v0 }
 0x202   : > { %v851_v1 = vsel %vm850_vm15, %v847_v63, %v849_v62  ;;  %v1255_v57 = vsel %vm1252_vm13, %v1253_v52, %v1254_v53  ;;  %v9634_v62 = vld [vmem:[#allocation3 + $0x230] sm:$0xff]  }
 0x203   : > { %8517 = vmatmul.mubr.bf16.vlgmr.msra.gmra.mxu0 %v851_v1  ;;  %v9635_v1 = vld [vmem:[#allocation3 + $0x228] sm:$0xff]  }
 0x204   : > { %8523 = vmatpush3.bf16.msra.mxu1 %v9599_v58  ;;  %8541 = vmatpush3.bf16.msra.mxu0 %v9600_v60 }
 0x205   : > { %8524 = vmatprep.subr.bf16.mxu1 %v10115_v0  ;;  %8542 = vmatprep.subr.bf16.mxu0 %v10115_v0  ;;  %v1137_v30 = vpop.permute.xlu0 %1136  ;;  %v1135_v31 = vpop.permute.xlu1 %1134 }
 0x206   : > { %8556 = vmatprep.mubr.msk.bf16.mxu0 %vm10116_vm0, %v10115_v0  ;;  %v1138_v34 = vsel %vm850_vm15, %v1135_v31, %v1137_v30  ;;  %v9652_v30 = vld [vmem:[#allocation3 + $0x20] sm:$0xff]  }
 0x208   : > { %8525 = vmatpush3.bf16.msra.mxu1 %v9601_v3  ;;  %8543 = vmatpush3.bf16.msra.mxu0 %v9602_v4  ;;  %v9636_v3 = vld [vmem:[#allocation3 + $0x220] sm:$0xff]  }
 0x209   : > { %8526 = vmatprep.subr.bf16.mxu1 %v10115_v0  ;;  %8544 = vmatprep.subr.bf16.mxu0 %v10115_v0  ;;  %v1380_v58 = vpop.permute.xlu0 %1379  ;;  %v1378_v60 = vpop.permute.xlu1 %1377 }
 0x20a   : > { %v1381_v63 = vsel %vm735_vm14, %v1378_v60, %v1380_v58 }
 0x20c   : > { %8527 = vmatpush3.bf16.msra.mxu1 %v9603_v5  ;;  %8545 = vmatpush3.bf16.msra.mxu0 %v9604_v6  ;;  %v9637_v6 = vld [vmem:[#allocation3 + $0x218] sm:$0xff]  }
 0x20d   : > { %8528 = vmatprep.subr.bf16.mxu1 %v10115_v0  ;;  %8546 = vmatprep.subr.bf16.mxu0 %v10115_v0 }
 0x210   : > { %8529 = vmatpush3.bf16.msra.mxu1 %v9605_v8  ;;  %8547 = vmatpush3.bf16.msra.mxu0 %v9606_v9  ;;  %v9638_v9 = vld [vmem:[#allocation3 + $0x210] sm:$0xff]  }
 0x211   : > { %8530 = vmatprep.subr.bf16.mxu1 %v10115_v0  ;;  %8548 = vmatprep.subr.bf16.mxu0 %v10115_v0 }
 0x214   : > { %8531 = vmatpush3.bf16.msra.mxu1 %v9607_v12  ;;  %8549 = vmatpush3.bf16.msra.mxu0 %v9608_v13  ;;  %v1494_v12 = vpop.permute.xlu0 %1493  ;;  %v1492_v13 = vpop.permute.xlu1 %1491 }
 0x215   : > { %8532 = vmatprep.subr.bf16.mxu1 %v10115_v0  ;;  %8550 = vmatprep.subr.bf16.mxu0 %v10115_v0  ;;  %v1495_v14 = vsel %vm850_vm15, %v1492_v13, %v1494_v12 }
 0x218   : > { %8533 = vmatpush3.bf16.msra.mxu1 %v9609_v15  ;;  %8551 = vmatpush3.bf16.msra.mxu0 %v9610_v16  ;;  %v9641_v15 = vld [vmem:[#allocation3 + $0x138] sm:$0xff]   ;;  %v9642_v16 = vld [vmem:[#allocation3 + $0x130] sm:$0xff]  }
 0x219   : > { %8534 = vmatprep.subr.bf16.mxu1 %v10115_v0  ;;  %8552 = vmatprep.subr.bf16.mxu0 %v10115_v0 }
 0x21c   : > { %8535 = vmatpush3.bf16.msra.mxu1 %v9611_v19  ;;  %8553 = vmatpush3.bf16.msra.mxu0 %v9612_v20  ;;  %v9645_v19 = vld [vmem:[#allocation3 + $0x118] sm:$0xff]   ;;  %v9646_v20 = vld [vmem:[#allocation3 + $0x110] sm:$0xff]  }
 0x21d   : > { %8554 = vmatprep.subr.bf16.mxu0 %v10115_v0  ;;  %8560 = vmatprep.subr.bf16.mxu1 %v10115_v0 }
 0x21f   : > { %8537 = vmatmul.mubr.bf16.vlgmr.msra.gmra.mxu1 %v984_v28 }
 0x220   : > { %8555 = vmatpush3.bf16.msra.mxu0 %v9615_v26  ;;  %8561 = vmatpush3.bf16.msra.mxu1 %v9616_v27  ;;  %v9651_v26 = vld [vmem:[#allocation3 + $0x28] sm:$0xff]  }
 0x221   : > { %8562 = vmatprep.subr.bf16.mxu1 %v10115_v0  ;;  %8580 = vmatprep.subr.bf16.mxu0 %v10115_v0 }
 0x222   : > { %8576 = vmatprep.mubr.msk.bf16.mxu1 %vm10116_vm0, %v10115_v0 }
 0x223   : > { %8557 = vmatmul.mubr.bf16.vlgmr.msra.gmra.mxu0 %v1138_v34 }
 0x224   : > { %8563 = vmatpush3.bf16.msra.mxu1 %v9617_v32  ;;  %8581 = vmatpush3.bf16.msra.mxu0 %v9618_v33 }
 0x225   : > { %8564 = vmatprep.subr.bf16.mxu1 %v10115_v0  ;;  %8582 = vmatprep.subr.bf16.mxu0 %v10115_v0 }
 0x226   : > { %8596 = vmatprep.mubr.msk.bf16.mxu0 %vm10116_vm0, %v10115_v0 }
 0x228   : > { %8565 = vmatpush3.bf16.msra.mxu1 %v9619_v35  ;;  %8583 = vmatpush3.bf16.msra.mxu0 %v9620_v36 }
 0x229   : > { %8566 = vmatprep.subr.bf16.mxu1 %v10115_v0  ;;  %8584 = vmatprep.subr.bf16.mxu0 %v10115_v0 }
 0x22c   : > { %8567 = vmatpush3.bf16.msra.mxu1 %v9621_v37  ;;  %8585 = vmatpush3.bf16.msra.mxu0 %v9622_v38 }
 0x22d   : > { %8568 = vmatprep.subr.bf16.mxu1 %v10115_v0  ;;  %8586 = vmatprep.subr.bf16.mxu0 %v10115_v0 }
 0x230   : > { %8569 = vmatpush3.bf16.msra.mxu1 %v9623_v39  ;;  %8587 = vmatpush3.bf16.msra.mxu0 %v9624_v40 }
 0x231   : > { %8570 = vmatprep.subr.bf16.mxu1 %v10115_v0  ;;  %8588 = vmatprep.subr.bf16.mxu0 %v10115_v0 }
 0x234   : > { %8571 = vmatpush3.bf16.msra.mxu1 %v9625_v41  ;;  %8589 = vmatpush3.bf16.msra.mxu0 %v9626_v43 }
 0x235   : > { %8572 = vmatprep.subr.bf16.mxu1 %v10115_v0  ;;  %8590 = vmatprep.subr.bf16.mxu0 %v10115_v0 }
 0x238   : > { %8573 = vmatpush3.bf16.msra.mxu1 %v9627_v44  ;;  %8591 = vmatpush3.bf16.msra.mxu0 %v9628_v45 }
 0x239   : > { %8574 = vmatprep.subr.bf16.mxu1 %v10115_v0  ;;  %8592 = vmatprep.subr.bf16.mxu0 %v10115_v0 }
 0x23c   : > { %8575 = vmatpush3.bf16.msra.mxu1 %v9629_v48  ;;  %8593 = vmatpush3.bf16.msra.mxu0 %v9630_v50 }
 0x23d   : > { %8594 = vmatprep.subr.bf16.mxu0 %v10115_v0  ;;  %8600 = vmatprep.subr.bf16.mxu1 %v10115_v0 }
 0x23f   : > { %8577 = vmatmul.mubr.bf16.vlgmr.msra.gmra.mxu1 %v1255_v57 }
 0x240   : > { %8595 = vmatpush3.bf16.msra.mxu0 %v9632_v54  ;;  %8601 = vmatpush3.bf16.msra.mxu1 %v9633_v56 }
 0x241   : > { %8602 = vmatprep.subr.bf16.mxu1 %v10115_v0  ;;  %8616 = vmatprep.mubr.msk.bf16.mxu1 %vm10116_vm0, %v10115_v0 }
 0x242   : > { %8620 = vmatprep.subr.bf16.mxu0 %v10115_v0 }
 0x243   : > { %8597 = vmatmul.mubr.bf16.vlgmr.msra.gmra.mxu0 %v1381_v63 }
 0x244   : > { %8603 = vmatpush3.bf16.msra.mxu1 %v9634_v62  ;;  %8636 = vmatprep.mubr.msk.bf16.mxu0 %vm10116_vm0, %v10115_v0 }
 0x245   : > { %8604 = vmatprep.subr.bf16.mxu1 %v10115_v0  ;;  %8621 = vmatpush3.bf16.msra.mxu0 %v9649_v23 }
 0x246   : > { %8622 = vmatprep.subr.bf16.mxu0 %v10115_v0 }
 0x248   : > { %8605 = vmatpush3.bf16.msra.mxu1 %v9635_v1 }
 0x249   : > { %8606 = vmatprep.subr.bf16.mxu1 %v10115_v0  ;;  %8623 = vmatpush3.bf16.msra.mxu0 %v9650_v25 }
 0x24a   : > { %v608_v4 = vpop.f32.mrf.mxu1  ;;  %8624 = vmatprep.subr.bf16.mxu0 %v10115_v0 }
 0x24b   : > { %v698_v27 = vadd.f32 %v10351_v49, %v608_v4 }
 0x24c   : > { %8607 = vmatpush3.bf16.msra.mxu1 %v9636_v3  ;;  %v8458_v5 = vpop.f32.mrf.mxu1 }
 0x24d   : > { %8608 = vmatprep.subr.bf16.mxu1 %v10115_v0  ;;  %8625 = vmatpush3.bf16.msra.mxu0 %v9651_v26  ;;  %v9654_v26 = vld [vmem:[#allocation3 + $0x10] sm:$0xff]  }
 0x24e   : > { %v611_v7 = vpop.f32.mrf.mxu1  ;;  %8626 = vmatprep.subr.bf16.mxu0 %v10115_v0 }
 0x24f   : > { %v701_v33 = vadd.f32 %v10353_v51, %v611_v7  ;;  %v10441_v7 = vld [vmem:[%s11196_s4] ss:$0 sm:$0xff] }
 0x250   : > { %8609 = vmatpush3.bf16.msra.mxu1 %v9637_v6  ;;  %v8459_v8 = vpop.f32.mrf.mxu1 }
 0x251   : > { %8610 = vmatprep.subr.bf16.mxu1 %v10115_v0  ;;  %8627 = vmatpush3.bf16.msra.mxu0 %v9652_v30 }
 0x252   : > { %8628 = vmatprep.subr.bf16.mxu0 %v10115_v0 }
 0x254   : > { %8611 = vmatpush3.bf16.msra.mxu1 %v9638_v9 }
 0x255   : > { %8612 = vmatprep.subr.bf16.mxu1 %v10115_v0 }
 0x258   : > { %8613 = vmatpush3.bf16.msra.mxu1 %v9639_v10 }
 0x259   : > { %8614 = vmatprep.subr.bf16.mxu1 %v10115_v0 }
 0x25c   : > { %8615 = vmatpush3.bf16.msra.mxu1 %v9640_v11 }
 0x25d   : > { %8640 = vmatprep.subr.bf16.mxu1 %v10115_v0 }
 0x25f   : > { %8617 = vmatmul.mubr.bf16.vlgmr.msra.gmra.mxu1 %v1495_v14 }
 0x260   : > { %8656 = vmatprep.mubr.msk.bf16.mxu1 %vm10116_vm0, %v10115_v0  ;;  %8641 = vmatpush3.bf16.msra.mxu1 %v9641_v15 }
 0x261   : > { %8642 = vmatprep.subr.bf16.mxu1 %v10115_v0 }
 0x264   : > { %8643 = vmatpush3.bf16.msra.mxu1 %v9642_v16 }
 0x265   : > { %8644 = vmatprep.subr.bf16.mxu1 %v10115_v0 }
 0x268   : > { %8645 = vmatpush3.bf16.msra.mxu1 %v9643_v17 }
 0x269   : > { %8646 = vmatprep.subr.bf16.mxu1 %v10115_v0 }
 0x26c   : > { %8647 = vmatpush3.bf16.msra.mxu1 %v9644_v18 }
 0x26d   : > { %8648 = vmatprep.subr.bf16.mxu1 %v10115_v0 }
 0x270   : > { %8649 = vmatpush3.bf16.msra.mxu1 %v9645_v19 }
 0x271   : > { %8650 = vmatprep.subr.bf16.mxu1 %v10115_v0 }
 0x274   : > { %8651 = vmatpush3.bf16.msra.mxu1 %v9646_v20  ;;  %v9653_v20 = vld [vmem:[#allocation3 + $0x18] sm:$0xff]  }
 0x275   : > { %8652 = vmatprep.subr.bf16.mxu1 %v10115_v0  ;;  %8629 = vmatpush3.bf16.msra.mxu0 %v9653_v20 }
 0x276   : > { %8630 = vmatprep.subr.bf16.mxu0 %v10115_v0 }
 0x278   : > { %8653 = vmatpush3.bf16.msra.mxu1 %v9647_v21 }
 0x279   : > { %8654 = vmatprep.subr.bf16.mxu1 %v10115_v0  ;;  %8631 = vmatpush3.bf16.msra.mxu0 %v9654_v26 }
 0x27a   : > { %8632 = vmatprep.subr.bf16.mxu0 %v10115_v0 }
 0x27c   : > { %8655 = vmatpush3.bf16.msra.mxu1 %v9648_v22 }
 0x27d   : > { %8680 = vmatprep.subr.bf16.mxu1 %v10115_v0 }
 0x2bf   : > { %v820_v28 = vpop.f32.mrf.mxu1 }
 0x2c0   : > { %v827_v31 = vadd.f32 %v820_v28, %v698_v27 }
 0x2c1   : > { %v8498_v32 = vpop.f32.mrf.mxu1 }
 0x2c2   : > { %v9655_v32 = vld [vmem:[#allocation3 + $0x8] sm:$0xff]  }
 0x2c3   : > { %v823_v34 = vpop.f32.mrf.mxu1  ;;  %v935_v35 = vpop.f32.mrf.mxu0  ;;  %8633 = vmatpush3.bf16.msra.mxu0 %v9655_v32 }
 0x2c4   : > { %v828_v36 = vadd.f32 %v823_v34, %v701_v33  ;;  %v942_v37 = vadd.f32 %v935_v35, %v827_v31  ;;  %8634 = vmatprep.subr.bf16.mxu0 %v10115_v0 }
 0x2c5   : > { %v8499_v38 = vpop.f32.mrf.mxu1  ;;  %v8518_v39 = vpop.f32.mrf.mxu0 }
 0x2c7   : > { %v938_v40 = vpop.f32.mrf.mxu0 }
 0x2c8   : > { %v943_v49 = vadd.f32 %v938_v40, %v828_v36 }
 0x2c9   : > { %v8519_v41 = vpop.f32.mrf.mxu0 }
 0x2ca   : > { %v9664_v41 = vld [vmem:[#allocation3 + $0xb8] sm:$0xff]  }
 0x2df   : > { %v1068_v43 = vpop.f32.mrf.mxu1 }
 0x2e0   : > { %v1075_v63 = vadd.f32 %v1068_v43, %v942_v37  ;;  %v9656_v37 = vld [vmem:[#allocation3] sm:$0xff]   ;;  %v9666_v43 = vld [vmem:[#allocation3 + $0xb0] sm:$0xff]  }
 0x2e1   : > { %v8538_v44 = vpop.f32.mrf.mxu1  ;;  %8635 = vmatpush3.bf16.msra.mxu0 %v9656_v37  ;;  %v9667_v37 = vld [vmem:[#allocation3 + $0x60] sm:$0xff]  }
 0x2e2   : > { %8660 = vmatprep.subr.bf16.mxu0 %v10115_v0  ;;  %v9668_v44 = vld [vmem:[#allocation3 + $0xa8] sm:$0xff]  }
 0x2e3   : > { %v1071_v45 = vpop.f32.mrf.mxu1  ;;  %v1222_v46 = vpop.f32.mrf.mxu0 }
 0x2e4   : > { %v1229_v1 = vadd.f32 %v1222_v46, %v1075_v63  ;;  %v1076_v3 = vadd.f32 %v1071_v45, %v943_v49  ;;  %v9670_v45 = vld [vmem:[#allocation3 + $0xa0] sm:$0xff]   ;;  %v9672_v46 = vld [vmem:[#allocation3 + $0x98] sm:$0xff]  }
 0x2e5   : > { %v8539_v47 = vpop.f32.mrf.mxu1  ;;  %v8558_v48 = vpop.f32.mrf.mxu0  ;;  %v9677_v63 = vld [vmem:[#allocation3 + $0x80] sm:$0xff]  }
 0x2e6   : > { %v9674_v47 = vld [vmem:[#allocation3 + $0x90] sm:$0xff]   ;;  %v9676_v48 = vld [vmem:[#allocation3 + $0x88] sm:$0xff]  }
 0x2e7   : > { %v1225_v50 = vpop.f32.mrf.mxu0 }
 0x2e8   : > { %v1230_v5 = vadd.f32 %v1225_v50, %v1076_v3 }
 0x2e9   : > { %v8559_v51 = vpop.f32.mrf.mxu0 }
 0x2ff   : > { %v1339_v52 = vpop.f32.mrf.mxu1 }
 0x300   : > { %v1346_v4 = vadd.f32 %v1339_v52, %v1229_v1 }
 0x301   : > { %v8578_v53 = vpop.f32.mrf.mxu1 }
 0x303   : > { %v1342_v54 = vpop.f32.mrf.mxu1  ;;  %v1465_v56 = vpop.f32.mrf.mxu0 }
 0x304   : > { %v1472_v6 = vadd.f32 %v1465_v56, %v1346_v4  ;;  %v1347_v9 = vadd.f32 %v1342_v54, %v1230_v5 }
 0x305   : > { %v8579_v57 = vpop.f32.mrf.mxu1  ;;  %v8598_v58 = vpop.f32.mrf.mxu0 }
 0x307   : > { %v1468_v60 = vpop.f32.mrf.mxu0 }
 0x308   : > { %v1473_v12 = vadd.f32 %v1468_v60, %v1347_v9  ;;  %v1635_v60 = vld [vmem:[#allocation2 + $0x10] sm:$0x11] }
 0x309   : > { %v8599_v62 = vpop.f32.mrf.mxu0 }
 0x31f   : > { %v1579_v8 = vpop.f32.mrf.mxu1 }
 0x320   : > { %v1586_v10 = vadd.f32 %v1579_v8, %v1472_v6 }
 0x321   : > { %v8618_v11 = vpop.f32.mrf.mxu1 }
 0x322   : > { %v1588_v13 = vadd.f32 %v10441_v7, %v1586_v10 }
 0x323   : > { %v1582_v14 = vpop.f32.mrf.mxu1 }
 0x324   : > { %v1590_v15 = vmax.f32 %v1588_v13, 0.0  ;;  %v1587_v16 = vadd.f32 %v1582_v14, %v1473_v12 }
 0x325   : > { %v8619_v17 = vpop.f32.mrf.mxu1 }
 0x326   : > { %v1592_v18 = vadd.f32 %v1590_v15, %v10261_v24  ;;  %v1589_v19 = vadd.f32 %v10441_v7, %v1587_v16  ;;  %v9663_v16 = vld [vmem:[#allocation3 + $0x70] sm:$0xff]  }
 0x328   : > { %v7927_v21 = vpack.c.bf16 %v1592_v18, %v1592_v18  ;;  %v1591_v22 = vmax.f32 %v1589_v19, 0.0 }
 0x32a   : > { %v1593_v23 = vadd.f32 %v1591_v22, %v10266_v29  ;;  %v1601_v25 = vshrl.u32 %v7927_v21, 16  ;;  %v1604_v31 = vshll.u32 %v7927_v21, 16 }
 0x32c   : > { %v1594_v27 = vpack.c.bf16 %v1593_v23, %v1592_v18  ;;  %v7928_v28 = vpack.c.bf16 %v1593_v23, %v1593_v23  ;;  %v1603_v30 = vrot.slane %v1601_v25, 7 }
 0x32e   : > { %8657 = vmatmul.mubr.bf16.vlgmr.msra.gmra.mxu1 %v1594_v27  ;;  %v1606_v33 = vor.u32 %v1604_v31, %v1603_v30  ;;  %v1609_v34 = vshrl.u32 %v7928_v28, 16  ;;  %v1612_v36 = vshll.u32 %v7928_v28, 16  ;;  %v1607_v39 = vrot.slane %v1603_v30, 4  ;;  %v9665_v30 = vld [vmem:[#allocation3 + $0x68] sm:$0xff]  }
 0x32f   : > { %8696 = vmatprep.mubr.msk.bf16.mxu1 %vm10116_vm0, %v10115_v0  ;;  %8681 = vmatpush3.bf16.msra.mxu1 %v9664_v41  ;;  %v9673_v41 = vld [vmem:[#allocation3 + $0x48] sm:$0xff]  }
 0x330   : > { %1617 = vrot.lane.b32.xlu1 %v1606_v33, %s10118_s10  ;;  %v1611_v35 = vrot.slane %v1609_v34, 7  ;;  %8682 = vmatprep.subr.bf16.mxu1 %v10115_v0 }
 0x332   : > { %v1616_v38 = vrot.slane %v1611_v35, 4  ;;  %v1614_v40 = vor.u32 %v1612_v36, %v1611_v35 }
 0x333   : > { %8683 = vmatpush3.bf16.msra.mxu1 %v9666_v43  ;;  %v9675_v43 = vld [vmem:[#allocation3 + $0x40] sm:$0xff]  }
 0x334   : > { %1621 = vrot.lane.b32.xlu1 %v1616_v38, %s10118_s10  ;;  %v1615_v49 = vsel %vm10279_vm10, %v1607_v39, %v1614_v40  ;;  %8684 = vmatprep.subr.bf16.mxu1 %v10115_v0  ;;  %v9669_v40 = vld [vmem:[#allocation3 + $0x58] sm:$0xff]  }
 0x335   : > { %1619 = vrot.lane.b32.xlu0 %v1615_v49, %s10118_s10  ;;  %v9671_v49 = vld [vmem:[#allocation3 + $0x50] sm:$0xff]  }
 0x337   : > { %8685 = vmatpush3.bf16.msra.mxu1 %v9668_v44 }
 0x338   : > { %8686 = vmatprep.subr.bf16.mxu1 %v10115_v0 }
 0x33b   : > { %8687 = vmatpush3.bf16.msra.mxu1 %v9670_v45 }
 0x33c   : > { %8688 = vmatprep.subr.bf16.mxu1 %v10115_v0 }
 0x33f   : > { %8689 = vmatpush3.bf16.msra.mxu1 %v9672_v46 }
 0x340   : > { %8690 = vmatprep.subr.bf16.mxu1 %v10115_v0 }
 0x343   : > { %8691 = vmatpush3.bf16.msra.mxu1 %v9674_v47 }
 0x344   : > { %8692 = vmatprep.subr.bf16.mxu1 %v10115_v0 }
 0x347   : > { %8693 = vmatpush3.bf16.msra.mxu1 %v9676_v48  ;;  %v9678_v48 = vld [vmem:[#allocation3 + $0xf8] sm:$0xff]  }
 0x348   : > { %8694 = vmatprep.subr.bf16.mxu1 %v10115_v0 }
 0x34b   : > { %8695 = vmatpush3.bf16.msra.mxu1 %v9677_v63  ;;  %v9682_v63 = vld [vmem:[#allocation3 + $0x170] sm:$0xff]  }
 0x34c   : > { %8720 = vmatprep.subr.bf16.mxu1 %v10115_v0 }
 0x3a2   : > { %v1618_v50 = vpop.permute.xlu1 %1617 }
 0x3a3   : > { %v1623_v51 = vrot.slane %v1618_v50, 4 }
 0x3a5   : > { %v1626_v52 = vsel %vm455_vm6, %v1623_v51, %v1618_v50 }
 0x3a6   : > { %v10469_v53 = vsel %vm10298_vm7, %v1626_v52, %v10305_v59  ;;  %v1622_v54 = vpop.permute.xlu1 %1621  ;;  %v9662_v59 = vld [vmem:[#allocation3 + $0x78] sm:$0xff]  }
 0x3a7   : > { %1633 = vst [vmem:[#allocation2] sm:$0xff] %v10469_v53  ;;  %v1625_v56 = vrot.slane %v1622_v54, 4  ;;  %v1620_v57 = vpop.permute.xlu0 %1619 }
 0x3a8   : > { %v1624_v58 = vrot.slane %v1620_v57, 4 }
 0x3a9   : > { %v1628_v62 = vsel %vm455_vm6, %v1625_v56, %v1622_v54  ;;  %v9679_v54 = vld [vmem:[#allocation3 + $0xf0] sm:$0xff]   ;;  %v9680_v56 = vld [vmem:[#allocation3 + $0x178] sm:$0xff]  }
 0x3aa   : > { %v1636_v1 = vsel %vm10308_vm12, %v1628_v62, %v1635_v60  ;;  %v1627_v3 = vsel %vm455_vm6, %v1624_v58, %v1620_v57  ;;  %v9681_v62 = vld [vmem:[#allocation3 + $0xe8] sm:$0xff]  }
 0x3ab   : > { %1637 = vst [vmem:[#allocation2 + $0x10] sm:$0x11] %v1636_v1  ;;  %1634 = vst.msk [vmem:[#allocation2 + $0x8] sm:$0xff] %vm10314_vm8, %v1627_v3  ;;  %v9683_v1 = vld [vmem:[#allocation3 + $0xe0] sm:$0xff]   ;;  %v9684_v3 = vld [vmem:[#allocation3 + $0x168] sm:$0xff]  }
 0x3ae   : > { %v2491_v21 = vld [vmem:[#allocation2] sm:$0xee] }
 0x3b2   : > { %v1857_v4 = vld [vmem:[#allocation2 + $0x8] sm:$0xff]  ;;  %v2225_v9 = vld [vmem:[#allocation2 + $0x10] sm:$0x11] }
 0x3b3   : > { %v9657_v5 = vld [vmem:[#allocation2] ss:$8 sps:$4 sm:$0xff]   ;;  %v7511_v6 = vcombine.high %v10469_v53, %v1857_v4  ;;  %v7510_v8 = vcombine.low %v10469_v53, %v1857_v4  ;;  %v7541_v10 = vcombine.high %v2225_v9, %v2225_v9  ;;  %v7540_v11 = vcombine.low %v2225_v9, %v2225_v9 }
 0x3b4   : > { %8637 = vmatmul.mubr.bf16.vlgmr.msra.gmra.mxu0 %v9657_v5  ;;  %v7560_v22 = vcombine.high %v2491_v21, %v1857_v4  ;;  %v7559_v23 = vcombine.low %v2491_v21, %v1857_v4  ;;  %v9685_v4 = vld [vmem:[#allocation3 + $0xd8] sm:$0xff]   ;;  %v9686_v5 = vld [vmem:[#allocation3 + $0x160] sm:$0xff]   ;;  %v9687_v9 = vld [vmem:[#allocation3 + $0xd0] sm:$0xff]  }
 0x3b5   : > { %1884 = vrot.lane.b32.xlu1 %v7511_v6, %s10119_s11  ;;  %1882 = vrot.lane.b32.xlu0 %v7510_v8, %s10119_s11  ;;  %v2270_v12 = vshll.u32 %v7511_v6, 16  ;;  %v2258_v13 = vshll.u32 %v7510_v8, 16  ;;  %v2275_v14 = vshll.u32 %v7541_v10, 16  ;;  %v2263_v15 = vshll.u32 %v7540_v11, 16 }
 0x3b6   : > { %8661 = vmatpush3.bf16.msra.mxu0 %v9662_v59  ;;  %8676 = vmatprep.mubr.msk.bf16.mxu0 %vm10116_vm0, %v10115_v0  ;;  %v2268_v17 = vshrl.u32 %v7511_v6, 16  ;;  %v2256_v19 = vshrl.u32 %v7510_v8, 16  ;;  %v2516_v33 = vrot.slane %v7560_v22, 1  ;;  %v2517_v34 = vrot.slane %v7541_v10, 1  ;;  %v10520_v59 = vld [vmem:[#allocation2 + $0x8] sm:$0xf] }
 0x3b7   : > { %v2272_v18 = vrot.slane %v2270_v12, 1  ;;  %v2260_v20 = vrot.slane %v2258_v13, 1  ;;  %8662 = vmatprep.subr.bf16.mxu0 %v10115_v0  ;;  %v2277_v26 = vrot.slane %v2275_v14, 1  ;;  %v2265_v28 = vrot.slane %v2263_v15, 1  ;;  %v9688_v10 = vld [vmem:[#allocation3 + $0x158] sm:$0xff]   ;;  %v9689_v12 = vld [vmem:[#allocation3 + $0xc8] sm:$0xff]  }
 0x3b8   : > { %v2513_v35 = vrot.slane %v7559_v23, 1  ;;  %v2514_v36 = vrot.slane %v7540_v11, 1  ;;  %v2518_v38 = vsel %vm1252_vm13, %v2516_v33, %v2517_v34  ;;  %v9690_v13 = vld [vmem:[#allocation3 + $0x150] sm:$0xff]   ;;  %v10527_v14 = vld [vmem:[#allocation2 + $0x10] ss:$0 sps:$4 sm:$0x11]  }
 0x3b9   : > { %1997 = vrot.lane.b32.xlu1 %v7511_v6, %s10120_s12  ;;  %1995 = vrot.lane.b32.xlu0 %v7510_v8, %s10120_s12  ;;  %v2273_v25 = vor.u32 %v2272_v18, %v2268_v17  ;;  %v2261_v27 = vor.u32 %v2260_v20, %v2256_v19  ;;  %v2092_v6 = vld [vmem:[#allocation2] sm:$0xf]  ;;  %v2127_v19 = vshll.u32 %v10527_v14, 16  ;;  %v9695_v22 = vld [vmem:[#allocation3 + $0x140] sm:$0xff]   ;;  %v9696_v23 = vld [vmem:[#allocation3 + $0x1b8] sm:$0xff]  }
 0x3ba   : > { %8663 = vmatpush3.bf16.msra.mxu0 %v9663_v16  ;;  %v2515_v39 = vsel %vm1252_vm13, %v2513_v35, %v2514_v36  ;;  %v7528_v8 = vcombine.low %v2092_v6, %v10520_v59  ;;  %v9691_v16 = vld [vmem:[#allocation3 + $0xc0] sm:$0xff]   ;;  %v9692_v17 = vld [vmem:[#allocation3 + $0x148] sm:$0xff]   ;;  %v9700_v33 = vld [vmem:[#allocation3 + $0x1f0] sm:$0xff]  }
 0x3bb   : > { %v2278_v31 = vsel %vm972_vm11, %v2273_v25, %v2277_v26  ;;  %v2266_v32 = vsel %vm972_vm11, %v2261_v27, %v2265_v28  ;;  %8664 = vmatprep.subr.bf16.mxu0 %v10115_v0  ;;  %v2129_v21 = vrot.slane %v2127_v19, 1  ;;  %v9697_v28 = vld [vmem:[#allocation3 + $0x1b0] sm:$0xff]   ;;  %v9701_v34 = vld [vmem:[#allocation3 + $0x1a0] sm:$0xff]   ;;  %v9702_v35 = vld [vmem:[#allocation3 + $0x1e8] sm:$0xff]  }
 0x3bc   : > { %v2122_v11 = vshll.u32 %v7528_v8, 16  ;;  %v2120_v18 = vshrl.u32 %v7528_v8, 16  ;;  %v9703_v36 = vld [vmem:[#allocation3 + $0x198] sm:$0xff]   ;;  %v9718_v6 = vld [vmem:[#allocation3 + $0x210] sm:$0xff]   ;;  %v9719_v8 = vld [vmem:[#allocation3 + $0x208] sm:$0xff]  }
 0x3bd   : > { %2281 = vrot.lane.b32.xlu1 %v2278_v31, %s10120_s12  ;;  %2279 = vrot.lane.b32.xlu0 %v2266_v32, %s10120_s12  ;;  %v9699_v32 = vld [vmem:[#allocation3 + $0x1a8] sm:$0xff]  }
 0x3be   : > { %8665 = vmatpush3.bf16.msra.mxu0 %v9665_v30  ;;  %v2124_v15 = vrot.slane %v2122_v11, 1  ;;  %v9698_v30 = vld [vmem:[#allocation3 + $0x1f8] sm:$0xff]   ;;  %v9727_v19 = vld [vmem:[#allocation3 + $0x108] sm:$0xff]  }
 0x3bf   : > { %8666 = vmatprep.subr.bf16.mxu0 %v10115_v0 }
 0x3c0   : > { %v2125_v20 = vor.u32 %v2124_v15, %v2120_v18  ;;  %v9723_v15 = vld [vmem:[#allocation3 + $0x128] sm:$0xff]   ;;  %v9726_v18 = vld [vmem:[#allocation3 + $0x110] sm:$0xff]  }
 0x3c1   : > { %2521 = vrot.lane.b32.xlu1 %v2518_v38, %s10119_s11  ;;  %2519 = vrot.lane.b32.xlu0 %v2515_v39, %s10119_s11 }
 0x3c2   : > { %8667 = vmatpush3.bf16.msra.mxu0 %v9667_v37  ;;  %v2130_v25 = vsel %vm972_vm11, %v2125_v20, %v2129_v21  ;;  %v9704_v37 = vld [vmem:[#allocation3 + $0x1e0] sm:$0xff]   ;;  %v9729_v21 = vld [vmem:[#allocation3 + $0x38] sm:$0xff]  }
 0x3c3   : > { %8668 = vmatprep.subr.bf16.mxu0 %v10115_v0  ;;  %v9728_v20 = vld [vmem:[#allocation3 + $0x100] sm:$0xff]  }
 0x3c5   : > { %2634 = vrot.lane.b32.xlu1 %v2518_v38, %s10120_s12  ;;  %2632 = vrot.lane.b32.xlu0 %v2515_v39, %s10120_s12  ;;  %v9705_v38 = vld [vmem:[#allocation3 + $0x190] sm:$0xff]   ;;  %v9706_v39 = vld [vmem:[#allocation3 + $0x1d8] sm:$0xff]  }
 0x3c6   : > { %8669 = vmatpush3.bf16.msra.mxu0 %v9669_v40  ;;  %v9707_v40 = vld [vmem:[#allocation3 + $0x188] sm:$0xff]  }
 0x3c7   : > { %8670 = vmatprep.subr.bf16.mxu0 %v10115_v0 }
 0x3ca   : > { %8671 = vmatpush3.bf16.msra.mxu0 %v9671_v49  ;;  %v9708_v49 = vld [vmem:[#allocation3 + $0x1d0] sm:$0xff]  }
 0x3cb   : > { %8672 = vmatprep.subr.bf16.mxu0 %v10115_v0 }
 0x3ce   : > { %8673 = vmatpush3.bf16.msra.mxu0 %v9673_v41  ;;  %v2376_v41 = vld [vmem:[#allocation2] sm:$0xe] }
 0x3cf   : > { %8674 = vmatprep.subr.bf16.mxu0 %v10115_v0 }
 0x3d2   : > { %8675 = vmatpush3.bf16.msra.mxu0 %v9675_v43  ;;  %v7550_v43 = vcombine.low %v2376_v41, %v10520_v59  ;;  %v9717_v59 = vld [vmem:[#allocation3 + $0x218] sm:$0xff]  }
 0x3d3   : > { %8700 = vmatprep.subr.bf16.mxu0 %v10115_v0 }
 0x3ee   : > { %v10505_v44 = vpop.f32.mrf.mxu1 }
 0x3f0   : > { %v8658_v45 = vpop.f32.mrf.mxu1 }
 0x3f1   : > { %v9709_v45 = vld [vmem:[#allocation3 + $0x180] sm:$0xff]  }
 0x3f2   : > { %v10507_v46 = vpop.f32.mrf.mxu1 }
 0x3f4   : > { %v8659_v47 = vpop.f32.mrf.mxu1 }
 0x3f5   : > { %v9710_v47 = vld [vmem:[#allocation3 + $0x1c8] sm:$0xff]  }
 0x427   : > { %v1885_v50 = vpop.permute.xlu1 %1884  ;;  %v1883_v51 = vpop.permute.xlu0 %1882 }
 0x428   : > { %v1886_v52 = vsel %vm735_vm14, %v1883_v51, %v1885_v50  ;;  %v2397_v50 = vrot.slane %v10527_v14, 1  ;;  %v9712_v51 = vld [vmem:[#allocation3 + $0x1c0] sm:$0xff]   ;;  %v9722_v14 = vld [vmem:[#allocation3 + $0x130] sm:$0xff]  }
 0x429   : > { %8677 = vmatmul.mubr.bf16.vlgmr.msra.gmra.mxu0 %v1886_v52  ;;  %v9713_v52 = vld [vmem:[#allocation3 + $0x238] sm:$0xff]  }
 0x42a   : > { %8701 = vmatpush3.bf16.msra.mxu0 %v9678_v48  ;;  %8716 = vmatprep.mubr.msk.bf16.mxu0 %vm10116_vm0, %v10115_v0  ;;  %v2396_v48 = vrot.slane %v7550_v43, 1 }
 0x42b   : > { %v1998_v57 = vpop.permute.xlu1 %1997  ;;  %v1996_v58 = vpop.permute.xlu0 %1995  ;;  %8702 = vmatprep.subr.bf16.mxu0 %v10115_v0 }
 0x42c   : > { %v1999_v60 = vsel %vm850_vm15, %v1996_v58, %v1998_v57  ;;  %v9714_v58 = vld [vmem:[#allocation3 + $0x230] sm:$0xff]  }
 0x42d   : > { %8697 = vmatmul.mubr.bf16.vlgmr.msra.gmra.mxu1 %v1999_v60 }
 0x42e   : > { %8703 = vmatpush3.bf16.msra.mxu0 %v9679_v54  ;;  %8721 = vmatpush3.bf16.msra.mxu1 %v9680_v56  ;;  %v2398_v54 = vsel %vm1252_vm13, %v2396_v48, %v2397_v50 }
 0x42f   : > { %8704 = vmatprep.subr.bf16.mxu0 %v10115_v0  ;;  %8722 = vmatprep.subr.bf16.mxu1 %v10115_v0  ;;  %v2282_v26 = vpop.permute.xlu1 %2281  ;;  %v2280_v27 = vpop.permute.xlu0 %2279 }
 0x430   : > { %8736 = vmatprep.mubr.msk.bf16.mxu1 %vm10116_vm0, %v10115_v0  ;;  %v2283_v31 = vsel %vm850_vm15, %v2280_v27, %v2282_v26  ;;  %v9732_v27 = vld [vmem:[#allocation3 + $0x20] sm:$0xff]  }
 0x432   : > { %8705 = vmatpush3.bf16.msra.mxu0 %v9681_v62  ;;  %8723 = vmatpush3.bf16.msra.mxu1 %v9682_v63  ;;  %v9715_v62 = vld [vmem:[#allocation3 + $0x228] sm:$0xff]   ;;  %v9716_v63 = vld [vmem:[#allocation3 + $0x220] sm:$0xff]  }
 0x433   : > { %8706 = vmatprep.subr.bf16.mxu0 %v10115_v0  ;;  %8724 = vmatprep.subr.bf16.mxu1 %v10115_v0  ;;  %v2522_v56 = vpop.permute.xlu1 %2521  ;;  %v2520_v57 = vpop.permute.xlu0 %2519 }
 0x434   : > { %v2523_v60 = vsel %vm735_vm14, %v2520_v57, %v2522_v56 }
 0x436   : > { %8707 = vmatpush3.bf16.msra.mxu0 %v9683_v1  ;;  %8725 = vmatpush3.bf16.msra.mxu1 %v9684_v3 }
 0x437   : > { %8708 = vmatprep.subr.bf16.mxu0 %v10115_v0  ;;  %8726 = vmatprep.subr.bf16.mxu1 %v10115_v0  ;;  %v2633_v11 = vpop.permute.xlu0 %2632 }
 0x43a   : > { %8709 = vmatpush3.bf16.msra.mxu0 %v9685_v4  ;;  %8727 = vmatpush3.bf16.msra.mxu1 %v9686_v5 }
 0x43b   : > { %8710 = vmatprep.subr.bf16.mxu0 %v10115_v0  ;;  %8728 = vmatprep.subr.bf16.mxu1 %v10115_v0 }
 0x43e   : > { %8711 = vmatpush3.bf16.msra.mxu0 %v9687_v9  ;;  %8729 = vmatpush3.bf16.msra.mxu1 %v9688_v10  ;;  %v9720_v9 = vld [vmem:[#allocation3 + $0x200] sm:$0xff]   ;;  %v2635_v10 = vpop.permute.xlu1 %2634 }
 0x43f   : > { %8712 = vmatprep.subr.bf16.mxu0 %v10115_v0  ;;  %8730 = vmatprep.subr.bf16.mxu1 %v10115_v0 }
 0x442   : > { %8713 = vmatpush3.bf16.msra.mxu0 %v9689_v12  ;;  %8731 = vmatpush3.bf16.msra.mxu1 %v9690_v13  ;;  %v2636_v12 = vsel %vm850_vm15, %v2633_v11, %v2635_v10  ;;  %v9721_v13 = vld [vmem:[#allocation3 + $0x138] sm:$0xff]  }
 0x443   : > { %8714 = vmatprep.subr.bf16.mxu0 %v10115_v0  ;;  %8732 = vmatprep.subr.bf16.mxu1 %v10115_v0 }
 0x446   : > { %8715 = vmatpush3.bf16.msra.mxu0 %v9691_v16  ;;  %8733 = vmatpush3.bf16.msra.mxu1 %v9692_v17  ;;  %v9724_v16 = vld [vmem:[#allocation3 + $0x120] sm:$0xff]   ;;  %v9725_v17 = vld [vmem:[#allocation3 + $0x118] sm:$0xff]  }
 0x447   : > { %8734 = vmatprep.subr.bf16.mxu1 %v10115_v0  ;;  %8740 = vmatprep.subr.bf16.mxu0 %v10115_v0 }
 0x449   : > { %8717 = vmatmul.mubr.bf16.vlgmr.msra.gmra.mxu0 %v2130_v25 }
 0x44a   : > { %8735 = vmatpush3.bf16.msra.mxu1 %v9695_v22  ;;  %8741 = vmatpush3.bf16.msra.mxu0 %v9696_v23  ;;  %v9730_v22 = vld [vmem:[#allocation3 + $0x30] sm:$0xff]   ;;  %v9731_v23 = vld [vmem:[#allocation3 + $0x28] sm:$0xff]  }
 0x44b   : > { %8742 = vmatprep.subr.bf16.mxu0 %v10115_v0  ;;  %8760 = vmatprep.subr.bf16.mxu1 %v10115_v0 }
 0x44c   : > { %8756 = vmatprep.mubr.msk.bf16.mxu0 %vm10116_vm0, %v10115_v0 }
 0x44d   : > { %8737 = vmatmul.mubr.bf16.vlgmr.msra.gmra.mxu1 %v2283_v31 }
 0x44e   : > { %8743 = vmatpush3.bf16.msra.mxu0 %v9697_v28  ;;  %8761 = vmatpush3.bf16.msra.mxu1 %v9698_v30 }
 0x44f   : > { %8744 = vmatprep.subr.bf16.mxu0 %v10115_v0  ;;  %8762 = vmatprep.subr.bf16.mxu1 %v10115_v0 }
 0x450   : > { %8776 = vmatprep.mubr.msk.bf16.mxu1 %vm10116_vm0, %v10115_v0 }
 0x452   : > { %8745 = vmatpush3.bf16.msra.mxu0 %v9699_v32  ;;  %8763 = vmatpush3.bf16.msra.mxu1 %v9700_v33 }
 0x453   : > { %8746 = vmatprep.subr.bf16.mxu0 %v10115_v0  ;;  %8764 = vmatprep.subr.bf16.mxu1 %v10115_v0 }
 0x456   : > { %8747 = vmatpush3.bf16.msra.mxu0 %v9701_v34  ;;  %8765 = vmatpush3.bf16.msra.mxu1 %v9702_v35 }
 0x457   : > { %8748 = vmatprep.subr.bf16.mxu0 %v10115_v0  ;;  %8766 = vmatprep.subr.bf16.mxu1 %v10115_v0 }
 0x45a   : > { %8749 = vmatpush3.bf16.msra.mxu0 %v9703_v36  ;;  %8767 = vmatpush3.bf16.msra.mxu1 %v9704_v37 }
 0x45b   : > { %8750 = vmatprep.subr.bf16.mxu0 %v10115_v0  ;;  %8768 = vmatprep.subr.bf16.mxu1 %v10115_v0 }
 0x45e   : > { %8751 = vmatpush3.bf16.msra.mxu0 %v9705_v38  ;;  %8769 = vmatpush3.bf16.msra.mxu1 %v9706_v39 }
 0x45f   : > { %8752 = vmatprep.subr.bf16.mxu0 %v10115_v0  ;;  %8770 = vmatprep.subr.bf16.mxu1 %v10115_v0 }
 0x462   : > { %8753 = vmatpush3.bf16.msra.mxu0 %v9707_v40  ;;  %8771 = vmatpush3.bf16.msra.mxu1 %v9708_v49 }
 0x463   : > { %8754 = vmatprep.subr.bf16.mxu0 %v10115_v0  ;;  %8772 = vmatprep.subr.bf16.mxu1 %v10115_v0 }
 0x466   : > { %8755 = vmatpush3.bf16.msra.mxu0 %v9709_v45  ;;  %8773 = vmatpush3.bf16.msra.mxu1 %v9710_v47 }
 0x467   : > { %8774 = vmatprep.subr.bf16.mxu1 %v10115_v0  ;;  %8780 = vmatprep.subr.bf16.mxu0 %v10115_v0 }
 0x469   : > { %8757 = vmatmul.mubr.bf16.vlgmr.msra.gmra.mxu0 %v2398_v54 }
 0x46a   : > { %8775 = vmatpush3.bf16.msra.mxu1 %v9712_v51  ;;  %8781 = vmatpush3.bf16.msra.mxu0 %v9713_v52 }
 0x46b   : > { %8782 = vmatprep.subr.bf16.mxu0 %v10115_v0  ;;  %8796 = vmatprep.mubr.msk.bf16.mxu0 %vm10116_vm0, %v10115_v0 }
 0x46c   : > { %8800 = vmatprep.subr.bf16.mxu1 %v10115_v0 }
 0x46d   : > { %8777 = vmatmul.mubr.bf16.vlgmr.msra.gmra.mxu1 %v2523_v60 }
 0x46e   : > { %8783 = vmatpush3.bf16.msra.mxu0 %v9714_v58  ;;  %8816 = vmatprep.mubr.msk.bf16.mxu1 %vm10116_vm0, %v10115_v0 }
 0x46f   : > { %8784 = vmatprep.subr.bf16.mxu0 %v10115_v0  ;;  %8801 = vmatpush3.bf16.msra.mxu1 %v9729_v21 }
 0x470   : > { %8802 = vmatprep.subr.bf16.mxu1 %v10115_v0 }
 0x472   : > { %8785 = vmatpush3.bf16.msra.mxu0 %v9715_v62 }
 0x473   : > { %8786 = vmatprep.subr.bf16.mxu0 %v10115_v0  ;;  %8803 = vmatpush3.bf16.msra.mxu1 %v9730_v22 }
 0x474   : > { %v1760_v1 = vpop.f32.mrf.mxu0  ;;  %8804 = vmatprep.subr.bf16.mxu1 %v10115_v0 }
 0x475   : > { %v1850_v25 = vadd.f32 %v10505_v44, %v1760_v1 }
 0x476   : > { %8787 = vmatpush3.bf16.msra.mxu0 %v9716_v63  ;;  %v8638_v3 = vpop.f32.mrf.mxu0 }
 0x477   : > { %8788 = vmatprep.subr.bf16.mxu0 %v10115_v0  ;;  %8805 = vmatpush3.bf16.msra.mxu1 %v9731_v23  ;;  %v9734_v23 = vld [vmem:[#allocation3 + $0x10] sm:$0xff]  }
 0x478   : > { %v1763_v4 = vpop.f32.mrf.mxu0  ;;  %8806 = vmatprep.subr.bf16.mxu1 %v10115_v0 }
 0x479   : > { %v1853_v31 = vadd.f32 %v10507_v46, %v1763_v4 }
 0x47a   : > { %8789 = vmatpush3.bf16.msra.mxu0 %v9717_v59  ;;  %v8639_v5 = vpop.f32.mrf.mxu0 }
 0x47b   : > { %8790 = vmatprep.subr.bf16.mxu0 %v10115_v0  ;;  %8807 = vmatpush3.bf16.msra.mxu1 %v9732_v27 }
 0x47c   : > { %8808 = vmatprep.subr.bf16.mxu1 %v10115_v0 }
 0x47e   : > { %8791 = vmatpush3.bf16.msra.mxu0 %v9718_v6 }
 0x47f   : > { %8792 = vmatprep.subr.bf16.mxu0 %v10115_v0 }
 0x482   : > { %8793 = vmatpush3.bf16.msra.mxu0 %v9719_v8 }
 0x483   : > { %8794 = vmatprep.subr.bf16.mxu0 %v10115_v0 }
 0x486   : > { %8795 = vmatpush3.bf16.msra.mxu0 %v9720_v9 }
 0x487   : > { %8820 = vmatprep.subr.bf16.mxu0 %v10115_v0 }
 0x489   : > { %8797 = vmatmul.mubr.bf16.vlgmr.msra.gmra.mxu0 %v2636_v12 }
 0x48a   : > { %8836 = vmatprep.mubr.msk.bf16.mxu0 %vm10116_vm0, %v10115_v0  ;;  %8821 = vmatpush3.bf16.msra.mxu0 %v9721_v13 }
 0x48b   : > { %8822 = vmatprep.subr.bf16.mxu0 %v10115_v0 }
 0x48e   : > { %8823 = vmatpush3.bf16.msra.mxu0 %v9722_v14 }
 0x48f   : > { %8824 = vmatprep.subr.bf16.mxu0 %v10115_v0 }
 0x492   : > { %8825 = vmatpush3.bf16.msra.mxu0 %v9723_v15 }
 0x493   : > { %8826 = vmatprep.subr.bf16.mxu0 %v10115_v0 }
 0x496   : > { %8827 = vmatpush3.bf16.msra.mxu0 %v9724_v16 }
 0x497   : > { %8828 = vmatprep.subr.bf16.mxu0 %v10115_v0 }
 0x49a   : > { %8829 = vmatpush3.bf16.msra.mxu0 %v9725_v17 }
 0x49b   : > { %8830 = vmatprep.subr.bf16.mxu0 %v10115_v0 }
 0x49e   : > { %8831 = vmatpush3.bf16.msra.mxu0 %v9726_v18  ;;  %v9733_v18 = vld [vmem:[#allocation3 + $0x18] sm:$0xff]  }
 0x49f   : > { %8832 = vmatprep.subr.bf16.mxu0 %v10115_v0  ;;  %8809 = vmatpush3.bf16.msra.mxu1 %v9733_v18 }
 0x4a0   : > { %8810 = vmatprep.subr.bf16.mxu1 %v10115_v0 }
 0x4a2   : > { %8833 = vmatpush3.bf16.msra.mxu0 %v9727_v19 }
 0x4a3   : > { %8834 = vmatprep.subr.bf16.mxu0 %v10115_v0  ;;  %8811 = vmatpush3.bf16.msra.mxu1 %v9734_v23 }
 0x4a4   : > { %8812 = vmatprep.subr.bf16.mxu1 %v10115_v0 }
 0x4a6   : > { %8835 = vmatpush3.bf16.msra.mxu0 %v9728_v20 }
 0x4a7   : > { %8860 = vmatprep.subr.bf16.mxu0 %v10115_v0 }
 0x4e9   : > { %v1970_v26 = vpop.f32.mrf.mxu0 }
 0x4ea   : > { %v1977_v28 = vadd.f32 %v1970_v26, %v1850_v25 }
 0x4eb   : > { %v8678_v30 = vpop.f32.mrf.mxu0 }
 0x4ec   : > { %v9735_v30 = vld [vmem:[#allocation3 + $0x8] sm:$0xff]  }
 0x4ed   : > { %v1973_v32 = vpop.f32.mrf.mxu0  ;;  %v2083_v33 = vpop.f32.mrf.mxu1  ;;  %8813 = vmatpush3.bf16.msra.mxu1 %v9735_v30 }
 0x4ee   : > { %v1978_v34 = vadd.f32 %v1973_v32, %v1853_v31  ;;  %v2090_v35 = vadd.f32 %v2083_v33, %v1977_v28  ;;  %8814 = vmatprep.subr.bf16.mxu1 %v10115_v0 }
 0x4ef   : > { %v8679_v36 = vpop.f32.mrf.mxu0  ;;  %v8698_v37 = vpop.f32.mrf.mxu1 }
 0x4f1   : > { %v2086_v38 = vpop.f32.mrf.mxu1 }
 0x4f2   : > { %v2091_v44 = vadd.f32 %v2086_v38, %v1978_v34  ;;  %v9736_v34 = vld [vmem:[#allocation3] sm:$0xff]  }
 0x4f3   : > { %v8699_v39 = vpop.f32.mrf.mxu1  ;;  %8815 = vmatpush3.bf16.msra.mxu1 %v9736_v34 }
 0x4f4   : > { %8840 = vmatprep.subr.bf16.mxu1 %v10115_v0  ;;  %v9746_v39 = vld [vmem:[#allocation3 + $0xb0] sm:$0xff]  }
 0x509   : > { %v2214_v40 = vpop.f32.mrf.mxu0 }
 0x50a   : > { %v2221_v62 = vadd.f32 %v2214_v40, %v2090_v35  ;;  %v9748_v40 = vld [vmem:[#allocation3 + $0xa8] sm:$0xff]  }
 0x50b   : > { %v8718_v49 = vpop.f32.mrf.mxu0 }
 0x50c   : > { %v9750_v49 = vld [vmem:[#allocation3 + $0xa0] sm:$0xff]  }
 0x50d   : > { %v2217_v41 = vpop.f32.mrf.mxu0  ;;  %v2367_v43 = vpop.f32.mrf.mxu1 }
 0x50e   : > { %v2374_v63 = vadd.f32 %v2367_v43, %v2221_v62  ;;  %v2222_v1 = vadd.f32 %v2217_v41, %v2091_v44  ;;  %v9744_v44 = vld [vmem:[#allocation3 + $0xb8] sm:$0xff]   ;;  %v9754_v43 = vld [vmem:[#allocation3 + $0x90] sm:$0xff]  }
 0x50f   : > { %v8719_v45 = vpop.f32.mrf.mxu0  ;;  %v8738_v47 = vpop.f32.mrf.mxu1  ;;  %v9752_v41 = vld [vmem:[#allocation3 + $0x98] sm:$0xff]  }
 0x510   : > { %v9756_v45 = vld [vmem:[#allocation3 + $0x88] sm:$0xff]  }
 0x511   : > { %v2370_v48 = vpop.f32.mrf.mxu1 }
 0x512   : > { %v2375_v59 = vadd.f32 %v2370_v48, %v2222_v1 }
 0x513   : > { %v8739_v46 = vpop.f32.mrf.mxu1 }
 0x529   : > { %v2482_v50 = vpop.f32.mrf.mxu0 }
 0x52a   : > { %v2489_v3 = vadd.f32 %v2482_v50, %v2374_v63 }
 0x52b   : > { %v8758_v51 = vpop.f32.mrf.mxu0 }
 0x52d   : > { %v2485_v52 = vpop.f32.mrf.mxu0  ;;  %v2607_v54 = vpop.f32.mrf.mxu1 }
 0x52e   : > { %v2614_v4 = vadd.f32 %v2607_v54, %v2489_v3  ;;  %v2490_v6 = vadd.f32 %v2485_v52, %v2375_v59 }
 0x52f   : > { %v8759_v56 = vpop.f32.mrf.mxu0  ;;  %v8778_v57 = vpop.f32.mrf.mxu1 }
 0x530   : > { %v2776_v57 = vld [vmem:[#allocation2 + $0x10] sm:$0x11] }
 0x531   : > { %v2610_v58 = vpop.f32.mrf.mxu1 }
 0x532   : > { %v2615_v10 = vadd.f32 %v2610_v58, %v2490_v6 }
 0x533   : > { %v8779_v60 = vpop.f32.mrf.mxu1 }
 0x534   : > { %v9757_v60 = vld [vmem:[#allocation3 + $0x80] sm:$0xff]  }
 0x549   : > { %v2720_v5 = vpop.f32.mrf.mxu0 }
 0x54a   : > { %v2727_v8 = vadd.f32 %v2720_v5, %v2614_v4 }
 0x54b   : > { %v8798_v9 = vpop.f32.mrf.mxu0 }
 0x54c   : > { %v2729_v11 = vadd.f32 %v10441_v7, %v2727_v8 }
 0x54d   : > { %v2723_v12 = vpop.f32.mrf.mxu0 }
 0x54e   : > { %v2731_v13 = vmax.f32 %v2729_v11, 0.0  ;;  %v2728_v14 = vadd.f32 %v2723_v12, %v2615_v10 }
 0x54f   : > { %v8799_v15 = vpop.f32.mrf.mxu0 }
 0x550   : > { %v2733_v16 = vadd.f32 %v2731_v13, %v10261_v24  ;;  %v2730_v17 = vadd.f32 %v10441_v7, %v2728_v14  ;;  %v9743_v13 = vld [vmem:[#allocation3 + $0x70] sm:$0xff]  }
 0x552   : > { %v7929_v19 = vpack.c.bf16 %v2733_v16, %v2733_v16  ;;  %v2732_v20 = vmax.f32 %v2730_v17, 0.0 }
 0x554   : > { %v2734_v21 = vadd.f32 %v2732_v20, %v10266_v29  ;;  %v2742_v22 = vshrl.u32 %v7929_v19, 16  ;;  %v2745_v28 = vshll.u32 %v7929_v19, 16 }
 0x556   : > { %v2735_v25 = vpack.c.bf16 %v2734_v21, %v2733_v16  ;;  %v7930_v26 = vpack.c.bf16 %v2734_v21, %v2734_v21  ;;  %v2744_v27 = vrot.slane %v2742_v22, 7 }
 0x558   : > { %8837 = vmatmul.mubr.bf16.vlgmr.msra.gmra.mxu0 %v2735_v25  ;;  %v2747_v31 = vor.u32 %v2745_v28, %v2744_v27  ;;  %v2750_v32 = vshrl.u32 %v7930_v26, 16  ;;  %v2753_v33 = vshll.u32 %v7930_v26, 16  ;;  %v2748_v36 = vrot.slane %v2744_v27, 4  ;;  %v9745_v26 = vld [vmem:[#allocation3 + $0x68] sm:$0xff]  }
 0x559   : > { %8876 = vmatprep.mubr.msk.bf16.mxu0 %vm10116_vm0, %v10115_v0  ;;  %8861 = vmatpush3.bf16.msra.mxu0 %v9744_v44  ;;  %v9755_v44 = vld [vmem:[#allocation3 + $0x40] sm:$0xff]  }
 0x55a   : > { %2758 = vrot.lane.b32.xlu0 %v2747_v31, %s10118_s10  ;;  %v2752_v7 = vrot.slane %v2750_v32, 7  ;;  %8862 = vmatprep.subr.bf16.mxu0 %v10115_v0 }
 0x55c   : > { %v2757_v35 = vrot.slane %v2752_v7, 4  ;;  %v2755_v37 = vor.u32 %v2753_v33, %v2752_v7  ;;  %v9747_v33 = vld [vmem:[#allocation3 + $0x60] sm:$0xff]  }
 0x55d   : > { %8863 = vmatpush3.bf16.msra.mxu0 %v9746_v39 }
 0x55e   : > { %2762 = vrot.lane.b32.xlu0 %v2757_v35, %s10118_s10  ;;  %v2756_v38 = vsel %vm10279_vm10, %v2748_v36, %v2755_v37  ;;  %8864 = vmatprep.subr.bf16.mxu0 %v10115_v0  ;;  %v9749_v36 = vld [vmem:[#allocation3 + $0x58] sm:$0xff]   ;;  %v9751_v37 = vld [vmem:[#allocation3 + $0x50] sm:$0xff]  }
 0x55f   : > { %2760 = vrot.lane.b32.xlu1 %v2756_v38, %s10118_s10  ;;  %v9753_v38 = vld [vmem:[#allocation3 + $0x48] sm:$0xff]  }
 0x561   : > { %8865 = vmatpush3.bf16.msra.mxu0 %v9748_v40 }
 0x562   : > { %8866 = vmatprep.subr.bf16.mxu0 %v10115_v0 }
 0x565   : > { %8867 = vmatpush3.bf16.msra.mxu0 %v9750_v49 }
 0x566   : > { %8868 = vmatprep.subr.bf16.mxu0 %v10115_v0 }
 0x569   : > { %8869 = vmatpush3.bf16.msra.mxu0 %v9752_v41 }
 0x56a   : > { %8870 = vmatprep.subr.bf16.mxu0 %v10115_v0 }
 0x56d   : > { %8871 = vmatpush3.bf16.msra.mxu0 %v9754_v43  ;;  %v9758_v43 = vld [vmem:[#allocation3 + $0xf8] sm:$0xff]  }
 0x56e   : > { %8872 = vmatprep.subr.bf16.mxu0 %v10115_v0 }
 0x571   : > { %8873 = vmatpush3.bf16.msra.mxu0 %v9756_v45 }
 0x572   : > { %8874 = vmatprep.subr.bf16.mxu0 %v10115_v0 }
 0x575   : > { %8875 = vmatpush3.bf16.msra.mxu0 %v9757_v60  ;;  %v9763_v60 = vld [vmem:[#allocation3 + $0xe0] sm:$0xff]  }
 0x576   : > { %8900 = vmatprep.subr.bf16.mxu0 %v10115_v0 }
 0x5cc   : > { %v2759_v47 = vpop.permute.xlu0 %2758 }
 0x5cd   : > { %v2764_v48 = vrot.slane %v2759_v47, 4 }
 0x5cf   : > { %v2767_v46 = vsel %vm455_vm6, %v2764_v48, %v2759_v47 }
 0x5d0   : > { %v10618_v50 = vsel %vm10298_vm7, %v2767_v46, %v10469_v53  ;;  %v2763_v51 = vpop.permute.xlu0 %2762  ;;  %v9742_v53 = vld [vmem:[#allocation3 + $0x78] sm:$0xff]   ;;  %v9759_v46 = vld [vmem:[#allocation3 + $0xf0] sm:$0xff]  }
 0x5d1   : > { %2774 = vst [vmem:[#allocation2] sm:$0xff] %v10618_v50  ;;  %v2766_v52 = vrot.slane %v2763_v51, 4  ;;  %v2761_v54 = vpop.permute.xlu1 %2760 }
 0x5d2   : > { %v2765_v56 = vrot.slane %v2761_v54, 4 }
 0x5d3   : > { %v2769_v58 = vsel %vm455_vm6, %v2766_v52, %v2763_v51  ;;  %v9760_v51 = vld [vmem:[#allocation3 + $0x178] sm:$0xff]  }
 0x5d4   : > { %v2777_v62 = vsel %vm10308_vm12, %v2769_v58, %v2776_v57  ;;  %v2768_v63 = vsel %vm455_vm6, %v2765_v56, %v2761_v54  ;;  %v9761_v57 = vld [vmem:[#allocation3 + $0xe8] sm:$0xff]   ;;  %v9762_v58 = vld [vmem:[#allocation3 + $0x170] sm:$0xff]  }
 0x5d5   : > { %2778 = vst [vmem:[#allocation2 + $0x10] sm:$0x11] %v2777_v62  ;;  %2775 = vst.msk [vmem:[#allocation2 + $0x8] sm:$0xff] %vm10314_vm8, %v2768_v63  ;;  %v9764_v62 = vld [vmem:[#allocation3 + $0x168] sm:$0xff]  }
 0x5d8   : > { %v3632_v18 = vld [vmem:[#allocation2] sm:$0xee] }
 0x5dc   : > { %v2998_v1 = vld [vmem:[#allocation2 + $0x8] sm:$0xff]  ;;  %v3366_v5 = vld [vmem:[#allocation2 + $0x10] sm:$0x11] }
 0x5dd   : > { %v9737_v3 = vld [vmem:[#allocation2] ss:$8 sps:$4 sm:$0xff]   ;;  %v7597_v59 = vcombine.high %v10618_v50, %v2998_v1  ;;  %v7596_v4 = vcombine.low %v10618_v50, %v2998_v1  ;;  %v7627_v6 = vcombine.high %v3366_v5, %v3366_v5  ;;  %v7626_v8 = vcombine.low %v3366_v5, %v3366_v5  ;;  %v9768_v5 = vld [vmem:[#allocation3 + $0x158] sm:$0xff]  }
 0x5de   : > { %8817 = vmatmul.mubr.bf16.vlgmr.msra.gmra.mxu1 %v9737_v3  ;;  %v7646_v19 = vcombine.high %v3632_v18, %v2998_v1  ;;  %v7645_v20 = vcombine.low %v3632_v18, %v2998_v1  ;;  %v10669_v63 = vld [vmem:[#allocation2 + $0x8] sm:$0xf]  ;;  %v9766_v1 = vld [vmem:[#allocation3 + $0x160] sm:$0xff]   ;;  %v3233_v3 = vld [vmem:[#allocation2] sm:$0xf] }
 0x5df   : > { %3025 = vrot.lane.b32.xlu0 %v7597_v59, %s10119_s11  ;;  %3023 = vrot.lane.b32.xlu1 %v7596_v4, %s10119_s11  ;;  %v3411_v9 = vshll.u32 %v7597_v59, 16  ;;  %v3399_v10 = vshll.u32 %v7596_v4, 16  ;;  %v3416_v11 = vshll.u32 %v7627_v6, 16  ;;  %v3404_v12 = vshll.u32 %v7626_v8, 16  ;;  %v9775_v18 = vld [vmem:[#allocation3 + $0x140] sm:$0xff]  }
 0x5e0   : > { %8841 = vmatpush3.bf16.msra.mxu1 %v9742_v53  ;;  %8856 = vmatprep.mubr.msk.bf16.mxu1 %vm10116_vm0, %v10115_v0  ;;  %v3409_v14 = vshrl.u32 %v7597_v59, 16  ;;  %v3397_v16 = vshrl.u32 %v7596_v4, 16  ;;  %v3657_v30 = vrot.slane %v7646_v19, 1  ;;  %v3658_v31 = vrot.slane %v7627_v6, 1  ;;  %v9765_v53 = vld [vmem:[#allocation3 + $0xd8] sm:$0xff]  }
 0x5e1   : > { %v3413_v15 = vrot.slane %v3411_v9, 1  ;;  %v3401_v17 = vrot.slane %v3399_v10, 1  ;;  %8842 = vmatprep.subr.bf16.mxu1 %v10115_v0  ;;  %v3418_v22 = vrot.slane %v3416_v11, 1  ;;  %v3406_v25 = vrot.slane %v3404_v12, 1  ;;  %v9770_v9 = vld [vmem:[#allocation3 + $0x150] sm:$0xff]   ;;  %v9771_v12 = vld [vmem:[#allocation3 + $0xc0] sm:$0xff]  }
 0x5e2   : > { %v3654_v32 = vrot.slane %v7645_v20, 1  ;;  %v3655_v7 = vrot.slane %v7626_v8, 1  ;;  %v3659_v34 = vsel %vm1252_vm13, %v3657_v30, %v3658_v31  ;;  %v9769_v8 = vld [vmem:[#allocation3 + $0xc8] sm:$0xff]   ;;  %v10676_v10 = vld [vmem:[#allocation2 + $0x10] ss:$0 sps:$4 sm:$0x11]  }
 0x5e3   : > { %3138 = vrot.lane.b32.xlu0 %v7597_v59, %s10120_s12  ;;  %3136 = vrot.lane.b32.xlu1 %v7596_v4, %s10120_s12  ;;  %v3414_v21 = vor.u32 %v3413_v15, %v3409_v14  ;;  %v3402_v23 = vor.u32 %v3401_v17, %v3397_v16  ;;  %v7614_v59 = vcombine.low %v3233_v3, %v10669_v63  ;;  %v9767_v4 = vld [vmem:[#allocation3 + $0xd0] sm:$0xff]   ;;  %v3268_v15 = vshll.u32 %v10676_v10, 16  ;;  %v9776_v19 = vld [vmem:[#allocation3 + $0x1b8] sm:$0xff]   ;;  %v9781_v30 = vld [vmem:[#allocation3 + $0x1a0] sm:$0xff]  }
 0x5e4   : > { %8843 = vmatpush3.bf16.msra.mxu1 %v9743_v13  ;;  %v3656_v35 = vsel %vm1252_vm13, %v3654_v32, %v3655_v7  ;;  %v9772_v13 = vld [vmem:[#allocation3 + $0x148] sm:$0xff]   ;;  %v9783_v32 = vld [vmem:[#allocation3 + $0x198] sm:$0xff]   ;;  %v9784_v7 = vld [vmem:[#allocation3 + $0x1e0] sm:$0xff]  }
 0x5e5   : > { %v3419_v27 = vsel %vm972_vm11, %v3414_v21, %v3418_v22  ;;  %v3407_v28 = vsel %vm972_vm11, %v3402_v23, %v3406_v25  ;;  %8844 = vmatprep.subr.bf16.mxu1 %v10115_v0  ;;  %v3263_v6 = vshll.u32 %v7614_v59, 16  ;;  %v3261_v14 = vshrl.u32 %v7614_v59, 16  ;;  %v9777_v23 = vld [vmem:[#allocation3 + $0x1b0] sm:$0xff]   ;;  %v9778_v25 = vld [vmem:[#allocation3 + $0x1f8] sm:$0xff]   ;;  %v9782_v31 = vld [vmem:[#allocation3 + $0x1e8] sm:$0xff]  }
 0x5e6   : > { %v3270_v17 = vrot.slane %v3268_v15, 1  ;;  %v9799_v3 = vld [vmem:[#allocation3 + $0x208] sm:$0xff]   ;;  %v9800_v59 = vld [vmem:[#allocation3 + $0x200] sm:$0xff]  }
 0x5e7   : > { %3422 = vrot.lane.b32.xlu0 %v3419_v27, %s10120_s12  ;;  %3420 = vrot.lane.b32.xlu1 %v3407_v28, %s10120_s12  ;;  %v3265_v11 = vrot.slane %v3263_v6, 1  ;;  %v9779_v27 = vld [vmem:[#allocation3 + $0x1a8] sm:$0xff]   ;;  %v9780_v28 = vld [vmem:[#allocation3 + $0x1f0] sm:$0xff]   ;;  %v9808_v15 = vld [vmem:[#allocation5 + $0x100] sm:$0xff]  }
 0x5e8   : > { %8845 = vmatpush3.bf16.msra.mxu1 %v9745_v26 }
 0x5e9   : > { %8846 = vmatprep.subr.bf16.mxu1 %v10115_v0  ;;  %v3266_v16 = vor.u32 %v3265_v11, %v3261_v14  ;;  %v9804_v11 = vld [vmem:[#allocation5 + $0x120] sm:$0xff]   ;;  %v9807_v14 = vld [vmem:[#allocation5 + $0x108] sm:$0xff]  }
 0x5eb   : > { %3662 = vrot.lane.b32.xlu0 %v3659_v34, %s10119_s11  ;;  %3660 = vrot.lane.b32.xlu1 %v3656_v35, %s10119_s11  ;;  %v3271_v20 = vsel %vm972_vm11, %v3266_v16, %v3270_v17  ;;  %v9809_v16 = vld [vmem:[#allocation5 + $0x38] sm:$0xff]   ;;  %v9810_v17 = vld [vmem:[#allocation5 + $0x30] sm:$0xff]  }
 0x5ec   : > { %8847 = vmatpush3.bf16.msra.mxu1 %v9747_v33  ;;  %v9785_v33 = vld [vmem:[#allocation3 + $0x190] sm:$0xff]  }
 0x5ed   : > { %8848 = vmatprep.subr.bf16.mxu1 %v10115_v0 }
 0x5ef   : > { %3775 = vrot.lane.b32.xlu0 %v3659_v34, %s10120_s12  ;;  %3773 = vrot.lane.b32.xlu1 %v3656_v35, %s10120_s12  ;;  %v9786_v34 = vld [vmem:[#allocation3 + $0x1d8] sm:$0xff]   ;;  %v9787_v35 = vld [vmem:[#allocation3 + $0x188] sm:$0xff]  }
 0x5f0   : > { %8849 = vmatpush3.bf16.msra.mxu1 %v9749_v36  ;;  %v9788_v36 = vld [vmem:[#allocation3 + $0x1d0] sm:$0xff]  }
 0x5f1   : > { %8850 = vmatprep.subr.bf16.mxu1 %v10115_v0 }
 0x5f4   : > { %8851 = vmatpush3.bf16.msra.mxu1 %v9751_v37  ;;  %v3517_v37 = vld [vmem:[#allocation2] sm:$0xe] }
 0x5f5   : > { %8852 = vmatprep.subr.bf16.mxu1 %v10115_v0 }
 0x5f8   : > { %8853 = vmatpush3.bf16.msra.mxu1 %v9753_v38  ;;  %v7636_v38 = vcombine.low %v3517_v37, %v10669_v63 }
 0x5f9   : > { %8854 = vmatprep.subr.bf16.mxu1 %v10115_v0 }
 0x5fc   : > { %8855 = vmatpush3.bf16.msra.mxu1 %v9755_v44  ;;  %v9789_v44 = vld [vmem:[#allocation3 + $0x180] sm:$0xff]  }
 0x5fd   : > { %8880 = vmatprep.subr.bf16.mxu1 %v10115_v0 }
 0x618   : > { %v10654_v39 = vpop.f32.mrf.mxu0 }
 0x61a   : > { %v8838_v40 = vpop.f32.mrf.mxu0 }
 0x61b   : > { %v9790_v40 = vld [vmem:[#allocation3 + $0x1c8] sm:$0xff]  }
 0x61c   : > { %v10656_v49 = vpop.f32.mrf.mxu0 }
 0x61e   : > { %v8839_v41 = vpop.f32.mrf.mxu0 }
 0x61f   : > { %v3537_v41 = vrot.slane %v7636_v38, 1 }
 0x651   : > { %v3026_v45 = vpop.permute.xlu0 %3025  ;;  %v3024_v47 = vpop.permute.xlu1 %3023 }
 0x652   : > { %v3027_v48 = vsel %vm735_vm14, %v3024_v47, %v3026_v45  ;;  %v9792_v45 = vld [vmem:[#allocation3 + $0x1c0] sm:$0xff]   ;;  %v9793_v47 = vld [vmem:[#allocation3 + $0x238] sm:$0xff]  }
 0x653   : > { %8857 = vmatmul.mubr.bf16.vlgmr.msra.gmra.mxu1 %v3027_v48 }
 0x654   : > { %8881 = vmatpush3.bf16.msra.mxu1 %v9758_v43  ;;  %8896 = vmatprep.mubr.msk.bf16.mxu1 %vm10116_vm0, %v10115_v0  ;;  %v3538_v43 = vrot.slane %v10676_v10, 1  ;;  %v9803_v10 = vld [vmem:[#allocation5 + $0x128] sm:$0xff]  }
 0x655   : > { %v3139_v52 = vpop.permute.xlu0 %3138  ;;  %v3137_v54 = vpop.permute.xlu1 %3136  ;;  %8882 = vmatprep.subr.bf16.mxu1 %v10115_v0 }
 0x656   : > { %v3140_v56 = vsel %vm850_vm15, %v3137_v54, %v3139_v52  ;;  %v3539_v48 = vsel %vm1252_vm13, %v3537_v41, %v3538_v43  ;;  %v9794_v52 = vld [vmem:[#allocation3 + $0x230] sm:$0xff]  }
 0x657   : > { %8877 = vmatmul.mubr.bf16.vlgmr.msra.gmra.mxu0 %v3140_v56  ;;  %v9795_v56 = vld [vmem:[#allocation3 + $0x228] sm:$0xff]  }
 0x658   : > { %8883 = vmatpush3.bf16.msra.mxu1 %v9759_v46  ;;  %8901 = vmatpush3.bf16.msra.mxu0 %v9760_v51 }
 0x659   : > { %8884 = vmatprep.subr.bf16.mxu1 %v10115_v0  ;;  %8902 = vmatprep.subr.bf16.mxu0 %v10115_v0  ;;  %v3423_v21 = vpop.permute.xlu0 %3422  ;;  %v3421_v22 = vpop.permute.xlu1 %3420 }
 0x65a   : > { %8916 = vmatprep.mubr.msk.bf16.mxu0 %vm10116_vm0, %v10115_v0  ;;  %v3424_v26 = vsel %vm850_vm15, %v3421_v22, %v3423_v21 }
 0x65c   : > { %8885 = vmatpush3.bf16.msra.mxu1 %v9761_v57  ;;  %8903 = vmatpush3.bf16.msra.mxu0 %v9762_v58  ;;  %v9796_v57 = vld [vmem:[#allocation3 + $0x220] sm:$0xff]  }
 0x65d   : > { %8886 = vmatprep.subr.bf16.mxu1 %v10115_v0  ;;  %8904 = vmatprep.subr.bf16.mxu0 %v10115_v0  ;;  %v3663_v46 = vpop.permute.xlu0 %3662  ;;  %v3661_v51 = vpop.permute.xlu1 %3660 }
 0x65e   : > { %v3664_v54 = vsel %vm735_vm14, %v3661_v51, %v3663_v46 }
 0x660   : > { %8887 = vmatpush3.bf16.msra.mxu1 %v9763_v60  ;;  %8905 = vmatpush3.bf16.msra.mxu0 %v9764_v62  ;;  %v9797_v62 = vld [vmem:[#allocation3 + $0x218] sm:$0xff]  }
 0x661   : > { %8888 = vmatprep.subr.bf16.mxu1 %v10115_v0  ;;  %8906 = vmatprep.subr.bf16.mxu0 %v10115_v0 }
 0x664   : > { %8889 = vmatpush3.bf16.msra.mxu1 %v9765_v53  ;;  %8907 = vmatpush3.bf16.msra.mxu0 %v9766_v1  ;;  %v9798_v1 = vld [vmem:[#allocation3 + $0x210] sm:$0xff]  }
 0x665   : > { %8890 = vmatprep.subr.bf16.mxu1 %v10115_v0  ;;  %8908 = vmatprep.subr.bf16.mxu0 %v10115_v0 }
 0x668   : > { %8891 = vmatpush3.bf16.msra.mxu1 %v9767_v4  ;;  %8909 = vmatpush3.bf16.msra.mxu0 %v9768_v5  ;;  %v3776_v4 = vpop.permute.xlu0 %3775  ;;  %v3774_v5 = vpop.permute.xlu1 %3773 }
 0x669   : > { %8892 = vmatprep.subr.bf16.mxu1 %v10115_v0  ;;  %8910 = vmatprep.subr.bf16.mxu0 %v10115_v0  ;;  %v3777_v6 = vsel %vm850_vm15, %v3774_v5, %v3776_v4  ;;  %v10041_v4 = vld [vmem:[%s11196_s4] ss:$0 sm:$0xff] }
 0x66c   : > { %8893 = vmatpush3.bf16.msra.mxu1 %v9769_v8  ;;  %8911 = vmatpush3.bf16.msra.mxu0 %v9770_v9  ;;  %v9801_v8 = vld [vmem:[#allocation5 + $0x138] sm:$0xff]   ;;  %v9802_v9 = vld [vmem:[#allocation5 + $0x130] sm:$0xff]  }
 0x66d   : > { %8894 = vmatprep.subr.bf16.mxu1 %v10115_v0  ;;  %8912 = vmatprep.subr.bf16.mxu0 %v10115_v0 }
 0x670   : > { %8895 = vmatpush3.bf16.msra.mxu1 %v9771_v12  ;;  %8913 = vmatpush3.bf16.msra.mxu0 %v9772_v13  ;;  %v9805_v12 = vld [vmem:[#allocation5 + $0x118] sm:$0xff]   ;;  %v9806_v13 = vld [vmem:[#allocation5 + $0x110] sm:$0xff]  }
 0x671   : > { %8914 = vmatprep.subr.bf16.mxu0 %v10115_v0  ;;  %8920 = vmatprep.subr.bf16.mxu1 %v10115_v0 }
 0x673   : > { %8897 = vmatmul.mubr.bf16.vlgmr.msra.gmra.mxu1 %v3271_v20 }
 0x674   : > { %8915 = vmatpush3.bf16.msra.mxu0 %v9775_v18  ;;  %8921 = vmatpush3.bf16.msra.mxu1 %v9776_v19  ;;  %v9811_v18 = vld [vmem:[#allocation5 + $0x28] sm:$0xff]   ;;  %v9812_v19 = vld [vmem:[#allocation5 + $0x20] sm:$0xff]  }
 0x675   : > { %8922 = vmatprep.subr.bf16.mxu1 %v10115_v0  ;;  %8940 = vmatprep.subr.bf16.mxu0 %v10115_v0 }
 0x676   : > { %8936 = vmatprep.mubr.msk.bf16.mxu1 %vm10116_vm0, %v10115_v0 }
 0x677   : > { %8917 = vmatmul.mubr.bf16.vlgmr.msra.gmra.mxu0 %v3424_v26 }
 0x678   : > { %8923 = vmatpush3.bf16.msra.mxu1 %v9777_v23  ;;  %8941 = vmatpush3.bf16.msra.mxu0 %v9778_v25 }
 0x679   : > { %8924 = vmatprep.subr.bf16.mxu1 %v10115_v0  ;;  %8942 = vmatprep.subr.bf16.mxu0 %v10115_v0 }
 0x67a   : > { %8956 = vmatprep.mubr.msk.bf16.mxu0 %vm10116_vm0, %v10115_v0 }
 0x67c   : > { %8925 = vmatpush3.bf16.msra.mxu1 %v9779_v27  ;;  %8943 = vmatpush3.bf16.msra.mxu0 %v9780_v28 }
 0x67d   : > { %8926 = vmatprep.subr.bf16.mxu1 %v10115_v0  ;;  %8944 = vmatprep.subr.bf16.mxu0 %v10115_v0 }
 0x680   : > { %8927 = vmatpush3.bf16.msra.mxu1 %v9781_v30  ;;  %8945 = vmatpush3.bf16.msra.mxu0 %v9782_v31 }
 0x681   : > { %8928 = vmatprep.subr.bf16.mxu1 %v10115_v0  ;;  %8946 = vmatprep.subr.bf16.mxu0 %v10115_v0 }
 0x684   : > { %8929 = vmatpush3.bf16.msra.mxu1 %v9783_v32  ;;  %8947 = vmatpush3.bf16.msra.mxu0 %v9784_v7 }
 0x685   : > { %8930 = vmatprep.subr.bf16.mxu1 %v10115_v0  ;;  %8948 = vmatprep.subr.bf16.mxu0 %v10115_v0 }
 0x688   : > { %8931 = vmatpush3.bf16.msra.mxu1 %v9785_v33  ;;  %8949 = vmatpush3.bf16.msra.mxu0 %v9786_v34 }
 0x689   : > { %8932 = vmatprep.subr.bf16.mxu1 %v10115_v0  ;;  %8950 = vmatprep.subr.bf16.mxu0 %v10115_v0 }
 0x68c   : > { %8933 = vmatpush3.bf16.msra.mxu1 %v9787_v35  ;;  %8951 = vmatpush3.bf16.msra.mxu0 %v9788_v36 }
 0x68d   : > { %8934 = vmatprep.subr.bf16.mxu1 %v10115_v0  ;;  %8952 = vmatprep.subr.bf16.mxu0 %v10115_v0 }
 0x690   : > { %8935 = vmatpush3.bf16.msra.mxu1 %v9789_v44  ;;  %8953 = vmatpush3.bf16.msra.mxu0 %v9790_v40 }
 0x691   : > { %8954 = vmatprep.subr.bf16.mxu0 %v10115_v0  ;;  %8960 = vmatprep.subr.bf16.mxu1 %v10115_v0 }
 0x693   : > { %8937 = vmatmul.mubr.bf16.vlgmr.msra.gmra.mxu1 %v3539_v48 }
 0x694   : > { %8955 = vmatpush3.bf16.msra.mxu0 %v9792_v45  ;;  %8961 = vmatpush3.bf16.msra.mxu1 %v9793_v47 }
 0x695   : > { %8962 = vmatprep.subr.bf16.mxu1 %v10115_v0  ;;  %8976 = vmatprep.mubr.msk.bf16.mxu1 %vm10116_vm0, %v10115_v0 }
 0x696   : > { %8980 = vmatprep.subr.bf16.mxu0 %v10115_v0 }
 0x697   : > { %8957 = vmatmul.mubr.bf16.vlgmr.msra.gmra.mxu0 %v3664_v54 }
 0x698   : > { %8963 = vmatpush3.bf16.msra.mxu1 %v9794_v52  ;;  %8996 = vmatprep.mubr.msk.bf16.mxu0 %vm10116_vm0, %v10115_v0 }
 0x699   : > { %8964 = vmatprep.subr.bf16.mxu1 %v10115_v0  ;;  %8981 = vmatpush3.bf16.msra.mxu0 %v9809_v16  ;;  %v9814_v16 = vld [vmem:[#allocation5 + $0x10] sm:$0xff]  }
 0x69a   : > { %8982 = vmatprep.subr.bf16.mxu0 %v10115_v0 }
 0x69c   : > { %8965 = vmatpush3.bf16.msra.mxu1 %v9795_v56 }
 0x69d   : > { %8966 = vmatprep.subr.bf16.mxu1 %v10115_v0  ;;  %8983 = vmatpush3.bf16.msra.mxu0 %v9810_v17 }
 0x69e   : > { %v2901_v58 = vpop.f32.mrf.mxu1  ;;  %8984 = vmatprep.subr.bf16.mxu0 %v10115_v0 }
 0x69f   : > { %v2991_v20 = vadd.f32 %v10654_v39, %v2901_v58 }
 0x6a0   : > { %8967 = vmatpush3.bf16.msra.mxu1 %v9796_v57  ;;  %v8818_v60 = vpop.f32.mrf.mxu1 }
 0x6a1   : > { %8968 = vmatprep.subr.bf16.mxu1 %v10115_v0  ;;  %8985 = vmatpush3.bf16.msra.mxu0 %v9811_v18 }
 0x6a2   : > { %v2904_v63 = vpop.f32.mrf.mxu1  ;;  %8986 = vmatprep.subr.bf16.mxu0 %v10115_v0 }
 0x6a3   : > { %v2994_v25 = vadd.f32 %v10656_v49, %v2904_v63 }
 0x6a4   : > { %8969 = vmatpush3.bf16.msra.mxu1 %v9797_v62  ;;  %v8819_v53 = vpop.f32.mrf.mxu1 }
 0x6a5   : > { %8970 = vmatprep.subr.bf16.mxu1 %v10115_v0  ;;  %8987 = vmatpush3.bf16.msra.mxu0 %v9812_v19 }
 0x6a6   : > { %8988 = vmatprep.subr.bf16.mxu0 %v10115_v0 }
 0x6a8   : > { %8971 = vmatpush3.bf16.msra.mxu1 %v9798_v1 }
 0x6a9   : > { %8972 = vmatprep.subr.bf16.mxu1 %v10115_v0 }
 0x6ac   : > { %8973 = vmatpush3.bf16.msra.mxu1 %v9799_v3 }
 0x6ad   : > { %8974 = vmatprep.subr.bf16.mxu1 %v10115_v0 }
 0x6b0   : > { %8975 = vmatpush3.bf16.msra.mxu1 %v9800_v59 }
 0x6b1   : > { %9000 = vmatprep.subr.bf16.mxu1 %v10115_v0 }
 0x6b3   : > { %8977 = vmatmul.mubr.bf16.vlgmr.msra.gmra.mxu1 %v3777_v6 }
 0x6b4   : > { %9016 = vmatprep.mubr.msk.bf16.mxu1 %vm10116_vm0, %v10115_v0  ;;  %9001 = vmatpush3.bf16.msra.mxu1 %v9801_v8 }
 0x6b5   : > { %9002 = vmatprep.subr.bf16.mxu1 %v10115_v0 }
 0x6b8   : > { %9003 = vmatpush3.bf16.msra.mxu1 %v9802_v9 }
 0x6b9   : > { %9004 = vmatprep.subr.bf16.mxu1 %v10115_v0 }
 0x6bc   : > { %9005 = vmatpush3.bf16.msra.mxu1 %v9803_v10 }
 0x6bd   : > { %9006 = vmatprep.subr.bf16.mxu1 %v10115_v0 }
 0x6c0   : > { %9007 = vmatpush3.bf16.msra.mxu1 %v9804_v11  ;;  %v9813_v11 = vld [vmem:[#allocation5 + $0x18] sm:$0xff]  }
 0x6c1   : > { %9008 = vmatprep.subr.bf16.mxu1 %v10115_v0  ;;  %8989 = vmatpush3.bf16.msra.mxu0 %v9813_v11 }
 0x6c2   : > { %8990 = vmatprep.subr.bf16.mxu0 %v10115_v0 }
 0x6c4   : > { %9009 = vmatpush3.bf16.msra.mxu1 %v9805_v12 }
 0x6c5   : > { %9010 = vmatprep.subr.bf16.mxu1 %v10115_v0  ;;  %8991 = vmatpush3.bf16.msra.mxu0 %v9814_v16 }
 0x6c6   : > { %8992 = vmatprep.subr.bf16.mxu0 %v10115_v0 }
 0x6c8   : > { %9011 = vmatpush3.bf16.msra.mxu1 %v9806_v13 }
 0x6c9   : > { %9012 = vmatprep.subr.bf16.mxu1 %v10115_v0 }
 0x6cc   : > { %9013 = vmatpush3.bf16.msra.mxu1 %v9807_v14 }
 0x6cd   : > { %9014 = vmatprep.subr.bf16.mxu1 %v10115_v0 }
 0x6d0   : > { %9015 = vmatpush3.bf16.msra.mxu1 %v9808_v15 }
 0x6d1   : > { %9040 = vmatprep.subr.bf16.mxu1 %v10115_v0 }
 0x713   : > { %v3111_v21 = vpop.f32.mrf.mxu1 }
 0x714   : > { %v3118_v22 = vadd.f32 %v3111_v21, %v2991_v20  ;;  %v9815_v21 = vld [vmem:[#allocation5 + $0x8] sm:$0xff]  }
 0x715   : > { %v8858_v23 = vpop.f32.mrf.mxu1  ;;  %8993 = vmatpush3.bf16.msra.mxu0 %v9815_v21 }
 0x716   : > { %8994 = vmatprep.subr.bf16.mxu0 %v10115_v0 }
 0x717   : > { %v3114_v26 = vpop.f32.mrf.mxu1  ;;  %v3224_v27 = vpop.f32.mrf.mxu0 }
 0x718   : > { %v3119_v28 = vadd.f32 %v3114_v26, %v2994_v25  ;;  %v3231_v30 = vadd.f32 %v3224_v27, %v3118_v22  ;;  %v9816_v27 = vld [vmem:[#allocation5] sm:$0xff]  }
 0x719   : > { %v8859_v31 = vpop.f32.mrf.mxu1  ;;  %v8878_v32 = vpop.f32.mrf.mxu0  ;;  %8995 = vmatpush3.bf16.msra.mxu0 %v9816_v27 }
 0x71a   : > { %9020 = vmatprep.subr.bf16.mxu0 %v10115_v0 }
 0x71b   : > { %v3227_v7 = vpop.f32.mrf.mxu0 }
 0x71c   : > { %v3232_v33 = vadd.f32 %v3227_v7, %v3119_v28  ;;  %v9824_v7 = vld [vmem:[#allocation5 + $0xb8] sm:$0xff]  }
 0x71d   : > { %v8879_v34 = vpop.f32.mrf.mxu0 }
 0x71e   : > { %v9828_v34 = vld [vmem:[#allocation5 + $0xa8] sm:$0xff]  }
 0x733   : > { %v3355_v39 = vpop.f32.mrf.mxu1 }
 0x734   : > { %v3362_v54 = vadd.f32 %v3355_v39, %v3231_v30  ;;  %v9830_v39 = vld [vmem:[#allocation5 + $0xa0] sm:$0xff]  }
 0x735   : > { %v8898_v35 = vpop.f32.mrf.mxu1 }
 0x736   : > { %v9832_v35 = vld [vmem:[#allocation5 + $0x98] sm:$0xff]  }
 0x737   : > { %v3358_v36 = vpop.f32.mrf.mxu1  ;;  %v3508_v37 = vpop.f32.mrf.mxu0 }
 0x738   : > { %v3515_v56 = vadd.f32 %v3508_v37, %v3362_v54  ;;  %v3363_v57 = vadd.f32 %v3358_v36, %v3232_v33  ;;  %v9826_v33 = vld [vmem:[#allocation5 + $0xb0] sm:$0xff]   ;;  %v9836_v37 = vld [vmem:[#allocation5 + $0x88] sm:$0xff]  }
 0x739   : > { %v8899_v38 = vpop.f32.mrf.mxu1  ;;  %v8918_v44 = vpop.f32.mrf.mxu0  ;;  %v9834_v36 = vld [vmem:[#allocation5 + $0x90] sm:$0xff]  }
 0x73b   : > { %v3511_v40 = vpop.f32.mrf.mxu0 }
 0x73c   : > { %v3516_v60 = vadd.f32 %v3511_v40, %v3363_v57 }
 0x73d   : > { %v8919_v41 = vpop.f32.mrf.mxu0 }
 0x753   : > { %v3623_v49 = vpop.f32.mrf.mxu1 }
 0x754   : > { %v3630_v58 = vadd.f32 %v3623_v49, %v3515_v56 }
 0x755   : > { %v8938_v43 = vpop.f32.mrf.mxu1 }
 0x757   : > { %v3626_v45 = vpop.f32.mrf.mxu1  ;;  %v3748_v47 = vpop.f32.mrf.mxu0 }
 0x758   : > { %v3755_v62 = vadd.f32 %v3748_v47, %v3630_v58  ;;  %v3631_v53 = vadd.f32 %v3626_v45, %v3516_v60 }
 0x759   : > { %v8939_v48 = vpop.f32.mrf.mxu1  ;;  %v8958_v46 = vpop.f32.mrf.mxu0 }
 0x75a   : > { %v3915_v48 = vld [vmem:[#allocation2 + $0x10] sm:$0x11] }
 0x75b   : > { %v3751_v51 = vpop.f32.mrf.mxu0 }
 0x75c   : > { %v3756_v59 = vadd.f32 %v3751_v51, %v3631_v53  ;;  %v9837_v51 = vld [vmem:[#allocation5 + $0x80] sm:$0xff]  }
 0x75d   : > { %v8959_v52 = vpop.f32.mrf.mxu0 }
 0x773   : > { %v3861_v63 = vpop.f32.mrf.mxu1 }
 0x774   : > { %v3868_v1 = vadd.f32 %v3861_v63, %v3755_v62 }
 0x775   : > { %v8978_v3 = vpop.f32.mrf.mxu1 }
 0x776   : > { %v3870_v5 = vadd.f32 %v10041_v4, %v3868_v1 }
 0x777   : > { %v3864_v6 = vpop.f32.mrf.mxu1 }
 0x778   : > { %v10744_v8 = vmax.f32 %v3870_v5, 0.0  ;;  %v3869_v9 = vadd.f32 %v3864_v6, %v3756_v59  ;;  %v9823_v5 = vld [vmem:[#allocation5 + $0x70] sm:$0xff]  }
 0x779   : > { %v8979_v10 = vpop.f32.mrf.mxu1 }
 0x77a   : > { %v3871_v12 = vadd.f32 %v10041_v4, %v3869_v9  ;;  %v7931_v13 = vpack.c.bf16 %v10744_v8, %v10744_v8 }
 0x77c   : > { %v10748_v14 = vmax.f32 %v3871_v12, 0.0  ;;  %v3881_v15 = vshrl.u32 %v7931_v13, 16  ;;  %v3884_v19 = vshll.u32 %v7931_v13, 16 }
 0x77e   : > { %v3874_v17 = vpack.c.bf16 %v10748_v14, %v10744_v8  ;;  %v3883_v18 = vrot.slane %v3881_v15, 7  ;;  %v7932_v20 = vpack.c.bf16 %v10748_v14, %v10748_v14 }
 0x780   : > { %9017 = vmatmul.mubr.bf16.vlgmr.msra.gmra.mxu1 %v3874_v17  ;;  %v3886_v22 = vor.u32 %v3884_v19, %v3883_v18  ;;  %v3889_v23 = vshrl.u32 %v7932_v20, 16  ;;  %v3892_v26 = vshll.u32 %v7932_v20, 16  ;;  %v3887_v30 = vrot.slane %v3883_v18, 4  ;;  %v9825_v20 = vld [vmem:[#allocation5 + $0x68] sm:$0xff]  }
 0x781   : > { %9056 = vmatprep.mubr.msk.bf16.mxu1 %vm10116_vm0, %v10115_v0  ;;  %9041 = vmatpush3.bf16.msra.mxu1 %v9824_v7  ;;  %v9831_v7 = vld [vmem:[#allocation5 + $0x50] sm:$0xff]  }
 0x782   : > { %3897 = vrot.lane.b32.xlu1 %v3886_v22, %s10118_s10  ;;  %v3891_v25 = vrot.slane %v3889_v23, 7  ;;  %9042 = vmatprep.subr.bf16.mxu1 %v10115_v0 }
 0x784   : > { %v3896_v28 = vrot.slane %v3891_v25, 4  ;;  %v3894_v31 = vor.u32 %v3892_v26, %v3891_v25 }
 0x785   : > { %9043 = vmatpush3.bf16.msra.mxu1 %v9826_v33  ;;  %v9833_v33 = vld [vmem:[#allocation5 + $0x48] sm:$0xff]  }
 0x786   : > { %3901 = vrot.lane.b32.xlu1 %v3896_v28, %s10118_s10  ;;  %v3895_v32 = vsel %vm10279_vm10, %v3887_v30, %v3894_v31  ;;  %9044 = vmatprep.subr.bf16.mxu1 %v10115_v0  ;;  %v9827_v28 = vld [vmem:[#allocation5 + $0x60] sm:$0xff]  }
 0x787   : > { %3899 = vrot.lane.b32.xlu0 %v3895_v32, %s10118_s10  ;;  %v9829_v32 = vld [vmem:[#allocation5 + $0x58] sm:$0xff]  }
 0x789   : > { %9045 = vmatpush3.bf16.msra.mxu1 %v9828_v34  ;;  %v9835_v34 = vld [vmem:[#allocation5 + $0x40] sm:$0xff]  }
 0x78a   : > { %9046 = vmatprep.subr.bf16.mxu1 %v10115_v0 }
 0x78d   : > { %9047 = vmatpush3.bf16.msra.mxu1 %v9830_v39 }
 0x78e   : > { %9048 = vmatprep.subr.bf16.mxu1 %v10115_v0 }
 0x791   : > { %9049 = vmatpush3.bf16.msra.mxu1 %v9832_v35 }
 0x792   : > { %9050 = vmatprep.subr.bf16.mxu1 %v10115_v0 }
 0x795   : > { %9051 = vmatpush3.bf16.msra.mxu1 %v9834_v36 }
 0x796   : > { %9052 = vmatprep.subr.bf16.mxu1 %v10115_v0 }
 0x799   : > { %9053 = vmatpush3.bf16.msra.mxu1 %v9836_v37 }
 0x79a   : > { %9054 = vmatprep.subr.bf16.mxu1 %v10115_v0 }
 0x79d   : > { %9055 = vmatpush3.bf16.msra.mxu1 %v9837_v51  ;;  %v9841_v51 = vld [vmem:[#allocation5 + $0xe8] sm:$0xff]  }
 0x79e   : > { %9080 = vmatprep.subr.bf16.mxu1 %v10115_v0 }
 0x7f4   : > { %v3898_v38 = vpop.permute.xlu1 %3897 }
 0x7f5   : > { %v3903_v44 = vrot.slane %v3898_v38, 4 }
 0x7f7   : > { %v3906_v40 = vsel %vm455_vm6, %v3903_v44, %v3898_v38  ;;  %v9838_v38 = vld [vmem:[#allocation5 + $0xf8] sm:$0xff]  }
 0x7f8   : > { %v10776_v41 = vsel %vm10298_vm7, %v3906_v40, %v10618_v50  ;;  %v3902_v49 = vpop.permute.xlu1 %3901  ;;  %v9822_v50 = vld [vmem:[#allocation5 + $0x78] sm:$0xff]  }
 0x7f9   : > { %3913 = vst [vmem:[#allocation2] sm:$0xff] %v10776_v41  ;;  %v3905_v43 = vrot.slane %v3902_v49, 4  ;;  %v3900_v45 = vpop.permute.xlu0 %3899 }
 0x7fa   : > { %v3904_v47 = vrot.slane %v3900_v45, 4 }
 0x7fb   : > { %v3908_v46 = vsel %vm455_vm6, %v3905_v43, %v3902_v49  ;;  %v9839_v43 = vld [vmem:[#allocation5 + $0xf0] sm:$0xff]  }
 0x7fc   : > { %v3916_v52 = vsel %vm10308_vm12, %v3908_v46, %v3915_v48  ;;  %v3907_v54 = vsel %vm455_vm6, %v3904_v47, %v3900_v45  ;;  %v9840_v45 = vld [vmem:[#allocation5 + $0x178] sm:$0xff]  }
 0x7fd   : > { %3917 = vst [vmem:[#allocation2 + $0x10] sm:$0x11] %v3916_v52  ;;  %3914 = vst.msk [vmem:[#allocation2 + $0x8] sm:$0xff] %vm10314_vm8, %v3907_v54  ;;  %v9842_v52 = vld [vmem:[#allocation5 + $0x170] sm:$0xff]   ;;  %v9843_v54 = vld [vmem:[#allocation5 + $0xe0] sm:$0xff]  }
 0x800   : > { %v4777_v12 = vld [vmem:[#allocation2] sm:$0xee] }
 0x804   : > { %v4138_v56 = vld [vmem:[#allocation2 + $0x8] sm:$0xff]  ;;  %v4509_v62 = vld [vmem:[#allocation2 + $0x10] sm:$0x11] }
 0x805   : > { %v9817_v57 = vld [vmem:[#allocation2] ss:$8 sps:$4 sm:$0xff]   ;;  %v7683_v58 = vcombine.high %v10776_v41, %v4138_v56  ;;  %v7682_v60 = vcombine.low %v10776_v41, %v4138_v56  ;;  %v7713_v63 = vcombine.high %v4509_v62, %v4509_v62  ;;  %v7712_v53 = vcombine.low %v4509_v62, %v4509_v62 }
 0x806   : > { %8997 = vmatmul.mubr.bf16.vlgmr.msra.gmra.mxu0 %v9817_v57  ;;  %v7732_v13 = vcombine.high %v4777_v12, %v4138_v56  ;;  %v7731_v15 = vcombine.low %v4777_v12, %v4138_v56  ;;  %v10827_v56 = vld [vmem:[#allocation2 + $0x8] sm:$0xf]  ;;  %v9845_v57 = vld [vmem:[#allocation5 + $0xd8] sm:$0xff]  }
 0x807   : > { %4166 = vrot.lane.b32.xlu1 %v7683_v58, %s10119_s11  ;;  %4164 = vrot.lane.b32.xlu0 %v7682_v60, %s10119_s11  ;;  %v4555_v1 = vshll.u32 %v7683_v58, 16  ;;  %v4543_v3 = vshll.u32 %v7682_v60, 16  ;;  %v4560_v59 = vshll.u32 %v7713_v63, 16  ;;  %v4548_v4 = vshll.u32 %v7712_v53, 16 }
 0x808   : > { %9021 = vmatpush3.bf16.msra.mxu0 %v9822_v50  ;;  %9036 = vmatprep.mubr.msk.bf16.mxu0 %vm10116_vm0, %v10115_v0  ;;  %v4553_v6 = vshrl.u32 %v7683_v58, 16  ;;  %v4541_v10 = vshrl.u32 %v7682_v60, 16  ;;  %v4803_v23 = vrot.slane %v7732_v13, 1  ;;  %v4804_v25 = vrot.slane %v7713_v63, 1  ;;  %v9844_v50 = vld [vmem:[#allocation5 + $0x168] sm:$0xff]   ;;  %v9847_v63 = vld [vmem:[#allocation5 + $0xd0] sm:$0xff]  }
 0x809   : > { %v4557_v9 = vrot.slane %v4555_v1, 1  ;;  %v4545_v11 = vrot.slane %v4543_v3, 1  ;;  %9022 = vmatprep.subr.bf16.mxu0 %v10115_v0  ;;  %v4562_v17 = vrot.slane %v4560_v59, 1  ;;  %v4550_v19 = vrot.slane %v4548_v4, 1  ;;  %v9849_v3 = vld [vmem:[#allocation5 + $0xc8] sm:$0xff]   ;;  %v9850_v59 = vld [vmem:[#allocation5 + $0x150] sm:$0xff]  }
 0x80a   : > { %v4800_v26 = vrot.slane %v7731_v15, 1  ;;  %v4801_v27 = vrot.slane %v7712_v53, 1  ;;  %v4805_v30 = vsel %vm1252_vm13, %v4803_v23, %v4804_v25  ;;  %v9848_v53 = vld [vmem:[#allocation5 + $0x158] sm:$0xff]   ;;  %v9855_v15 = vld [vmem:[#allocation5 + $0x140] sm:$0xff]   ;;  %v9859_v23 = vld [vmem:[#allocation5 + $0x1a8] sm:$0xff]  }
 0x80b   : > { %4280 = vrot.lane.b32.xlu1 %v7683_v58, %s10120_s12  ;;  %4278 = vrot.lane.b32.xlu0 %v7682_v60, %s10120_s12  ;;  %v4558_v16 = vor.u32 %v4557_v9, %v4553_v6  ;;  %v4546_v18 = vor.u32 %v4545_v11, %v4541_v10  ;;  %v9846_v58 = vld [vmem:[#allocation5 + $0x160] sm:$0xff]   ;;  %v4375_v60 = vld [vmem:[#allocation2] sm:$0xf]  ;;  %v10834_v4 = vld [vmem:[#allocation2 + $0x10] ss:$0 sps:$4 sm:$0x11]  }
 0x80c   : > { %9023 = vmatpush3.bf16.msra.mxu0 %v9823_v5  ;;  %v4802_v31 = vsel %vm1252_vm13, %v4800_v26, %v4801_v27  ;;  %v7700_v62 = vcombine.low %v4375_v60, %v10827_v56  ;;  %v9851_v6 = vld [vmem:[#allocation5 + $0xc0] sm:$0xff]   ;;  %v9852_v9 = vld [vmem:[#allocation5 + $0x148] sm:$0xff]   ;;  %v4411_v11 = vshll.u32 %v10834_v4, 16  ;;  %v9860_v25 = vld [vmem:[#allocation5 + $0x1f0] sm:$0xff]  }
 0x80d   : > { %v4563_v21 = vsel %vm972_vm11, %v4558_v16, %v4562_v17  ;;  %v4551_v22 = vsel %vm972_vm11, %v4546_v18, %v4550_v19  ;;  %9024 = vmatprep.subr.bf16.mxu0 %v10115_v0  ;;  %v9856_v16 = vld [vmem:[#allocation5 + $0x1b8] sm:$0xff]   ;;  %v9861_v26 = vld [vmem:[#allocation5 + $0x1a0] sm:$0xff]   ;;  %v9862_v27 = vld [vmem:[#allocation5 + $0x1e8] sm:$0xff]  }
 0x80e   : > { %v4406_v1 = vshll.u32 %v7700_v62, 16  ;;  %v4404_v10 = vshrl.u32 %v7700_v62, 16  ;;  %v4413_v13 = vrot.slane %v4411_v11, 1  ;;  %v9878_v62 = vld [vmem:[#allocation5 + $0x210] sm:$0xff]  }
 0x80f   : > { %4566 = vrot.lane.b32.xlu1 %v4563_v21, %s10120_s12  ;;  %4564 = vrot.lane.b32.xlu0 %v4551_v22, %s10120_s12  ;;  %v9858_v21 = vld [vmem:[#allocation5 + $0x1f8] sm:$0xff]   ;;  %v9886_v11 = vld [vmem:[#allocation5 + $0x110] sm:$0xff]  }
 0x810   : > { %9025 = vmatpush3.bf16.msra.mxu0 %v9825_v20  ;;  %v4408_v5 = vrot.slane %v4406_v1, 1  ;;  %v9857_v20 = vld [vmem:[#allocation5 + $0x1b0] sm:$0xff]  }
 0x811   : > { %9026 = vmatprep.subr.bf16.mxu0 %v10115_v0 }
 0x812   : > { %v4409_v12 = vor.u32 %v4408_v5, %v4404_v10  ;;  %v9882_v5 = vld [vmem:[#allocation5 + $0x130] sm:$0xff]   ;;  %v9885_v10 = vld [vmem:[#allocation5 + $0x118] sm:$0xff]  }
 0x813   : > { %4808 = vrot.lane.b32.xlu1 %v4805_v30, %s10119_s11  ;;  %4806 = vrot.lane.b32.xlu0 %v4802_v31, %s10119_s11 }
 0x814   : > { %9027 = vmatpush3.bf16.msra.mxu0 %v9827_v28  ;;  %v4414_v17 = vsel %vm972_vm11, %v4409_v12, %v4413_v13  ;;  %v9863_v28 = vld [vmem:[#allocation5 + $0x198] sm:$0xff]   ;;  %v9887_v12 = vld [vmem:[#allocation5 + $0x108] sm:$0xff]   ;;  %v9888_v13 = vld [vmem:[#allocation5 + $0x100] sm:$0xff]  }
 0x815   : > { %9028 = vmatprep.subr.bf16.mxu0 %v10115_v0 }
 0x817   : > { %4922 = vrot.lane.b32.xlu1 %v4805_v30, %s10120_s12  ;;  %4920 = vrot.lane.b32.xlu0 %v4802_v31, %s10120_s12  ;;  %v9864_v30 = vld [vmem:[#allocation5 + $0x1e0] sm:$0xff]   ;;  %v9865_v31 = vld [vmem:[#allocation5 + $0x190] sm:$0xff]  }
 0x818   : > { %9029 = vmatpush3.bf16.msra.mxu0 %v9829_v32  ;;  %v9866_v32 = vld [vmem:[#allocation5 + $0x1d8] sm:$0xff]  }
 0x819   : > { %9030 = vmatprep.subr.bf16.mxu0 %v10115_v0 }
 0x81c   : > { %9031 = vmatpush3.bf16.msra.mxu0 %v9831_v7  ;;  %v9867_v7 = vld [vmem:[#allocation5 + $0x188] sm:$0xff]  }
 0x81d   : > { %9032 = vmatprep.subr.bf16.mxu0 %v10115_v0 }
 0x820   : > { %9033 = vmatpush3.bf16.msra.mxu0 %v9833_v33  ;;  %v9868_v33 = vld [vmem:[#allocation5 + $0x1d0] sm:$0xff]  }
 0x821   : > { %9034 = vmatprep.subr.bf16.mxu0 %v10115_v0 }
 0x824   : > { %9035 = vmatpush3.bf16.msra.mxu0 %v9835_v34  ;;  %v4661_v34 = vld [vmem:[#allocation2] sm:$0xe] }
 0x825   : > { %9060 = vmatprep.subr.bf16.mxu0 %v10115_v0 }
 0x840   : > { %v10812_v39 = vpop.f32.mrf.mxu1 }
 0x842   : > { %v9018_v35 = vpop.f32.mrf.mxu1 }
 0x843   : > { %v7722_v35 = vcombine.low %v4661_v34, %v10827_v56 }
 0x844   : > { %v10814_v36 = vpop.f32.mrf.mxu1 }
 0x846   : > { %v9019_v37 = vpop.f32.mrf.mxu1 }
 0x847   : > { %v9869_v37 = vld [vmem:[#allocation5 + $0x180] sm:$0xff]  }
 0x879   : > { %v4167_v44 = vpop.permute.xlu1 %4166  ;;  %v4165_v40 = vpop.permute.xlu0 %4164 }
 0x87a   : > { %v4168_v49 = vsel %vm735_vm14, %v4165_v40, %v4167_v44  ;;  %v4682_v44 = vrot.slane %v7722_v35, 1  ;;  %v4683_v40 = vrot.slane %v10834_v4, 1  ;;  %v9881_v4 = vld [vmem:[#allocation5 + $0x138] sm:$0xff]  }
 0x87b   : > { %9037 = vmatmul.mubr.bf16.vlgmr.msra.gmra.mxu0 %v4168_v49  ;;  %v9872_v49 = vld [vmem:[#allocation5 + $0x1c0] sm:$0xff]  }
 0x87c   : > { %9061 = vmatpush3.bf16.msra.mxu0 %v9838_v38  ;;  %9076 = vmatprep.mubr.msk.bf16.mxu0 %vm10116_vm0, %v10115_v0  ;;  %v9870_v38 = vld [vmem:[#allocation5 + $0x1c8] sm:$0xff]  }
 0x87d   : > { %v4281_v47 = vpop.permute.xlu1 %4280  ;;  %v4279_v48 = vpop.permute.xlu0 %4278  ;;  %9062 = vmatprep.subr.bf16.mxu0 %v10115_v0 }
 0x87e   : > { %v4282_v46 = vsel %vm850_vm15, %v4279_v48, %v4281_v47 }
 0x87f   : > { %9057 = vmatmul.mubr.bf16.vlgmr.msra.gmra.mxu1 %v4282_v46  ;;  %v9874_v46 = vld [vmem:[#allocation5 + $0x230] sm:$0xff]  }
 0x880   : > { %9063 = vmatpush3.bf16.msra.mxu0 %v9839_v43  ;;  %9081 = vmatpush3.bf16.msra.mxu1 %v9840_v45  ;;  %v9873_v43 = vld [vmem:[#allocation5 + $0x238] sm:$0xff]   ;;  %v4684_v45 = vsel %vm1252_vm13, %v4682_v44, %v4683_v40 }
 0x881   : > { %9064 = vmatprep.subr.bf16.mxu0 %v10115_v0  ;;  %9082 = vmatprep.subr.bf16.mxu1 %v10115_v0  ;;  %v4567_v18 = vpop.permute.xlu1 %4566  ;;  %v4565_v19 = vpop.permute.xlu0 %4564 }
 0x882   : > { %9096 = vmatprep.mubr.msk.bf16.mxu1 %vm10116_vm0, %v10115_v0  ;;  %v4568_v22 = vsel %vm850_vm15, %v4565_v19, %v4567_v18 }
 0x884   : > { %9065 = vmatpush3.bf16.msra.mxu0 %v9841_v51  ;;  %9083 = vmatpush3.bf16.msra.mxu1 %v9842_v52  ;;  %v9875_v52 = vld [vmem:[#allocation5 + $0x228] sm:$0xff]  }
 0x885   : > { %9066 = vmatprep.subr.bf16.mxu0 %v10115_v0  ;;  %9084 = vmatprep.subr.bf16.mxu1 %v10115_v0  ;;  %v4809_v47 = vpop.permute.xlu1 %4808  ;;  %v4807_v48 = vpop.permute.xlu0 %4806 }
 0x886   : > { %v4810_v51 = vsel %vm735_vm14, %v4807_v48, %v4809_v47 }
 0x888   : > { %9067 = vmatpush3.bf16.msra.mxu0 %v9843_v54  ;;  %9085 = vmatpush3.bf16.msra.mxu1 %v9844_v50  ;;  %v9876_v54 = vld [vmem:[#allocation5 + $0x220] sm:$0xff]  }
 0x889   : > { %9068 = vmatprep.subr.bf16.mxu0 %v10115_v0  ;;  %9086 = vmatprep.subr.bf16.mxu1 %v10115_v0  ;;  %v4923_v1 = vpop.permute.xlu1 %4922 }
 0x88c   : > { %9069 = vmatpush3.bf16.msra.mxu0 %v9845_v57  ;;  %9087 = vmatpush3.bf16.msra.mxu1 %v9846_v58  ;;  %v9877_v57 = vld [vmem:[#allocation5 + $0x218] sm:$0xff]  }
 0x88d   : > { %9070 = vmatprep.subr.bf16.mxu0 %v10115_v0  ;;  %9088 = vmatprep.subr.bf16.mxu1 %v10115_v0 }
 0x890   : > { %9071 = vmatpush3.bf16.msra.mxu0 %v9847_v63  ;;  %9089 = vmatpush3.bf16.msra.mxu1 %v9848_v53  ;;  %v9879_v63 = vld [vmem:[#allocation5 + $0x208] sm:$0xff]   ;;  %v9880_v53 = vld [vmem:[#allocation5 + $0x200] sm:$0xff]  }
 0x891   : > { %9072 = vmatprep.subr.bf16.mxu0 %v10115_v0  ;;  %9090 = vmatprep.subr.bf16.mxu1 %v10115_v0 }
 0x894   : > { %9073 = vmatpush3.bf16.msra.mxu0 %v9849_v3  ;;  %9091 = vmatpush3.bf16.msra.mxu1 %v9850_v59  ;;  %v4921_v3 = vpop.permute.xlu0 %4920 }
 0x895   : > { %9074 = vmatprep.subr.bf16.mxu0 %v10115_v0  ;;  %9092 = vmatprep.subr.bf16.mxu1 %v10115_v0  ;;  %v4924_v59 = vsel %vm850_vm15, %v4921_v3, %v4923_v1 }
 0x898   : > { %9075 = vmatpush3.bf16.msra.mxu0 %v9851_v6  ;;  %9093 = vmatpush3.bf16.msra.mxu1 %v9852_v9  ;;  %v9883_v6 = vld [vmem:[#allocation5 + $0x128] sm:$0xff]   ;;  %v9884_v9 = vld [vmem:[#allocation5 + $0x120] sm:$0xff]  }
 0x899   : > { %9094 = vmatprep.subr.bf16.mxu1 %v10115_v0  ;;  %9100 = vmatprep.subr.bf16.mxu0 %v10115_v0 }
 0x89b   : > { %9077 = vmatmul.mubr.bf16.vlgmr.msra.gmra.mxu0 %v4414_v17  ;;  %v9891_v17 = vld [vmem:[#allocation5 + $0x28] sm:$0xff]  }
 0x89c   : > { %9095 = vmatpush3.bf16.msra.mxu1 %v9855_v15  ;;  %9101 = vmatpush3.bf16.msra.mxu0 %v9856_v16  ;;  %v9889_v15 = vld [vmem:[#allocation5 + $0x38] sm:$0xff]   ;;  %v9890_v16 = vld [vmem:[#allocation5 + $0x30] sm:$0xff]  }
 0x89d   : > { %9102 = vmatprep.subr.bf16.mxu0 %v10115_v0  ;;  %9120 = vmatprep.subr.bf16.mxu1 %v10115_v0 }
 0x89e   : > { %9116 = vmatprep.mubr.msk.bf16.mxu0 %vm10116_vm0, %v10115_v0 }
 0x89f   : > { %9097 = vmatmul.mubr.bf16.vlgmr.msra.gmra.mxu1 %v4568_v22 }
 0x8a0   : > { %9103 = vmatpush3.bf16.msra.mxu0 %v9857_v20  ;;  %9121 = vmatpush3.bf16.msra.mxu1 %v9858_v21  ;;  %v9892_v20 = vld [vmem:[#allocation5 + $0x20] sm:$0xff]  }
 0x8a1   : > { %9104 = vmatprep.subr.bf16.mxu0 %v10115_v0  ;;  %9122 = vmatprep.subr.bf16.mxu1 %v10115_v0 }
 0x8a2   : > { %9136 = vmatprep.mubr.msk.bf16.mxu1 %vm10116_vm0, %v10115_v0 }
 0x8a4   : > { %9105 = vmatpush3.bf16.msra.mxu0 %v9859_v23  ;;  %9123 = vmatpush3.bf16.msra.mxu1 %v9860_v25 }
 0x8a5   : > { %9106 = vmatprep.subr.bf16.mxu0 %v10115_v0  ;;  %9124 = vmatprep.subr.bf16.mxu1 %v10115_v0 }
 0x8a8   : > { %9107 = vmatpush3.bf16.msra.mxu0 %v9861_v26  ;;  %9125 = vmatpush3.bf16.msra.mxu1 %v9862_v27 }
 0x8a9   : > { %9108 = vmatprep.subr.bf16.mxu0 %v10115_v0  ;;  %9126 = vmatprep.subr.bf16.mxu1 %v10115_v0 }
 0x8ac   : > { %9109 = vmatpush3.bf16.msra.mxu0 %v9863_v28  ;;  %9127 = vmatpush3.bf16.msra.mxu1 %v9864_v30 }
 0x8ad   : > { %9110 = vmatprep.subr.bf16.mxu0 %v10115_v0  ;;  %9128 = vmatprep.subr.bf16.mxu1 %v10115_v0 }
 0x8b0   : > { %9111 = vmatpush3.bf16.msra.mxu0 %v9865_v31  ;;  %9129 = vmatpush3.bf16.msra.mxu1 %v9866_v32 }
 0x8b1   : > { %9112 = vmatprep.subr.bf16.mxu0 %v10115_v0  ;;  %9130 = vmatprep.subr.bf16.mxu1 %v10115_v0 }
 0x8b4   : > { %9113 = vmatpush3.bf16.msra.mxu0 %v9867_v7  ;;  %9131 = vmatpush3.bf16.msra.mxu1 %v9868_v33 }
 0x8b5   : > { %9114 = vmatprep.subr.bf16.mxu0 %v10115_v0  ;;  %9132 = vmatprep.subr.bf16.mxu1 %v10115_v0 }
 0x8b8   : > { %9115 = vmatpush3.bf16.msra.mxu0 %v9869_v37  ;;  %9133 = vmatpush3.bf16.msra.mxu1 %v9870_v38 }
 0x8b9   : > { %9134 = vmatprep.subr.bf16.mxu1 %v10115_v0  ;;  %9140 = vmatprep.subr.bf16.mxu0 %v10115_v0 }
 0x8bb   : > { %9117 = vmatmul.mubr.bf16.vlgmr.msra.gmra.mxu0 %v4684_v45 }
 0x8bc   : > { %9135 = vmatpush3.bf16.msra.mxu1 %v9872_v49  ;;  %9141 = vmatpush3.bf16.msra.mxu0 %v9873_v43 }
 0x8bd   : > { %9142 = vmatprep.subr.bf16.mxu0 %v10115_v0  ;;  %9156 = vmatprep.mubr.msk.bf16.mxu0 %vm10116_vm0, %v10115_v0 }
 0x8be   : > { %9160 = vmatprep.subr.bf16.mxu1 %v10115_v0 }
 0x8bf   : > { %9137 = vmatmul.mubr.bf16.vlgmr.msra.gmra.mxu1 %v4810_v51 }
 0x8c0   : > { %9143 = vmatpush3.bf16.msra.mxu0 %v9874_v46  ;;  %9176 = vmatprep.mubr.msk.bf16.mxu1 %vm10116_vm0, %v10115_v0 }
 0x8c1   : > { %9144 = vmatprep.subr.bf16.mxu0 %v10115_v0  ;;  %9161 = vmatpush3.bf16.msra.mxu1 %v9889_v15 }
 0x8c2   : > { %9162 = vmatprep.subr.bf16.mxu1 %v10115_v0 }
 0x8c4   : > { %9145 = vmatpush3.bf16.msra.mxu0 %v9875_v52 }
 0x8c5   : > { %9146 = vmatprep.subr.bf16.mxu0 %v10115_v0  ;;  %9163 = vmatpush3.bf16.msra.mxu1 %v9890_v16 }
 0x8c6   : > { %v4041_v50 = vpop.f32.mrf.mxu0  ;;  %9164 = vmatprep.subr.bf16.mxu1 %v10115_v0 }
 0x8c7   : > { %v4131_v18 = vadd.f32 %v10812_v39, %v4041_v50 }
 0x8c8   : > { %9147 = vmatpush3.bf16.msra.mxu0 %v9876_v54  ;;  %v8998_v56 = vpop.f32.mrf.mxu0 }
 0x8c9   : > { %9148 = vmatprep.subr.bf16.mxu0 %v10115_v0  ;;  %9165 = vmatpush3.bf16.msra.mxu1 %v9891_v17 }
 0x8ca   : > { %v4044_v58 = vpop.f32.mrf.mxu0  ;;  %9166 = vmatprep.subr.bf16.mxu1 %v10115_v0 }
 0x8cb   : > { %v4134_v23 = vadd.f32 %v10814_v36, %v4044_v58 }
 0x8cc   : > { %9149 = vmatpush3.bf16.msra.mxu0 %v9877_v57  ;;  %v8999_v60 = vpop.f32.mrf.mxu0 }
 0x8cd   : > { %9150 = vmatprep.subr.bf16.mxu0 %v10115_v0  ;;  %9167 = vmatpush3.bf16.msra.mxu1 %v9892_v20 }
 0x8ce   : > { %9168 = vmatprep.subr.bf16.mxu1 %v10115_v0 }
 0x8d0   : > { %9151 = vmatpush3.bf16.msra.mxu0 %v9878_v62  ;;  %v10902_v62 = vld [vmem:[%s11198_s6] ss:$0 sm:$0xff] }
 0x8d1   : > { %9152 = vmatprep.subr.bf16.mxu0 %v10115_v0 }
 0x8d4   : > { %9153 = vmatpush3.bf16.msra.mxu0 %v9879_v63 }
 0x8d5   : > { %9154 = vmatprep.subr.bf16.mxu0 %v10115_v0 }
 0x8d8   : > { %9155 = vmatpush3.bf16.msra.mxu0 %v9880_v53 }
 0x8d9   : > { %9180 = vmatprep.subr.bf16.mxu0 %v10115_v0 }
 0x8db   : > { %9157 = vmatmul.mubr.bf16.vlgmr.msra.gmra.mxu0 %v4924_v59 }
 0x8dc   : > { %9196 = vmatprep.mubr.msk.bf16.mxu0 %vm10116_vm0, %v10115_v0  ;;  %9181 = vmatpush3.bf16.msra.mxu0 %v9881_v4 }
 0x8dd   : > { %9182 = vmatprep.subr.bf16.mxu0 %v10115_v0 }
 0x8e0   : > { %9183 = vmatpush3.bf16.msra.mxu0 %v9882_v5 }
 0x8e1   : > { %9184 = vmatprep.subr.bf16.mxu0 %v10115_v0 }
 0x8e4   : > { %9185 = vmatpush3.bf16.msra.mxu0 %v9883_v6 }
 0x8e5   : > { %9186 = vmatprep.subr.bf16.mxu0 %v10115_v0 }
 0x8e8   : > { %9187 = vmatpush3.bf16.msra.mxu0 %v9884_v9 }
 0x8e9   : > { %9188 = vmatprep.subr.bf16.mxu0 %v10115_v0 }
 0x8ec   : > { %9189 = vmatpush3.bf16.msra.mxu0 %v9885_v10 }
 0x8ed   : > { %9190 = vmatprep.subr.bf16.mxu0 %v10115_v0 }
 0x8f0   : > { %9191 = vmatpush3.bf16.msra.mxu0 %v9886_v11 }
 0x8f1   : > { %9192 = vmatprep.subr.bf16.mxu0 %v10115_v0 }
 0x8f4   : > { %9193 = vmatpush3.bf16.msra.mxu0 %v9887_v12 }
 0x8f5   : > { %9194 = vmatprep.subr.bf16.mxu0 %v10115_v0 }
 0x8f8   : > { %9195 = vmatpush3.bf16.msra.mxu0 %v9888_v13  ;;  %v9893_v13 = vld [vmem:[#allocation5 + $0x18] sm:$0xff]  }
 0x8f9   : > { %9220 = vmatprep.subr.bf16.mxu0 %v10115_v0  ;;  %9169 = vmatpush3.bf16.msra.mxu1 %v9893_v13 }
 0x8fa   : > { %9170 = vmatprep.subr.bf16.mxu1 %v10115_v0 }
 0x93b   : > { %v4252_v19 = vpop.f32.mrf.mxu0 }
 0x93c   : > { %v4259_v21 = vadd.f32 %v4252_v19, %v4131_v18  ;;  %v9894_v19 = vld [vmem:[#allocation5 + $0x10] sm:$0xff]  }
 0x93d   : > { %v9038_v22 = vpop.f32.mrf.mxu0  ;;  %9171 = vmatpush3.bf16.msra.mxu1 %v9894_v19 }
 0x93e   : > { %9172 = vmatprep.subr.bf16.mxu1 %v10115_v0 }
 0x93f   : > { %v4255_v25 = vpop.f32.mrf.mxu0  ;;  %v4366_v26 = vpop.f32.mrf.mxu1 }
 0x940   : > { %v4260_v27 = vadd.f32 %v4255_v25, %v4134_v23  ;;  %v4373_v28 = vadd.f32 %v4366_v26, %v4259_v21  ;;  %v9895_v25 = vld [vmem:[#allocation5 + $0x8] sm:$0xff]  }
 0x941   : > { %v9039_v30 = vpop.f32.mrf.mxu0  ;;  %v9058_v31 = vpop.f32.mrf.mxu1  ;;  %9173 = vmatpush3.bf16.msra.mxu1 %v9895_v25  ;;  %v9905_v25 = vld [vmem:[#allocation5 + $0x68] sm:$0xff]  }
 0x942   : > { %v9896_v31 = vld [vmem:[#allocation5] sm:$0xff]   ;;  %9174 = vmatprep.subr.bf16.mxu1 %v10115_v0 }
 0x943   : > { %v4369_v32 = vpop.f32.mrf.mxu1 }
 0x944   : > { %v4374_v39 = vadd.f32 %v4369_v32, %v4260_v27 }
 0x945   : > { %v9059_v7 = vpop.f32.mrf.mxu1  ;;  %9175 = vmatpush3.bf16.msra.mxu1 %v9896_v31 }
 0x946   : > { %9200 = vmatprep.subr.bf16.mxu1 %v10115_v0 }
 0x95b   : > { %v4498_v33 = vpop.f32.mrf.mxu0 }
 0x95c   : > { %v4505_v54 = vadd.f32 %v4498_v33, %v4373_v28 }
 0x95d   : > { %v9078_v34 = vpop.f32.mrf.mxu0 }
 0x95e   : > { %v9904_v34 = vld [vmem:[#allocation5 + $0xb8] sm:$0xff]  }
 0x95f   : > { %v4501_v35 = vpop.f32.mrf.mxu0  ;;  %v4652_v37 = vpop.f32.mrf.mxu1 }
 0x960   : > { %v4659_v50 = vadd.f32 %v4652_v37, %v4505_v54  ;;  %v4506_v56 = vadd.f32 %v4501_v35, %v4374_v39  ;;  %v9906_v35 = vld [vmem:[#allocation5 + $0xb0] sm:$0xff]   ;;  %v9908_v37 = vld [vmem:[#allocation5 + $0xa8] sm:$0xff]   ;;  %v5064_v54 = vld [vmem:[#allocation2 + $0x10] sm:$0x11] }
 0x961   : > { %v9079_v38 = vpop.f32.mrf.mxu0  ;;  %v9098_v44 = vpop.f32.mrf.mxu1 }
 0x962   : > { %v9910_v38 = vld [vmem:[#allocation5 + $0xa0] sm:$0xff]   ;;  %v9912_v44 = vld [vmem:[#allocation5 + $0x98] sm:$0xff]  }
 0x963   : > { %v4655_v40 = vpop.f32.mrf.mxu1 }
 0x964   : > { %v4660_v58 = vadd.f32 %v4655_v40, %v4506_v56  ;;  %v9914_v40 = vld [vmem:[#allocation5 + $0x90] sm:$0xff]   ;;  %v9917_v56 = vld [vmem:[#allocation5 + $0x80] sm:$0xff]  }
 0x965   : > { %v9099_v36 = vpop.f32.mrf.mxu1 }
 0x966   : > { %v9916_v36 = vld [vmem:[#allocation5 + $0x88] sm:$0xff]  }
 0x97b   : > { %v4768_v49 = vpop.f32.mrf.mxu0 }
 0x97c   : > { %v4775_v57 = vadd.f32 %v4768_v49, %v4659_v50 }
 0x97d   : > { %v9118_v43 = vpop.f32.mrf.mxu0 }
 0x97f   : > { %v4771_v45 = vpop.f32.mrf.mxu0  ;;  %v4894_v47 = vpop.f32.mrf.mxu1 }
 0x980   : > { %v4901_v60 = vadd.f32 %v4894_v47, %v4775_v57  ;;  %v4776_v53 = vadd.f32 %v4771_v45, %v4660_v58 }
 0x981   : > { %v9119_v48 = vpop.f32.mrf.mxu0  ;;  %v9138_v46 = vpop.f32.mrf.mxu1 }
 0x983   : > { %v4897_v51 = vpop.f32.mrf.mxu1 }
 0x984   : > { %v4902_v59 = vadd.f32 %v4897_v51, %v4776_v53 }
 0x985   : > { %v9139_v52 = vpop.f32.mrf.mxu1 }
 0x99b   : > { %v5008_v63 = vpop.f32.mrf.mxu0 }
 0x99c   : > { %v5015_v1 = vadd.f32 %v5008_v63, %v4901_v60 }
 0x99d   : > { %v9158_v3 = vpop.f32.mrf.mxu0 }
 0x99e   : > { %v5017_v4 = vadd.f32 %v10902_v62, %v5015_v1 }
 0x99f   : > { %v5011_v5 = vpop.f32.mrf.mxu0 }
 0x9a0   : > { %v5019_v6 = vmax.f32 %v5017_v4, 0.0  ;;  %v5016_v9 = vadd.f32 %v5011_v5, %v4902_v59 }
 0x9a1   : > { %v9159_v10 = vpop.f32.mrf.mxu0 }
 0x9a2   : > { %v5021_v11 = vadd.f32 %v5019_v6, %v10744_v8  ;;  %v5018_v12 = vadd.f32 %v10902_v62, %v5016_v9 }
 0x9a4   : > { %v7933_v15 = vpack.c.bf16 %v5021_v11, %v5021_v11  ;;  %v5020_v16 = vmax.f32 %v5018_v12, 0.0 }
 0x9a6   : > { %v5022_v17 = vadd.f32 %v5020_v16, %v10748_v14  ;;  %v5030_v18 = vshrl.u32 %v7933_v15, 16  ;;  %v5033_v23 = vshll.u32 %v7933_v15, 16 }
 0x9a8   : > { %v5023_v20 = vpack.c.bf16 %v5022_v17, %v5021_v11  ;;  %v7934_v21 = vpack.c.bf16 %v5022_v17, %v5022_v17  ;;  %v5032_v22 = vrot.slane %v5030_v18, 7  ;;  %v9903_v11 = vld [vmem:[#allocation5 + $0x70] sm:$0xff]  }
 0x9aa   : > { %9197 = vmatmul.mubr.bf16.vlgmr.msra.gmra.mxu0 %v5023_v20  ;;  %v5035_v26 = vor.u32 %v5033_v23, %v5032_v22  ;;  %v5038_v27 = vshrl.u32 %v7934_v21, 16  ;;  %v5041_v30 = vshll.u32 %v7934_v21, 16  ;;  %v5036_v39 = vrot.slane %v5032_v22, 4 }
 0x9ab   : > { %9236 = vmatprep.mubr.msk.bf16.mxu0 %vm10116_vm0, %v10115_v0  ;;  %9221 = vmatpush3.bf16.msra.mxu0 %v9904_v34  ;;  %v9909_v34 = vld [vmem:[#allocation5 + $0x58] sm:$0xff]  }
 0x9ac   : > { %5046 = vrot.lane.b32.xlu0 %v5035_v26, %s10118_s10  ;;  %v5040_v28 = vrot.slane %v5038_v27, 7  ;;  %9222 = vmatprep.subr.bf16.mxu0 %v10115_v0 }
 0x9ae   : > { %v5045_v32 = vrot.slane %v5040_v28, 4  ;;  %v5043_v7 = vor.u32 %v5041_v30, %v5040_v28 }
 0x9af   : > { %9223 = vmatpush3.bf16.msra.mxu0 %v9906_v35  ;;  %v9911_v35 = vld [vmem:[#allocation5 + $0x50] sm:$0xff]  }
 0x9b0   : > { %5050 = vrot.lane.b32.xlu0 %v5045_v32, %s10118_s10  ;;  %v5044_v33 = vsel %vm10279_vm10, %v5036_v39, %v5043_v7  ;;  %9224 = vmatprep.subr.bf16.mxu0 %v10115_v0  ;;  %v9907_v39 = vld [vmem:[#allocation5 + $0x60] sm:$0xff]  }
 0x9b1   : > { %5048 = vrot.lane.b32.xlu1 %v5044_v33, %s10118_s10 }
 0x9b3   : > { %9225 = vmatpush3.bf16.msra.mxu0 %v9908_v37  ;;  %v9913_v37 = vld [vmem:[#allocation5 + $0x48] sm:$0xff]  }
 0x9b4   : > { %9226 = vmatprep.subr.bf16.mxu0 %v10115_v0 }
 0x9b7   : > { %9227 = vmatpush3.bf16.msra.mxu0 %v9910_v38  ;;  %v9915_v38 = vld [vmem:[#allocation5 + $0x40] sm:$0xff]  }
 0x9b8   : > { %9228 = vmatprep.subr.bf16.mxu0 %v10115_v0 }
 0x9bb   : > { %9229 = vmatpush3.bf16.msra.mxu0 %v9912_v44 }
 0x9bc   : > { %9230 = vmatprep.subr.bf16.mxu0 %v10115_v0 }
 0x9bf   : > { %9231 = vmatpush3.bf16.msra.mxu0 %v9914_v40 }
 0x9c0   : > { %9232 = vmatprep.subr.bf16.mxu0 %v10115_v0 }
 0x9c3   : > { %9233 = vmatpush3.bf16.msra.mxu0 %v9916_v36 }
 0x9c4   : > { %9234 = vmatprep.subr.bf16.mxu0 %v10115_v0 }
 0x9c7   : > { %9235 = vmatpush3.bf16.msra.mxu0 %v9917_v56 }
 0x9c8   : > { %9260 = vmatprep.subr.bf16.mxu0 %v10115_v0 }
 0xa1e   : > { %v5047_v49 = vpop.permute.xlu0 %5046 }
 0xa1f   : > { %v5052_v43 = vrot.slane %v5047_v49, 4 }
 0xa21   : > { %v5055_v45 = vsel %vm455_vm6, %v5052_v43, %v5047_v49  ;;  %v9918_v43 = vld [vmem:[#allocation5 + $0xf8] sm:$0xff]  }
 0xa22   : > { %v10930_v47 = vsel %vm10298_vm7, %v5055_v45, %v10776_v41  ;;  %v5051_v48 = vpop.permute.xlu0 %5050  ;;  %v9902_v41 = vld [vmem:[#allocation5 + $0x78] sm:$0xff]  }
 0xa23   : > { %5062 = vst [vmem:[#allocation2] sm:$0xff] %v10930_v47  ;;  %v5054_v46 = vrot.slane %v5051_v48, 4  ;;  %v5049_v51 = vpop.permute.xlu1 %5048 }
 0xa24   : > { %v5053_v52 = vrot.slane %v5049_v51, 4 }
 0xa25   : > { %v5057_v50 = vsel %vm455_vm6, %v5054_v46, %v5051_v48 }
 0xa26   : > { %v5065_v57 = vsel %vm10308_vm12, %v5057_v50, %v5064_v54  ;;  %v5056_v58 = vsel %vm455_vm6, %v5053_v52, %v5049_v51  ;;  %v9919_v51 = vld [vmem:[#allocation5 + $0xf0] sm:$0xff]   ;;  %v9920_v52 = vld [vmem:[#allocation5 + $0x178] sm:$0xff]  }
 0xa27   : > { %5066 = vst [vmem:[#allocation2 + $0x10] sm:$0x11] %v5065_v57  ;;  %5063 = vst.msk [vmem:[#allocation2 + $0x8] sm:$0xff] %vm10314_vm8, %v5056_v58  ;;  %v9921_v57 = vld [vmem:[#allocation5 + $0xe8] sm:$0xff]   ;;  %v9922_v58 = vld [vmem:[#allocation5 + $0x170] sm:$0xff]  }
 0xa2a   : > { %v5920_v17 = vld [vmem:[#allocation2] sm:$0xee] }
 0xa2e   : > { %v5286_v60 = vld [vmem:[#allocation2 + $0x8] sm:$0xff]  ;;  %v5654_v3 = vld [vmem:[#allocation2 + $0x10] sm:$0x11] }
 0xa2f   : > { %v9897_v63 = vld [vmem:[#allocation2] ss:$8 sps:$4 sm:$0xff]   ;;  %v7769_v53 = vcombine.high %v10930_v47, %v5286_v60  ;;  %v7768_v1 = vcombine.low %v10930_v47, %v5286_v60  ;;  %v7799_v59 = vcombine.high %v5654_v3, %v5654_v3  ;;  %v7798_v4 = vcombine.low %v5654_v3, %v5654_v3 }
 0xa30   : > { %9177 = vmatmul.mubr.bf16.vlgmr.msra.gmra.mxu1 %v9897_v63  ;;  %v7818_v18 = vcombine.high %v5920_v17, %v5286_v60  ;;  %v7817_v19 = vcombine.low %v5920_v17, %v5286_v60  ;;  %v9924_v60 = vld [vmem:[#allocation5 + $0x168] sm:$0xff]   ;;  %v10981_v63 = vld [vmem:[#allocation2 + $0x8] sm:$0xf] }
 0xa31   : > { %5313 = vrot.lane.b32.xlu0 %v7769_v53, %s10119_s11  ;;  %5311 = vrot.lane.b32.xlu1 %v7768_v1, %s10119_s11  ;;  %v5699_v5 = vshll.u32 %v7769_v53, 16  ;;  %v5687_v6 = vshll.u32 %v7768_v1, 16  ;;  %v5704_v9 = vshll.u32 %v7799_v59, 16  ;;  %v5692_v10 = vshll.u32 %v7798_v4, 16  ;;  %v5521_v3 = vld [vmem:[#allocation2] sm:$0xf] }
 0xa32   : > { %9201 = vmatpush3.bf16.msra.mxu1 %v9902_v41  ;;  %9216 = vmatprep.mubr.msk.bf16.mxu1 %vm10116_vm0, %v10115_v0  ;;  %v5697_v12 = vshrl.u32 %v7769_v53, 16  ;;  %v5685_v15 = vshrl.u32 %v7768_v1, 16  ;;  %v5945_v28 = vrot.slane %v7818_v18, 1  ;;  %v5946_v30 = vrot.slane %v7799_v59, 1  ;;  %v9923_v41 = vld [vmem:[#allocation5 + $0xe0] sm:$0xff]  }
 0xa33   : > { %v5701_v13 = vrot.slane %v5699_v5, 1  ;;  %v5689_v16 = vrot.slane %v5687_v6, 1  ;;  %9202 = vmatprep.subr.bf16.mxu1 %v10115_v0  ;;  %v5706_v21 = vrot.slane %v5704_v9, 1  ;;  %v5694_v23 = vrot.slane %v5692_v10, 1  ;;  %v9928_v5 = vld [vmem:[#allocation5 + $0x158] sm:$0xff]   ;;  %v9929_v9 = vld [vmem:[#allocation5 + $0xc8] sm:$0xff]  }
 0xa34   : > { %v5942_v31 = vrot.slane %v7817_v19, 1  ;;  %v5943_v32 = vrot.slane %v7798_v4, 1  ;;  %v5947_v7 = vsel %vm1252_vm13, %v5945_v28, %v5946_v30  ;;  %v7786_v59 = vcombine.low %v5521_v3, %v10981_v63  ;;  %v9927_v4 = vld [vmem:[#allocation5 + $0xd0] sm:$0xff]   ;;  %v9939_v30 = vld [vmem:[#allocation5 + $0x1a8] sm:$0xff]  }
 0xa35   : > { %5426 = vrot.lane.b32.xlu0 %v7769_v53, %s10120_s12  ;;  %5424 = vrot.lane.b32.xlu1 %v7768_v1, %s10120_s12  ;;  %v5702_v20 = vor.u32 %v5701_v13, %v5697_v12  ;;  %v5690_v22 = vor.u32 %v5689_v16, %v5685_v15  ;;  %v9925_v53 = vld [vmem:[#allocation5 + $0xd8] sm:$0xff]   ;;  %v9926_v1 = vld [vmem:[#allocation5 + $0x160] sm:$0xff]   ;;  %v9930_v10 = vld [vmem:[#allocation5 + $0x150] sm:$0xff]  }
 0xa36   : > { %9203 = vmatpush3.bf16.msra.mxu1 %v9903_v11  ;;  %v5944_v33 = vsel %vm1252_vm13, %v5942_v31, %v5943_v32  ;;  %v5551_v6 = vshll.u32 %v7786_v59, 16  ;;  %v10988_v11 = vld [vmem:[#allocation2 + $0x10] ss:$0 sps:$4 sm:$0x11]   ;;  %v9931_v13 = vld [vmem:[#allocation5 + $0xc0] sm:$0xff]   ;;  %v9932_v15 = vld [vmem:[#allocation5 + $0x148] sm:$0xff]  }
 0xa37   : > { %v5707_v26 = vsel %vm972_vm11, %v5702_v20, %v5706_v21  ;;  %v5695_v27 = vsel %vm972_vm11, %v5690_v22, %v5694_v23  ;;  %9204 = vmatprep.subr.bf16.mxu1 %v10115_v0  ;;  %v5549_v16 = vshrl.u32 %v7786_v59, 16  ;;  %v5556_v17 = vshll.u32 %v10988_v11, 16  ;;  %v9935_v20 = vld [vmem:[#allocation5 + $0x140] sm:$0xff]   ;;  %v9936_v21 = vld [vmem:[#allocation5 + $0x1b8] sm:$0xff]   ;;  %v9940_v31 = vld [vmem:[#allocation5 + $0x1f0] sm:$0xff]  }
 0xa38   : > { %v5553_v12 = vrot.slane %v5551_v6, 1  ;;  %v9941_v32 = vld [vmem:[#allocation5 + $0x1a0] sm:$0xff]  }
 0xa39   : > { %5710 = vrot.lane.b32.xlu0 %v5707_v26, %s10120_s12  ;;  %5708 = vrot.lane.b32.xlu1 %v5695_v27, %s10120_s12  ;;  %v5558_v19 = vrot.slane %v5556_v17, 1  ;;  %v9937_v26 = vld [vmem:[#allocation5 + $0x1b0] sm:$0xff]   ;;  %v9938_v27 = vld [vmem:[#allocation5 + $0x1f8] sm:$0xff]   ;;  %v9960_v6 = vld [vmem:[#allocation5 + $0x200] sm:$0xff]  }
 0xa3a   : > { %9205 = vmatpush3.bf16.msra.mxu1 %v9905_v25  ;;  %v5554_v18 = vor.u32 %v5553_v12, %v5549_v16  ;;  %v9961_v12 = vld [vmem:[#allocation5 + $0x138] sm:$0xff]   ;;  %v9964_v16 = vld [vmem:[#allocation5 + $0x120] sm:$0xff]  }
 0xa3b   : > { %9206 = vmatprep.subr.bf16.mxu1 %v10115_v0  ;;  %v9965_v17 = vld [vmem:[#allocation5 + $0x118] sm:$0xff]  }
 0xa3c   : > { %v5559_v22 = vsel %vm972_vm11, %v5554_v18, %v5558_v19  ;;  %v9966_v18 = vld [vmem:[#allocation5 + $0x110] sm:$0xff]   ;;  %v9967_v19 = vld [vmem:[#allocation5 + $0x108] sm:$0xff]  }
 0xa3d   : > { %5950 = vrot.lane.b32.xlu0 %v5947_v7, %s10119_s11  ;;  %5948 = vrot.lane.b32.xlu1 %v5944_v33, %s10119_s11 }
 0xa3e   : > { %9207 = vmatpush3.bf16.msra.mxu1 %v9907_v39  ;;  %v9942_v39 = vld [vmem:[#allocation5 + $0x1e8] sm:$0xff]  }
 0xa3f   : > { %9208 = vmatprep.subr.bf16.mxu1 %v10115_v0 }
 0xa41   : > { %6063 = vrot.lane.b32.xlu0 %v5947_v7, %s10120_s12  ;;  %6061 = vrot.lane.b32.xlu1 %v5944_v33, %s10120_s12  ;;  %v9943_v7 = vld [vmem:[#allocation5 + $0x198] sm:$0xff]   ;;  %v9944_v33 = vld [vmem:[#allocation5 + $0x1e0] sm:$0xff]  }
 0xa42   : > { %9209 = vmatpush3.bf16.msra.mxu1 %v9909_v34  ;;  %v9945_v34 = vld [vmem:[#allocation5 + $0x190] sm:$0xff]  }
 0xa43   : > { %9210 = vmatprep.subr.bf16.mxu1 %v10115_v0 }
 0xa46   : > { %9211 = vmatpush3.bf16.msra.mxu1 %v9911_v35  ;;  %v9946_v35 = vld [vmem:[#allocation5 + $0x1d8] sm:$0xff]  }
 0xa47   : > { %9212 = vmatprep.subr.bf16.mxu1 %v10115_v0 }
 0xa4a   : > { %9213 = vmatpush3.bf16.msra.mxu1 %v9913_v37  ;;  %v9947_v37 = vld [vmem:[#allocation5 + $0x188] sm:$0xff]  }
 0xa4b   : > { %9214 = vmatprep.subr.bf16.mxu1 %v10115_v0 }
 0xa4e   : > { %9215 = vmatpush3.bf16.msra.mxu1 %v9915_v38  ;;  %v9948_v38 = vld [vmem:[#allocation5 + $0x1d0] sm:$0xff]  }
 0xa4f   : > { %9240 = vmatprep.subr.bf16.mxu1 %v10115_v0 }
 0xa6a   : > { %v10966_v44 = vpop.f32.mrf.mxu0 }
 0xa6c   : > { %v9198_v40 = vpop.f32.mrf.mxu0 }
 0xa6d   : > { %v5805_v40 = vld [vmem:[#allocation2] sm:$0xe] }
 0xa6e   : > { %v10968_v36 = vpop.f32.mrf.mxu0 }
 0xa70   : > { %v9199_v49 = vpop.f32.mrf.mxu0 }
 0xa71   : > { %v7808_v49 = vcombine.low %v5805_v40, %v10981_v63 }
 0xaa3   : > { %v5314_v45 = vpop.permute.xlu0 %5313  ;;  %v5312_v48 = vpop.permute.xlu1 %5311 }
 0xaa4   : > { %v5315_v46 = vsel %vm735_vm14, %v5312_v48, %v5314_v45  ;;  %v9950_v45 = vld [vmem:[#allocation5 + $0x1c8] sm:$0xff]   ;;  %v5825_v48 = vrot.slane %v7808_v49, 1 }
 0xaa5   : > { %9217 = vmatmul.mubr.bf16.vlgmr.msra.gmra.mxu1 %v5315_v46  ;;  %v5826_v46 = vrot.slane %v10988_v11, 1 }
 0xaa6   : > { %9241 = vmatpush3.bf16.msra.mxu1 %v9918_v43  ;;  %9256 = vmatprep.mubr.msk.bf16.mxu1 %vm10116_vm0, %v10115_v0  ;;  %v9949_v43 = vld [vmem:[#allocation5 + $0x180] sm:$0xff]  }
 0xaa7   : > { %v5427_v54 = vpop.permute.xlu0 %5426  ;;  %v5425_v50 = vpop.permute.xlu1 %5424  ;;  %9242 = vmatprep.subr.bf16.mxu1 %v10115_v0 }
 0xaa8   : > { %v5428_v56 = vsel %vm850_vm15, %v5425_v50, %v5427_v54  ;;  %v5827_v54 = vsel %vm1252_vm13, %v5825_v48, %v5826_v46 }
 0xaa9   : > { %9237 = vmatmul.mubr.bf16.vlgmr.msra.gmra.mxu0 %v5428_v56 }
 0xaaa   : > { %9243 = vmatpush3.bf16.msra.mxu1 %v9919_v51  ;;  %9261 = vmatpush3.bf16.msra.mxu0 %v9920_v52  ;;  %v9952_v51 = vld [vmem:[#allocation5 + $0x1c0] sm:$0xff]   ;;  %v9953_v52 = vld [vmem:[#allocation5 + $0x238] sm:$0xff]  }
 0xaab   : > { %9244 = vmatprep.subr.bf16.mxu1 %v10115_v0  ;;  %9262 = vmatprep.subr.bf16.mxu0 %v10115_v0  ;;  %v5711_v23 = vpop.permute.xlu0 %5710  ;;  %v5709_v25 = vpop.permute.xlu1 %5708 }
 0xaac   : > { %9276 = vmatprep.mubr.msk.bf16.mxu0 %vm10116_vm0, %v10115_v0  ;;  %v5712_v28 = vsel %vm850_vm15, %v5709_v25, %v5711_v23  ;;  %v9971_v23 = vld [vmem:[#allocation5 + $0x28] sm:$0xff]  }
 0xaae   : > { %9245 = vmatpush3.bf16.msra.mxu1 %v9921_v57  ;;  %9263 = vmatpush3.bf16.msra.mxu0 %v9922_v58  ;;  %v9954_v57 = vld [vmem:[#allocation5 + $0x230] sm:$0xff]  }
 0xaaf   : > { %9246 = vmatprep.subr.bf16.mxu1 %v10115_v0  ;;  %9264 = vmatprep.subr.bf16.mxu0 %v10115_v0  ;;  %v5951_v50 = vpop.permute.xlu0 %5950  ;;  %v5949_v56 = vpop.permute.xlu1 %5948 }
 0xab0   : > { %v5952_v58 = vsel %vm735_vm14, %v5949_v56, %v5951_v50 }
 0xab2   : > { %9247 = vmatpush3.bf16.msra.mxu1 %v9923_v41  ;;  %9265 = vmatpush3.bf16.msra.mxu0 %v9924_v60  ;;  %v9955_v41 = vld [vmem:[#allocation5 + $0x228] sm:$0xff]   ;;  %v9956_v60 = vld [vmem:[#allocation5 + $0x220] sm:$0xff]  }
 0xab3   : > { %9248 = vmatprep.subr.bf16.mxu1 %v10115_v0  ;;  %9266 = vmatprep.subr.bf16.mxu0 %v10115_v0 }
 0xab6   : > { %9249 = vmatpush3.bf16.msra.mxu1 %v9925_v53  ;;  %9267 = vmatpush3.bf16.msra.mxu0 %v9926_v1  ;;  %v9957_v1 = vld [vmem:[#allocation5 + $0x218] sm:$0xff]  }
 0xab7   : > { %9250 = vmatprep.subr.bf16.mxu1 %v10115_v0  ;;  %9268 = vmatprep.subr.bf16.mxu0 %v10115_v0 }
 0xaba   : > { %9251 = vmatpush3.bf16.msra.mxu1 %v9927_v4  ;;  %9269 = vmatpush3.bf16.msra.mxu0 %v9928_v5  ;;  %v9958_v4 = vld [vmem:[#allocation5 + $0x210] sm:$0xff]   ;;  %v9959_v5 = vld [vmem:[#allocation5 + $0x208] sm:$0xff]  }
 0xabb   : > { %9252 = vmatprep.subr.bf16.mxu1 %v10115_v0  ;;  %9270 = vmatprep.subr.bf16.mxu0 %v10115_v0 }
 0xabe   : > { %9253 = vmatpush3.bf16.msra.mxu1 %v9929_v9  ;;  %9271 = vmatpush3.bf16.msra.mxu0 %v9930_v10  ;;  %v6064_v9 = vpop.permute.xlu0 %6063  ;;  %v6062_v10 = vpop.permute.xlu1 %6061 }
 0xabf   : > { %9254 = vmatprep.subr.bf16.mxu1 %v10115_v0  ;;  %9272 = vmatprep.subr.bf16.mxu0 %v10115_v0  ;;  %v6065_v11 = vsel %vm850_vm15, %v6062_v10, %v6064_v9 }
 0xac2   : > { %9255 = vmatpush3.bf16.msra.mxu1 %v9931_v13  ;;  %9273 = vmatpush3.bf16.msra.mxu0 %v9932_v15  ;;  %v9962_v13 = vld [vmem:[#allocation5 + $0x130] sm:$0xff]   ;;  %v9963_v15 = vld [vmem:[#allocation5 + $0x128] sm:$0xff]  }
 0xac3   : > { %9274 = vmatprep.subr.bf16.mxu0 %v10115_v0  ;;  %9280 = vmatprep.subr.bf16.mxu1 %v10115_v0 }
 0xac5   : > { %9257 = vmatmul.mubr.bf16.vlgmr.msra.gmra.mxu1 %v5559_v22  ;;  %v9970_v22 = vld [vmem:[#allocation5 + $0x30] sm:$0xff]  }
 0xac6   : > { %9275 = vmatpush3.bf16.msra.mxu0 %v9935_v20  ;;  %9281 = vmatpush3.bf16.msra.mxu1 %v9936_v21  ;;  %v9968_v20 = vld [vmem:[#allocation5 + $0x100] sm:$0xff]   ;;  %v9969_v21 = vld [vmem:[#allocation5 + $0x38] sm:$0xff]  }
 0xac7   : > { %9282 = vmatprep.subr.bf16.mxu1 %v10115_v0  ;;  %9300 = vmatprep.subr.bf16.mxu0 %v10115_v0 }
 0xac8   : > { %9296 = vmatprep.mubr.msk.bf16.mxu1 %vm10116_vm0, %v10115_v0 }
 0xac9   : > { %9277 = vmatmul.mubr.bf16.vlgmr.msra.gmra.mxu0 %v5712_v28 }
 0xaca   : > { %9283 = vmatpush3.bf16.msra.mxu1 %v9937_v26  ;;  %9301 = vmatpush3.bf16.msra.mxu0 %v9938_v27  ;;  %v9972_v27 = vld [vmem:[#allocation5 + $0x20] sm:$0xff]  }
 0xacb   : > { %9284 = vmatprep.subr.bf16.mxu1 %v10115_v0  ;;  %9302 = vmatprep.subr.bf16.mxu0 %v10115_v0 }
 0xacc   : > { %9316 = vmatprep.mubr.msk.bf16.mxu0 %vm10116_vm0, %v10115_v0 }
 0xace   : > { %9285 = vmatpush3.bf16.msra.mxu1 %v9939_v30  ;;  %9303 = vmatpush3.bf16.msra.mxu0 %v9940_v31 }
 0xacf   : > { %9286 = vmatprep.subr.bf16.mxu1 %v10115_v0  ;;  %9304 = vmatprep.subr.bf16.mxu0 %v10115_v0 }
 0xad2   : > { %9287 = vmatpush3.bf16.msra.mxu1 %v9941_v32  ;;  %9305 = vmatpush3.bf16.msra.mxu0 %v9942_v39 }
 0xad3   : > { %9288 = vmatprep.subr.bf16.mxu1 %v10115_v0  ;;  %9306 = vmatprep.subr.bf16.mxu0 %v10115_v0 }
 0xad6   : > { %9289 = vmatpush3.bf16.msra.mxu1 %v9943_v7  ;;  %9307 = vmatpush3.bf16.msra.mxu0 %v9944_v33 }
 0xad7   : > { %9290 = vmatprep.subr.bf16.mxu1 %v10115_v0  ;;  %9308 = vmatprep.subr.bf16.mxu0 %v10115_v0 }
 0xada   : > { %9291 = vmatpush3.bf16.msra.mxu1 %v9945_v34  ;;  %9309 = vmatpush3.bf16.msra.mxu0 %v9946_v35 }
 0xadb   : > { %9292 = vmatprep.subr.bf16.mxu1 %v10115_v0  ;;  %9310 = vmatprep.subr.bf16.mxu0 %v10115_v0 }
 0xade   : > { %9293 = vmatpush3.bf16.msra.mxu1 %v9947_v37  ;;  %9311 = vmatpush3.bf16.msra.mxu0 %v9948_v38 }
 0xadf   : > { %9294 = vmatprep.subr.bf16.mxu1 %v10115_v0  ;;  %9312 = vmatprep.subr.bf16.mxu0 %v10115_v0 }
 0xae2   : > { %9295 = vmatpush3.bf16.msra.mxu1 %v9949_v43  ;;  %9313 = vmatpush3.bf16.msra.mxu0 %v9950_v45 }
 0xae3   : > { %9314 = vmatprep.subr.bf16.mxu0 %v10115_v0  ;;  %9320 = vmatprep.subr.bf16.mxu1 %v10115_v0 }
 0xae5   : > { %9297 = vmatmul.mubr.bf16.vlgmr.msra.gmra.mxu1 %v5827_v54 }
 0xae6   : > { %9315 = vmatpush3.bf16.msra.mxu0 %v9952_v51  ;;  %9321 = vmatpush3.bf16.msra.mxu1 %v9953_v52 }
 0xae7   : > { %9322 = vmatprep.subr.bf16.mxu1 %v10115_v0  ;;  %9336 = vmatprep.mubr.msk.bf16.mxu1 %vm10116_vm0, %v10115_v0 }
 0xae8   : > { %9340 = vmatprep.subr.bf16.mxu0 %v10115_v0 }
 0xae9   : > { %9317 = vmatmul.mubr.bf16.vlgmr.msra.gmra.mxu0 %v5952_v58 }
 0xaea   : > { %9323 = vmatpush3.bf16.msra.mxu1 %v9954_v57  ;;  %9356 = vmatprep.mubr.msk.bf16.mxu0 %vm10116_vm0, %v10115_v0 }
 0xaeb   : > { %9324 = vmatprep.subr.bf16.mxu1 %v10115_v0  ;;  %9341 = vmatpush3.bf16.msra.mxu0 %v9969_v21 }
 0xaec   : > { %9342 = vmatprep.subr.bf16.mxu0 %v10115_v0 }
 0xaee   : > { %9325 = vmatpush3.bf16.msra.mxu1 %v9955_v41 }
 0xaef   : > { %9326 = vmatprep.subr.bf16.mxu1 %v10115_v0  ;;  %9343 = vmatpush3.bf16.msra.mxu0 %v9970_v22 }
 0xaf0   : > { %v5189_v63 = vpop.f32.mrf.mxu1  ;;  %9344 = vmatprep.subr.bf16.mxu0 %v10115_v0 }
 0xaf1   : > { %v5279_v25 = vadd.f32 %v10966_v44, %v5189_v63 }
 0xaf2   : > { %9327 = vmatpush3.bf16.msra.mxu1 %v9956_v60  ;;  %v9178_v53 = vpop.f32.mrf.mxu1 }
 0xaf3   : > { %9328 = vmatprep.subr.bf16.mxu1 %v10115_v0  ;;  %9345 = vmatpush3.bf16.msra.mxu0 %v9971_v23 }
 0xaf4   : > { %v5192_v3 = vpop.f32.mrf.mxu1  ;;  %9346 = vmatprep.subr.bf16.mxu0 %v10115_v0 }
 0xaf5   : > { %v5282_v31 = vadd.f32 %v10968_v36, %v5192_v3 }
 0xaf6   : > { %9329 = vmatpush3.bf16.msra.mxu1 %v9957_v1  ;;  %v9179_v59 = vpop.f32.mrf.mxu1 }
 0xaf7   : > { %9330 = vmatprep.subr.bf16.mxu1 %v10115_v0  ;;  %9347 = vmatpush3.bf16.msra.mxu0 %v9972_v27 }
 0xaf8   : > { %9348 = vmatprep.subr.bf16.mxu0 %v10115_v0 }
 0xafa   : > { %9331 = vmatpush3.bf16.msra.mxu1 %v9958_v4 }
 0xafb   : > { %9332 = vmatprep.subr.bf16.mxu1 %v10115_v0 }
 0xafe   : > { %9333 = vmatpush3.bf16.msra.mxu1 %v9959_v5 }
 0xaff   : > { %9334 = vmatprep.subr.bf16.mxu1 %v10115_v0 }
 0xb02   : > { %9335 = vmatpush3.bf16.msra.mxu1 %v9960_v6 }
 0xb03   : > { %9360 = vmatprep.subr.bf16.mxu1 %v10115_v0 }
 0xb05   : > { %9337 = vmatmul.mubr.bf16.vlgmr.msra.gmra.mxu1 %v6065_v11 }
 0xb06   : > { %9376 = vmatprep.mubr.msk.bf16.mxu1 %vm10116_vm0, %v10115_v0  ;;  %9361 = vmatpush3.bf16.msra.mxu1 %v9961_v12 }
 0xb07   : > { %9362 = vmatprep.subr.bf16.mxu1 %v10115_v0 }
 0xb0a   : > { %9363 = vmatpush3.bf16.msra.mxu1 %v9962_v13 }
 0xb0b   : > { %9364 = vmatprep.subr.bf16.mxu1 %v10115_v0 }
 0xb0e   : > { %9365 = vmatpush3.bf16.msra.mxu1 %v9963_v15 }
 0xb0f   : > { %9366 = vmatprep.subr.bf16.mxu1 %v10115_v0 }
 0xb12   : > { %9367 = vmatpush3.bf16.msra.mxu1 %v9964_v16 }
 0xb13   : > { %9368 = vmatprep.subr.bf16.mxu1 %v10115_v0 }
 0xb16   : > { %9369 = vmatpush3.bf16.msra.mxu1 %v9965_v17 }
 0xb17   : > { %9370 = vmatprep.subr.bf16.mxu1 %v10115_v0 }
 0xb1a   : > { %9371 = vmatpush3.bf16.msra.mxu1 %v9966_v18 }
 0xb1b   : > { %9372 = vmatprep.subr.bf16.mxu1 %v10115_v0 }
 0xb1e   : > { %9373 = vmatpush3.bf16.msra.mxu1 %v9967_v19 }
 0xb1f   : > { %9374 = vmatprep.subr.bf16.mxu1 %v10115_v0 }
 0xb22   : > { %9375 = vmatpush3.bf16.msra.mxu1 %v9968_v20  ;;  %v9973_v20 = vld [vmem:[#allocation5 + $0x18] sm:$0xff]  }
 0xb23   : > { %9400 = vmatprep.subr.bf16.mxu1 %v10115_v0  ;;  %9349 = vmatpush3.bf16.msra.mxu0 %v9973_v20 }
 0xb24   : > { %9350 = vmatprep.subr.bf16.mxu0 %v10115_v0 }
 0xb65   : > { %v5399_v26 = vpop.f32.mrf.mxu1 }
 0xb66   : > { %v5406_v28 = vadd.f32 %v5399_v26, %v5279_v25  ;;  %v9974_v26 = vld [vmem:[#allocation5 + $0x10] sm:$0xff]  }
 0xb67   : > { %v9218_v30 = vpop.f32.mrf.mxu1  ;;  %9351 = vmatpush3.bf16.msra.mxu0 %v9974_v26 }
 0xb68   : > { %9352 = vmatprep.subr.bf16.mxu0 %v10115_v0 }
 0xb69   : > { %v5402_v32 = vpop.f32.mrf.mxu1  ;;  %v5512_v39 = vpop.f32.mrf.mxu0 }
 0xb6a   : > { %v5407_v7 = vadd.f32 %v5402_v32, %v5282_v31  ;;  %v5519_v33 = vadd.f32 %v5512_v39, %v5406_v28  ;;  %v9975_v32 = vld [vmem:[#allocation5 + $0x8] sm:$0xff]  }
 0xb6b   : > { %v9219_v34 = vpop.f32.mrf.mxu1  ;;  %v9238_v35 = vpop.f32.mrf.mxu0  ;;  %9353 = vmatpush3.bf16.msra.mxu0 %v9975_v32  ;;  %v9987_v32 = vld [vmem:[#allocation5 + $0x60] sm:$0xff]  }
 0xb6c   : > { %9354 = vmatprep.subr.bf16.mxu0 %v10115_v0 }
 0xb6d   : > { %v5515_v37 = vpop.f32.mrf.mxu0 }
 0xb6e   : > { %v5520_v44 = vadd.f32 %v5515_v37, %v5407_v7  ;;  %v9976_v7 = vld [vmem:[#allocation5] sm:$0xff]  }
 0xb6f   : > { %v9239_v38 = vpop.f32.mrf.mxu0  ;;  %9355 = vmatpush3.bf16.msra.mxu0 %v9976_v7  ;;  %v9993_v7 = vld [vmem:[#allocation5 + $0x48] sm:$0xff]  }
 0xb70   : > { %9380 = vmatprep.subr.bf16.mxu0 %v10115_v0  ;;  %v9986_v38 = vld [vmem:[#allocation5 + $0xb0] sm:$0xff]  }
 0xb85   : > { %v5643_v40 = vpop.f32.mrf.mxu1 }
 0xb86   : > { %v5650_v63 = vadd.f32 %v5643_v40, %v5519_v33  ;;  %v9988_v40 = vld [vmem:[#allocation5 + $0xa8] sm:$0xff]  }
 0xb87   : > { %v9258_v49 = vpop.f32.mrf.mxu1 }
 0xb88   : > { %v9990_v49 = vld [vmem:[#allocation5 + $0xa0] sm:$0xff]  }
 0xb89   : > { %v5646_v43 = vpop.f32.mrf.mxu1  ;;  %v5796_v45 = vpop.f32.mrf.mxu0 }
 0xb8a   : > { %v5803_v53 = vadd.f32 %v5796_v45, %v5650_v63  ;;  %v5651_v1 = vadd.f32 %v5646_v43, %v5520_v44  ;;  %v9984_v44 = vld [vmem:[#allocation5 + $0xb8] sm:$0xff]   ;;  %v9994_v43 = vld [vmem:[#allocation5 + $0x90] sm:$0xff]   ;;  %v9996_v45 = vld [vmem:[#allocation5 + $0x88] sm:$0xff]  }
 0xb8b   : > { %v9259_v48 = vpop.f32.mrf.mxu1  ;;  %v9278_v46 = vpop.f32.mrf.mxu0 }
 0xb8d   : > { %v5799_v51 = vpop.f32.mrf.mxu0 }
 0xb8e   : > { %v5804_v59 = vadd.f32 %v5799_v51, %v5651_v1 }
 0xb8f   : > { %v9279_v36 = vpop.f32.mrf.mxu0 }
 0xba5   : > { %v5911_v52 = vpop.f32.mrf.mxu1 }
 0xba6   : > { %v5918_v3 = vadd.f32 %v5911_v52, %v5803_v53 }
 0xba7   : > { %v9298_v54 = vpop.f32.mrf.mxu1 }
 0xba9   : > { %v5914_v50 = vpop.f32.mrf.mxu1  ;;  %v6036_v56 = vpop.f32.mrf.mxu0 }
 0xbaa   : > { %v6043_v4 = vadd.f32 %v6036_v56, %v5918_v3  ;;  %v5919_v6 = vadd.f32 %v5914_v50, %v5804_v59 }
 0xbab   : > { %v9299_v57 = vpop.f32.mrf.mxu1  ;;  %v9318_v58 = vpop.f32.mrf.mxu0 }
 0xbac   : > { %v6205_v57 = vld [vmem:[#allocation2 + $0x10] sm:$0x11] }
 0xbad   : > { %v6039_v41 = vpop.f32.mrf.mxu0 }
 0xbae   : > { %v6044_v11 = vadd.f32 %v6039_v41, %v5919_v6  ;;  %v9997_v41 = vld [vmem:[#allocation5 + $0x80] sm:$0xff]  }
 0xbaf   : > { %v9319_v60 = vpop.f32.mrf.mxu0 }
 0xbc5   : > { %v6149_v5 = vpop.f32.mrf.mxu1 }
 0xbc6   : > { %v6156_v9 = vadd.f32 %v6149_v5, %v6043_v4 }
 0xbc7   : > { %v9338_v10 = vpop.f32.mrf.mxu1 }
 0xbc8   : > { %v6158_v12 = vadd.f32 %v10902_v62, %v6156_v9  ;;  %v9983_v10 = vld [vmem:[#allocation5 + $0x70] sm:$0xff]  }
 0xbc9   : > { %v6152_v13 = vpop.f32.mrf.mxu1 }
 0xbca   : > { %v6160_v15 = vmax.f32 %v6158_v12, 0.0  ;;  %v6157_v16 = vadd.f32 %v6152_v13, %v6044_v11 }
 0xbcb   : > { %v9339_v17 = vpop.f32.mrf.mxu1 }
 0xbcc   : > { %v6162_v18 = vadd.f32 %v6160_v15, %v10744_v8  ;;  %v6159_v19 = vadd.f32 %v10902_v62, %v6157_v16 }
 0xbce   : > { %v7935_v21 = vpack.c.bf16 %v6162_v18, %v6162_v18  ;;  %v6161_v22 = vmax.f32 %v6159_v19, 0.0 }
 0xbd0   : > { %v6163_v23 = vadd.f32 %v6161_v22, %v10748_v14  ;;  %v6171_v25 = vshrl.u32 %v7935_v21, 16  ;;  %v6174_v31 = vshll.u32 %v7935_v21, 16 }
 0xbd2   : > { %v6164_v27 = vpack.c.bf16 %v6163_v23, %v6162_v18  ;;  %v7936_v28 = vpack.c.bf16 %v6163_v23, %v6163_v23  ;;  %v6173_v30 = vrot.slane %v6171_v25, 7  ;;  %v9985_v23 = vld [vmem:[#allocation5 + $0x68] sm:$0xff]  }
 0xbd4   : > { %9377 = vmatmul.mubr.bf16.vlgmr.msra.gmra.mxu1 %v6164_v27  ;;  %v6176_v8 = vor.u32 %v6174_v31, %v6173_v30  ;;  %v6179_v39 = vshrl.u32 %v7936_v28, 16  ;;  %v6182_v62 = vshll.u32 %v7936_v28, 16  ;;  %v6177_v34 = vrot.slane %v6173_v30, 4 }
 0xbd5   : > { %9416 = vmatprep.mubr.msk.bf16.mxu1 %vm10116_vm0, %v10115_v0  ;;  %9401 = vmatpush3.bf16.msra.mxu1 %v9984_v44 }
 0xbd6   : > { %6187 = vrot.lane.b32.xlu1 %v6176_v8, %s10118_s10  ;;  %v6181_v14 = vrot.slane %v6179_v39, 7  ;;  %9402 = vmatprep.subr.bf16.mxu1 %v10115_v0 }
 0xbd8   : > { %v6186_v33 = vrot.slane %v6181_v14, 4  ;;  %v6184_v35 = vor.u32 %v6182_v62, %v6181_v14  ;;  %v9989_v14 = vld [vmem:[#allocation5 + $0x58] sm:$0xff]   ;;  %v9991_v62 = vld [vmem:[#allocation5 + $0x50] sm:$0xff]  }
 0xbd9   : > { %9403 = vmatpush3.bf16.msra.mxu1 %v9986_v38  ;;  %v9998_v38 = vld [vmem:[#allocation5 + $0xf8] sm:$0xff]  }
 0xbda   : > { %6191 = vrot.lane.b32.xlu1 %v6186_v33, %s10118_s10  ;;  %v6185_v37 = vsel %vm10279_vm10, %v6177_v34, %v6184_v35  ;;  %9404 = vmatprep.subr.bf16.mxu1 %v10115_v0  ;;  %v9995_v33 = vld [vmem:[#allocation5 + $0x40] sm:$0xff]  }
 0xbdb   : > { %6189 = vrot.lane.b32.xlu0 %v6185_v37, %s10118_s10 }
 0xbdd   : > { %9405 = vmatpush3.bf16.msra.mxu1 %v9988_v40 }
 0xbde   : > { %9406 = vmatprep.subr.bf16.mxu1 %v10115_v0 }
 0xbe1   : > { %9407 = vmatpush3.bf16.msra.mxu1 %v9990_v49 }
 0xbe2   : > { %9408 = vmatprep.subr.bf16.mxu1 %v10115_v0 }
 0xbe5   : > { %9409 = vmatpush3.bf16.msra.mxu1 %v9992_v42 }
 0xbe6   : > { %9410 = vmatprep.subr.bf16.mxu1 %v10115_v0 }
 0xbe9   : > { %9411 = vmatpush3.bf16.msra.mxu1 %v9994_v43  ;;  %v9999_v43 = vld [vmem:[#allocation5 + $0xf0] sm:$0xff]  }
 0xbea   : > { %9412 = vmatprep.subr.bf16.mxu1 %v10115_v0 }
 0xbed   : > { %9413 = vmatpush3.bf16.msra.mxu1 %v9996_v45  ;;  %v10000_v45 = vld [vmem:[#allocation5 + $0x178] sm:$0xff]  }
 0xbee   : > { %9414 = vmatprep.subr.bf16.mxu1 %v10115_v0 }
 0xbf1   : > { %9415 = vmatpush3.bf16.msra.mxu1 %v9997_v41 }
 0xbf2   : > { %9440 = vmatprep.subr.bf16.mxu1 %v10115_v0 }
 0xc48   : > { %v6188_v48 = vpop.permute.xlu1 %6187 }
 0xc49   : > { %v6193_v46 = vrot.slane %v6188_v48, 4 }
 0xc4b   : > { %v6196_v51 = vsel %vm455_vm6, %v6193_v46, %v6188_v48 }
 0xc4c   : > { %v6202_v36 = vsel %vm10298_vm7, %v6196_v51, %v10930_v47  ;;  %v6192_v52 = vpop.permute.xlu1 %6191 }
 0xc4d   : > { %6203 = vst [vmem:[#allocation2] sm:$0xff] %v6202_v36  ;;  %v6195_v54 = vrot.slane %v6192_v52, 4  ;;  %v6190_v50 = vpop.permute.xlu0 %6189 }
 0xc4e   : > { %v6194_v56 = vrot.slane %v6190_v50, 4 }
 0xc4f   : > { %v6198_v58 = vsel %vm455_vm6, %v6195_v54, %v6192_v52  ;;  %v10002_v52 = vld [vmem:[#allocation5 + $0x170] sm:$0xff]   ;;  %v10003_v54 = vld [vmem:[#allocation5 + $0xe0] sm:$0xff]  }
 0xc50   : > { %v6206_v60 = vsel %vm10308_vm12, %v6198_v58, %v6205_v57  ;;  %v6197_v63 = vsel %vm455_vm6, %v6194_v56, %v6190_v50  ;;  %v10004_v50 = vld [vmem:[#allocation5 + $0x168] sm:$0xff]   ;;  %v10005_v57 = vld [vmem:[#allocation5 + $0xd8] sm:$0xff]   ;;  %v10006_v58 = vld [vmem:[#allocation5 + $0x160] sm:$0xff]  }
 0xc51   : > { %6207 = vst [vmem:[#allocation2 + $0x10] sm:$0x11] %v6206_v60  ;;  %6204 = vst.msk [vmem:[#allocation2 + $0x8] sm:$0xff] %vm10314_vm8, %v6197_v63  ;;  %v10007_v63 = vld [vmem:[#allocation5 + $0xd0] sm:$0xff]  }
 0xc54   : > { %v7061_v16 = vld [vmem:[#allocation2] sm:$0xee] }
 0xc55   : > { %v6662_v41 = vld [vmem:[#allocation2] sm:$0xf] }
 0xc58   : > { %v6427_v47 = vld [vmem:[#allocation2 + $0x8] sm:$0xff]  ;;  %v6795_v59 = vld [vmem:[#allocation2 + $0x10] sm:$0x11] }
 0xc59   : > { %v9977_v53 = vld [vmem:[#allocation2] ss:$8 sps:$4 sm:$0xff]   ;;  %v7855_v1 = vcombine.high %v6202_v36, %v6427_v47  ;;  %v7854_v3 = vcombine.low %v6202_v36, %v6427_v47  ;;  %v7885_v4 = vcombine.high %v6795_v59, %v6795_v59  ;;  %v7884_v5 = vcombine.low %v6795_v59, %v6795_v59 }
 0xc5a   : > { %9357 = vmatmul.mubr.bf16.vlgmr.msra.gmra.mxu0 %v9977_v53  ;;  %v7904_v17 = vcombine.high %v7061_v16, %v6427_v47  ;;  %v7903_v18 = vcombine.low %v7061_v16, %v6427_v47  ;;  %v10001_v36 = vld [vmem:[#allocation5 + $0xe8] sm:$0xff]   ;;  %v11125_v56 = vld [vmem:[#allocation2 + $0x8] sm:$0xf] }
 0xc5b   : > { %6454 = vrot.lane.b32.xlu1 %v7855_v1, %s10119_s11  ;;  %6452 = vrot.lane.b32.xlu0 %v7854_v3, %s10119_s11  ;;  %v6840_v61 = vshll.u32 %v7855_v1, 16  ;;  %v6828_v6 = vshll.u32 %v7854_v3, 16  ;;  %v6845_v2 = vshll.u32 %v7885_v4, 16  ;;  %v6833_v9 = vshll.u32 %v7884_v5, 16  ;;  %v10009_v53 = vld [vmem:[#allocation5 + $0xc8] sm:$0xff]   ;;  %v10017_v16 = vld [vmem:[#allocation5 + $0x1b0] sm:$0xff]  }
 0xc5c   : > { %9381 = vmatpush3.bf16.msra.mxu0 %v9982_v55  ;;  %9396 = vmatprep.mubr.msk.bf16.mxu0 %vm10116_vm0, %v10115_v0  ;;  %v6838_v11 = vshrl.u32 %v7855_v1, 16  ;;  %v6826_v13 = vshrl.u32 %v7854_v3, 16  ;;  %v7086_v27 = vrot.slane %v7904_v17, 1  ;;  %v7087_v28 = vrot.slane %v7885_v4, 1  ;;  %v10008_v55 = vld [vmem:[#allocation5 + $0x158] sm:$0xff]   ;;  %v10011_v4 = vld [vmem:[#allocation5 + $0xc0] sm:$0xff]  }
 0xc5d   : > { %v6842_v12 = vrot.slane %v6840_v61, 1  ;;  %v6830_v15 = vrot.slane %v6828_v6, 1  ;;  %9382 = vmatprep.subr.bf16.mxu0 %v10115_v0  ;;  %v6847_v20 = vrot.slane %v6845_v2, 1  ;;  %v6835_v22 = vrot.slane %v6833_v9, 1  ;;  %v10018_v17 = vld [vmem:[#allocation5 + $0x1f8] sm:$0xff]  }
 0xc5e   : > { %v7083_v30 = vrot.slane %v7903_v18, 1  ;;  %v7084_v31 = vrot.slane %v7884_v5, 1  ;;  %v7088_v8 = vsel %vm1252_vm13, %v7086_v27, %v7087_v28  ;;  %v7872_v60 = vcombine.low %v6662_v41, %v11125_v56  ;;  %v10012_v5 = vld [vmem:[#allocation5 + $0x148] sm:$0xff]   ;;  %v10026_v27 = vld [vmem:[#allocation5 + $0x1d8] sm:$0xff]  }
 0xc5f   : > { %6567 = vrot.lane.b32.xlu1 %v7855_v1, %s10120_s12  ;;  %6565 = vrot.lane.b32.xlu0 %v7854_v3, %s10120_s12  ;;  %v6843_v19 = vor.u32 %v6842_v12, %v6838_v11  ;;  %v6831_v21 = vor.u32 %v6830_v15, %v6826_v13  ;;  %v10010_v1 = vld [vmem:[#allocation5 + $0x150] sm:$0xff]   ;;  %v11132_v3 = vld [vmem:[#allocation2 + $0x10] ss:$0 sps:$4 sm:$0x11]   ;;  %v10027_v28 = vld [vmem:[#allocation5 + $0x188] sm:$0xff]  }
 0xc60   : > { %9383 = vmatpush3.bf16.msra.mxu0 %v9983_v10  ;;  %v7085_v39 = vsel %vm1252_vm13, %v7083_v30, %v7084_v31  ;;  %v6692_v47 = vshll.u32 %v7872_v60, 16  ;;  %v6690_v61 = vshrl.u32 %v7872_v60, 16  ;;  %v6697_v6 = vshll.u32 %v11132_v3, 16  ;;  %v10015_v10 = vld [vmem:[#allocation5 + $0x140] sm:$0xff]   ;;  %v10016_v11 = vld [vmem:[#allocation5 + $0x1b8] sm:$0xff]   ;;  %v10028_v30 = vld [vmem:[#allocation5 + $0x1d0] sm:$0xff]  }
 0xc61   : > { %v6848_v25 = vsel %vm972_vm11, %v6843_v19, %v6847_v20  ;;  %v6836_v26 = vsel %vm972_vm11, %v6831_v21, %v6835_v22  ;;  %9384 = vmatprep.subr.bf16.mxu0 %v10115_v0  ;;  %v10019_v19 = vld [vmem:[#allocation5 + $0x1a8] sm:$0xff]   ;;  %v10020_v20 = vld [vmem:[#allocation5 + $0x1f0] sm:$0xff]   ;;  %v10021_v21 = vld [vmem:[#allocation5 + $0x1a0] sm:$0xff]  }
 0xc62   : > { %v6694_v59 = vrot.slane %v6692_v47, 1  ;;  %v6699_v9 = vrot.slane %v6697_v6, 1  ;;  %v10022_v22 = vld [vmem:[#allocation5 + $0x1e8] sm:$0xff]  }
 0xc63   : > { %6851 = vrot.lane.b32.xlu1 %v6848_v25, %s10120_s12  ;;  %6849 = vrot.lane.b32.xlu0 %v6836_v26, %s10120_s12  ;;  %v10024_v25 = vld [vmem:[#allocation5 + $0x1e0] sm:$0xff]   ;;  %v10025_v26 = vld [vmem:[#allocation5 + $0x190] sm:$0xff]   ;;  %v6946_v31 = vld [vmem:[#allocation2] sm:$0xe] }
 0xc64   : > { %9385 = vmatpush3.bf16.msra.mxu0 %v9985_v23  ;;  %v6695_v2 = vor.u32 %v6694_v59, %v6690_v61  ;;  %v10023_v23 = vld [vmem:[#allocation5 + $0x198] sm:$0xff]  }
 0xc65   : > { %9386 = vmatprep.subr.bf16.mxu0 %v10115_v0 }
 0xc66   : > { %v6700_v12 = vsel %vm972_vm11, %v6695_v2, %v6699_v9 }
 0xc67   : > { %7091 = vrot.lane.b32.xlu1 %v7088_v8, %s10119_s11  ;;  %7089 = vrot.lane.b32.xlu0 %v7085_v39, %s10119_s11 }
 0xc68   : > { %9387 = vmatpush3.bf16.msra.mxu0 %v9987_v32  ;;  %v7894_v32 = vcombine.low %v6946_v31, %v11125_v56 }
 0xc69   : > { %9388 = vmatprep.subr.bf16.mxu0 %v10115_v0 }
 0xc6b   : > { %7204 = vrot.lane.b32.xlu1 %v7088_v8, %s10120_s12  ;;  %7202 = vrot.lane.b32.xlu0 %v7085_v39, %s10120_s12  ;;  %v10029_v8 = vld [vmem:[#allocation5 + $0x180] sm:$0xff]   ;;  %v10030_v39 = vld [vmem:[#allocation5 + $0x1c8] sm:$0xff]  }
 0xc6c   : > { %9389 = vmatpush3.bf16.msra.mxu0 %v9989_v14  ;;  %v6966_v14 = vrot.slane %v7894_v32, 1 }
 0xc6d   : > { %9390 = vmatprep.subr.bf16.mxu0 %v10115_v0 }
 0xc70   : > { %9391 = vmatpush3.bf16.msra.mxu0 %v9991_v62  ;;  %v6967_v62 = vrot.slane %v11132_v3, 1 }
 0xc71   : > { %9392 = vmatprep.subr.bf16.mxu0 %v10115_v0 }
 0xc74   : > { %9393 = vmatpush3.bf16.msra.mxu0 %v9993_v7  ;;  %v10032_v7 = vld [vmem:[#allocation5 + $0x1c0] sm:$0xff]  }
 0xc75   : > { %9394 = vmatprep.subr.bf16.mxu0 %v10115_v0 }
 0xc78   : > { %9395 = vmatpush3.bf16.msra.mxu0 %v9995_v33  ;;  %v10033_v33 = vld [vmem:[#allocation5 + $0x238] sm:$0xff]  }
 0xc79   : > { %9420 = vmatprep.subr.bf16.mxu0 %v10115_v0 }
 0xc94   : > { %v11110_v34 = vpop.f32.mrf.mxu1 }
 0xc96   : > { %v9378_v35 = vpop.f32.mrf.mxu1 }
 0xc97   : > { %v6968_v35 = vsel %vm1252_vm13, %v6966_v14, %v6967_v62  ;;  %v10042_v62 = vld [vmem:[%s11198_s6] ss:$0 sm:$0xff] }
 0xc98   : > { %v11112_v37 = vpop.f32.mrf.mxu1 }
 0xc9a   : > { %v9379_v44 = vpop.f32.mrf.mxu1 }
 0xccd   : > { %v6455_v40 = vpop.permute.xlu1 %6454  ;;  %v6453_v49 = vpop.permute.xlu0 %6452 }
 0xcce   : > { %v6456_v42 = vsel %vm735_vm14, %v6453_v49, %v6455_v40  ;;  %v10034_v40 = vld [vmem:[#allocation5 + $0x230] sm:$0xff]  }
 0xccf   : > { %9397 = vmatmul.mubr.bf16.vlgmr.msra.gmra.mxu0 %v6456_v42  ;;  %v10035_v42 = vld [vmem:[#allocation5 + $0x228] sm:$0xff]  }
 0xcd0   : > { %9421 = vmatpush3.bf16.msra.mxu0 %v9998_v38  ;;  %9436 = vmatprep.mubr.msk.bf16.mxu0 %vm10116_vm0, %v10115_v0 }
 0xcd1   : > { %v6568_v48 = vpop.permute.xlu1 %6567  ;;  %v6566_v46 = vpop.permute.xlu0 %6565  ;;  %9422 = vmatprep.subr.bf16.mxu0 %v10115_v0 }
 0xcd2   : > { %v6569_v51 = vsel %vm850_vm15, %v6566_v46, %v6568_v48  ;;  %v10037_v46 = vld [vmem:[#allocation5 + $0x218] sm:$0xff]  }
 0xcd3   : > { %9417 = vmatmul.mubr.bf16.vlgmr.msra.gmra.mxu1 %v6569_v51 }
 0xcd4   : > { %9423 = vmatpush3.bf16.msra.mxu0 %v9999_v43  ;;  %9441 = vmatpush3.bf16.msra.mxu1 %v10000_v45  ;;  %v10036_v43 = vld [vmem:[#allocation5 + $0x220] sm:$0xff]  }
 0xcd5   : > { %9424 = vmatprep.subr.bf16.mxu0 %v10115_v0  ;;  %9442 = vmatprep.subr.bf16.mxu1 %v10115_v0  ;;  %v6852_v13 = vpop.permute.xlu1 %6851  ;;  %v6850_v15 = vpop.permute.xlu0 %6849 }
 0xcd6   : > { %9456 = vmatprep.mubr.msk.bf16.mxu1 %vm10116_vm0, %v10115_v0  ;;  %v6853_v18 = vsel %vm850_vm15, %v6850_v15, %v6852_v13 }
 0xcd8   : > { %9425 = vmatpush3.bf16.msra.mxu0 %v10001_v36  ;;  %9443 = vmatpush3.bf16.msra.mxu1 %v10002_v52  ;;  %v10038_v52 = vld [vmem:[#allocation5 + $0x210] sm:$0xff]  }
 0xcd9   : > { %9426 = vmatprep.subr.bf16.mxu0 %v10115_v0  ;;  %9444 = vmatprep.subr.bf16.mxu1 %v10115_v0  ;;  %v7092_v44 = vpop.permute.xlu1 %7091  ;;  %v7090_v38 = vpop.permute.xlu0 %7089 }
 0xcda   : > { %v7093_v49 = vsel %vm735_vm14, %v7090_v38, %v7092_v44 }
 0xcdc   : > { %9427 = vmatpush3.bf16.msra.mxu0 %v10003_v54  ;;  %9445 = vmatpush3.bf16.msra.mxu1 %v10004_v50  ;;  %v10039_v54 = vld [vmem:[#allocation5 + $0x208] sm:$0xff]   ;;  %v10040_v50 = vld [vmem:[#allocation5 + $0x200] sm:$0xff]  }
 0xcdd   : > { %9428 = vmatprep.subr.bf16.mxu0 %v10115_v0  ;;  %9446 = vmatprep.subr.bf16.mxu1 %v10115_v0  ;;  %v7205_v56 = vpop.permute.xlu1 %7204 }
 0xce0   : > { %9429 = vmatpush3.bf16.msra.mxu0 %v10005_v57  ;;  %9447 = vmatpush3.bf16.msra.mxu1 %v10006_v58  ;;  %v7203_v57 = vpop.permute.xlu0 %7202 }
 0xce1   : > { %9430 = vmatprep.subr.bf16.mxu0 %v10115_v0  ;;  %9448 = vmatprep.subr.bf16.mxu1 %v10115_v0  ;;  %v7206_v58 = vsel %vm850_vm15, %v7203_v57, %v7205_v56 }
 0xce4   : > { %9431 = vmatpush3.bf16.msra.mxu0 %v10007_v63  ;;  %9449 = vmatpush3.bf16.msra.mxu1 %v10008_v55 }
 0xce5   : > { %9432 = vmatprep.subr.bf16.mxu0 %v10115_v0  ;;  %9450 = vmatprep.subr.bf16.mxu1 %v10115_v0 }
 0xce8   : > { %9433 = vmatpush3.bf16.msra.mxu0 %v10009_v53  ;;  %9451 = vmatpush3.bf16.msra.mxu1 %v10010_v1 }
 0xce9   : > { %9434 = vmatprep.subr.bf16.mxu0 %v10115_v0  ;;  %9452 = vmatprep.subr.bf16.mxu1 %v10115_v0 }
 0xcec   : > { %9435 = vmatpush3.bf16.msra.mxu0 %v10011_v4  ;;  %9453 = vmatpush3.bf16.msra.mxu1 %v10012_v5 }
 0xced   : > { %9454 = vmatprep.subr.bf16.mxu1 %v10115_v0  ;;  %9460 = vmatprep.subr.bf16.mxu0 %v10115_v0 }
 0xcef   : > { %9437 = vmatmul.mubr.bf16.vlgmr.msra.gmra.mxu0 %v6700_v12 }
 0xcf0   : > { %9455 = vmatpush3.bf16.msra.mxu1 %v10015_v10  ;;  %9461 = vmatpush3.bf16.msra.mxu0 %v10016_v11 }
 0xcf1   : > { %9462 = vmatprep.subr.bf16.mxu0 %v10115_v0  ;;  %9480 = vmatprep.subr.bf16.mxu1 %v10115_v0 }
 0xcf2   : > { %9476 = vmatprep.mubr.msk.bf16.mxu0 %vm10116_vm0, %v10115_v0 }
 0xcf3   : > { %9457 = vmatmul.mubr.bf16.vlgmr.msra.gmra.mxu1 %v6853_v18 }
 0xcf4   : > { %9463 = vmatpush3.bf16.msra.mxu0 %v10017_v16  ;;  %9481 = vmatpush3.bf16.msra.mxu1 %v10018_v17 }
 0xcf5   : > { %9464 = vmatprep.subr.bf16.mxu0 %v10115_v0  ;;  %9482 = vmatprep.subr.bf16.mxu1 %v10115_v0 }
 0xcf6   : > { %9496 = vmatprep.mubr.msk.bf16.mxu1 %vm10116_vm0, %v10115_v0 }
 0xcf8   : > { %9465 = vmatpush3.bf16.msra.mxu0 %v10019_v19  ;;  %9483 = vmatpush3.bf16.msra.mxu1 %v10020_v20 }
 0xcf9   : > { %9466 = vmatprep.subr.bf16.mxu0 %v10115_v0  ;;  %9484 = vmatprep.subr.bf16.mxu1 %v10115_v0 }
 0xcfc   : > { %9467 = vmatpush3.bf16.msra.mxu0 %v10021_v21  ;;  %9485 = vmatpush3.bf16.msra.mxu1 %v10022_v22 }
 0xcfd   : > { %9468 = vmatprep.subr.bf16.mxu0 %v10115_v0  ;;  %9486 = vmatprep.subr.bf16.mxu1 %v10115_v0 }
 0xd00   : > { %9469 = vmatpush3.bf16.msra.mxu0 %v10023_v23  ;;  %9487 = vmatpush3.bf16.msra.mxu1 %v10024_v25 }
 0xd01   : > { %9470 = vmatprep.subr.bf16.mxu0 %v10115_v0  ;;  %9488 = vmatprep.subr.bf16.mxu1 %v10115_v0 }
 0xd04   : > { %9471 = vmatpush3.bf16.msra.mxu0 %v10025_v26  ;;  %9489 = vmatpush3.bf16.msra.mxu1 %v10026_v27 }
 0xd05   : > { %9472 = vmatprep.subr.bf16.mxu0 %v10115_v0  ;;  %9490 = vmatprep.subr.bf16.mxu1 %v10115_v0 }
 0xd08   : > { %9473 = vmatpush3.bf16.msra.mxu0 %v10027_v28  ;;  %9491 = vmatpush3.bf16.msra.mxu1 %v10028_v30 }
 0xd09   : > { %9474 = vmatprep.subr.bf16.mxu0 %v10115_v0  ;;  %9492 = vmatprep.subr.bf16.mxu1 %v10115_v0 }
 0xd0c   : > { %9475 = vmatpush3.bf16.msra.mxu0 %v10029_v8  ;;  %9493 = vmatpush3.bf16.msra.mxu1 %v10030_v39 }
 0xd0d   : > { %9494 = vmatprep.subr.bf16.mxu1 %v10115_v0  ;;  %9500 = vmatprep.subr.bf16.mxu0 %v10115_v0 }
 0xd0f   : > { %9477 = vmatmul.mubr.bf16.vlgmr.msra.gmra.mxu0 %v6968_v35 }
 0xd10   : > { %9495 = vmatpush3.bf16.msra.mxu1 %v10032_v7  ;;  %9501 = vmatpush3.bf16.msra.mxu0 %v10033_v33 }
 0xd11   : > { %9502 = vmatprep.subr.bf16.mxu0 %v10115_v0  ;;  %9516 = vmatprep.mubr.msk.bf16.mxu0 %vm10116_vm0, %v10115_v0 }
 0xd13   : > { %9497 = vmatmul.mubr.bf16.vlgmr.msra.gmra.mxu1 %v7093_v49 }
 0xd14   : > { %9503 = vmatpush3.bf16.msra.mxu0 %v10034_v40 }
 0xd15   : > { %9504 = vmatprep.subr.bf16.mxu0 %v10115_v0 }
 0xd18   : > { %9505 = vmatpush3.bf16.msra.mxu0 %v10035_v42 }
 0xd19   : > { %9506 = vmatprep.subr.bf16.mxu0 %v10115_v0 }
 0xd1a   : > { %v6330_v45 = vpop.f32.mrf.mxu0 }
 0xd1b   : > { %v6420_v41 = vadd.f32 %v11110_v34, %v6330_v45 }
 0xd1c   : > { %9507 = vmatpush3.bf16.msra.mxu0 %v10036_v43  ;;  %v9358_v48 = vpop.f32.mrf.mxu0 }
 0xd1d   : > { %9508 = vmatprep.subr.bf16.mxu0 %v10115_v0 }
 0xd1e   : > { %v6333_v51 = vpop.f32.mrf.mxu0 }
 0xd1f   : > { %v6423_v47 = vadd.f32 %v11112_v37, %v6333_v51 }
 0xd20   : > { %9509 = vmatpush3.bf16.msra.mxu0 %v10037_v46  ;;  %v9359_v36 = vpop.f32.mrf.mxu0 }
 0xd21   : > { %9510 = vmatprep.subr.bf16.mxu0 %v10115_v0 }
 0xd24   : > { %9511 = vmatpush3.bf16.msra.mxu0 %v10038_v52 }
 0xd25   : > { %9512 = vmatprep.subr.bf16.mxu0 %v10115_v0 }
 0xd28   : > { %9513 = vmatpush3.bf16.msra.mxu0 %v10039_v54 }
 0xd29   : > { %9514 = vmatprep.subr.bf16.mxu0 %v10115_v0 }
 0xd2c   : > { %9515 = vmatpush3.bf16.msra.mxu0 %v10040_v50 }
 0xd2f   : > { %9517 = vmatmul.mubr.bf16.vlgmr.msra.gmra.mxu0 %v7206_v58 }
 0xd8f   : > { %v6540_v60 = vpop.f32.mrf.mxu0 }
 0xd90   : > { %v6547_v63 = vadd.f32 %v6540_v60, %v6420_v41 }
 0xd91   : > { %v9398_v55 = vpop.f32.mrf.mxu0 }
 0xd93   : > { %v6543_v53 = vpop.f32.mrf.mxu0  ;;  %v6653_v1 = vpop.f32.mrf.mxu1 }
 0xd94   : > { %v6548_v3 = vadd.f32 %v6543_v53, %v6423_v47  ;;  %v6660_v59 = vadd.f32 %v6653_v1, %v6547_v63 }
 0xd95   : > { %v9399_v4 = vpop.f32.mrf.mxu0  ;;  %v9418_v5 = vpop.f32.mrf.mxu1 }
 0xd97   : > { %v6656_v0 = vpop.f32.mrf.mxu1 }
 0xd98   : > { %v6661_v61 = vadd.f32 %v6656_v0, %v6548_v3 }
 0xd99   : > { %v9419_v6 = vpop.f32.mrf.mxu1 }
 0xdaf   : > { %v6784_v2 = vpop.f32.mrf.mxu0 }
 0xdb0   : > { %v6791_v23 = vadd.f32 %v6784_v2, %v6660_v59 }
 0xdb1   : > { %v9438_v9 = vpop.f32.mrf.mxu0 }
 0xdb3   : > { %v6787_v10 = vpop.f32.mrf.mxu0  ;;  %v6937_v11 = vpop.f32.mrf.mxu1 }
 0xdb4   : > { %v6944_v25 = vadd.f32 %v6937_v11, %v6791_v23  ;;  %v6792_v26 = vadd.f32 %v6787_v10, %v6661_v61 }
 0xdb5   : > { %v9439_v12 = vpop.f32.mrf.mxu0  ;;  %v9458_v34 = vpop.f32.mrf.mxu1 }
 0xdb7   : > { %v6940_v13 = vpop.f32.mrf.mxu1 }
 0xdb8   : > { %v6945_v28 = vadd.f32 %v6940_v13, %v6792_v26 }
 0xdb9   : > { %v9459_v15 = vpop.f32.mrf.mxu1 }
 0xdcf   : > { %v7052_v16 = vpop.f32.mrf.mxu0 }
 0xdd0   : > { %v7059_v27 = vadd.f32 %v7052_v16, %v6944_v25 }
 0xdd1   : > { %v9478_v17 = vpop.f32.mrf.mxu0 }
 0xdd3   : > { %v7055_v37 = vpop.f32.mrf.mxu0  ;;  %v7177_v18 = vpop.f32.mrf.mxu1 }
 0xdd4   : > { %v7184_v30 = vadd.f32 %v7177_v18, %v7059_v27  ;;  %v7060_v32 = vadd.f32 %v7055_v37, %v6945_v28 }
 0xdd5   : > { %v9479_v19 = vpop.f32.mrf.mxu0  ;;  %v9498_v20 = vpop.f32.mrf.mxu1 }
 0xdd7   : > { %v7180_v21 = vpop.f32.mrf.mxu1 }
 0xdd8   : > { %v7185_v14 = vadd.f32 %v7180_v21, %v7060_v32 }
 0xdd9   : > { %v9499_v22 = vpop.f32.mrf.mxu1 }
 0xdef   : > { %v7290_v31 = vpop.f32.mrf.mxu0 }
 0xdf0   : > { %v7297_v8 = vadd.f32 %v7290_v31, %v7184_v30 }
 0xdf1   : > { %v9518_v39 = vpop.f32.mrf.mxu0 }
 0xdf2   : > { %v7299_v7 = vadd.f32 %v10042_v62, %v7297_v8 }
 0xdf3   : > { %v7293_v33 = vpop.f32.mrf.mxu0 }
 0xdf4   : > { %v7301_v35 = vmax.f32 %v7299_v7, 0.0  ;;  %v7298_v44 = vadd.f32 %v7293_v33, %v7185_v14 }
 0xdf5   : > { %v9519_v38 = vpop.f32.mrf.mxu0 }
 0xdf6   : > { %v7303_v40 = vadd.f32 %v7301_v35, %v10261_v24  ;;  %v7300_v49 = vadd.f32 %v10042_v62, %v7298_v44 }
 0xdf8   : > { %7305 = vst [vmem:[%s308_s26] sm:$0xff] %v7303_v40  ;;  %v7302_v42 = vmax.f32 %v7300_v49, 0.0 }
 0xdfa   : > { %v7304_v43 = vadd.f32 %v7302_v42, %v10266_v29 }
 0xdfc   : > { %7306 = vst [vmem:[%s308_s26 + $0x8] sm:$0xff] %v7304_v43 }
 0xdfd PF: > { %s19_s24 = sadd.s32 1, %s10109_s24  }
 0xdfe   : > { %p16_p3 = scmp.ge.s32.totalorder %s19_s24, 4  }
 0xe00   :  { %18 = sbr.rel (!%p16_p3) target bundleno = 2 (0x2), region = 103 }
 0xe05   :  { %7328 = vsyncpa [#allocation4], 1 }
 0xe06   :  { %7330 = vsyncpa [#allocation4 + $0x1], 1 }
 0xe07   :  { %7331 = vsyncpa [#allocation6], 1 }

</bundles_post_ra>
